<compile_context>
chip_gen: v7x
topology: tpu7x:2x2x1
jax: 0.10.0
libtpu: 0.0.40
codegen_flags: <defaults>
</compile_context>

<pallas_src>
import jax
import jax.numpy as jnp
from jax.experimental import pallas as pl
from jax.experimental.pallas import tpu as pltpu

# Explicit scoped-VMEM budget: > v5e's 16 MiB default, == v6e/v7x default, and the tile
# plan below keeps the double-buffered working set well under it (v7x physical = 64 MiB).
VMEM_LIMIT = 32 * 1024 * 1024
KPAD = 128  # VQ codebook size padded to one full lane width


def _round_up(x, m):
    return ((x + m - 1) // m) * m


def _tile_plan(n):
    """Row tile tm, reduction tile tk, with n_pad = round_up(n, tm) and tk | n_pad."""
    if n <= 512:
        tm = _round_up(n, 16)          # 16: bf16 sublane packing
        return tm, tm, tm
    tm = 512
    n_pad = _round_up(n, tm)
    tk = next(t for t in (2048, 1024, 512) if n_pad % t == 0)
    return n_pad, tm, tk


# ----------------------------------------------------------------------------
# in-kernel helper
# ----------------------------------------------------------------------------
def _ln_relu(x, gamma, beta):
    """LayerNorm (f32 stats, biased variance, eps=1e-5) followed by ReLU."""
    x = x.astype(jnp.float32)
    mean = jnp.mean(x, axis=-1, keepdims=True)
    xc = x - mean
    var = jnp.mean(xc * xc, axis=-1, keepdims=True)
    y = xc * jax.lax.rsqrt(var + 1e-5) * gamma + beta
    return jnp.maximum(y, 0.0)


# ----------------------------------------------------------------------------
# lin1: plain row-tiled linear
# ----------------------------------------------------------------------------
def _linear_kernel(x_ref, w_ref, b_ref, o_ref):
    x = x_ref[...].astype(jnp.bfloat16)
    o_ref[...] = (
        jnp.dot(x, w_ref[...], preferred_element_type=jnp.float32) + b_ref[...]
    ).astype(o_ref.dtype)


def linear(x, w_bf16, b, *, tm):
    n_pad, k = x.shape
    m = w_bf16.shape[1]
    return pl.pallas_call(
        _linear_kernel,
        out_shape=jax.ShapeDtypeStruct((n_pad, m), jnp.float32),
        grid=(n_pad // tm,),
        in_specs=[
            pl.BlockSpec((tm, k), lambda i: (i, 0)),
            pl.BlockSpec((k, m), lambda i: (0, 0)),
            pl.BlockSpec((1, m), lambda i: (0, 0)),
        ],
        out_specs=pl.BlockSpec((tm, m), lambda i: (i, 0)),
        compiler_params=pltpu.CompilerParams(
            dimension_semantics=("parallel",), vmem_limit_bytes=VMEM_LIMIT),
    )(x, w_bf16, b.reshape(1, m))


# ----------------------------------------------------------------------------
# hoisted per-layer LayerNorm + ReLU -> bf16 activations (computed ONCE per layer)
# ----------------------------------------------------------------------------
def _ln_relu_cast_kernel(x_ref, g_ref, b_ref, o_ref):
    o_ref[...] = _ln_relu(x_ref[...], g_ref[...], b_ref[...]).astype(o_ref.dtype)


def ln_relu_cast(x, gamma, beta, *, tm):
    n_pad, hdim = x.shape
    return pl.pallas_call(
        _ln_relu_cast_kernel,
        out_shape=jax.ShapeDtypeStruct((n_pad, hdim), jnp.bfloat16),
        grid=(n_pad // tm,),
        in_specs=[
            pl.BlockSpec((tm, hdim), lambda i: (i, 0)),
            pl.BlockSpec((1, hdim), lambda i: (0, 0)),
            pl.BlockSpec((1, hdim), lambda i: (0, 0)),
        ],
        out_specs=pl.BlockSpec((tm, hdim), lambda i: (i, 0)),
        compiler_params=pltpu.CompilerParams(
            dimension_semantics=("parallel",), vmem_limit_bytes=VMEM_LIMIT),
    )(x, gamma.reshape(1, hdim), beta.reshape(1, hdim))


# ----------------------------------------------------------------------------
# final head: LayerNorm + ReLU + lin2 fused (lane-dense padded output slab)
# ----------------------------------------------------------------------------
def _ln_relu_linear_kernel(x_ref, g_ref, bt_ref, w_ref, b_ref, o_ref):
    h = _ln_relu(x_ref[...], g_ref[...], bt_ref[...]).astype(jnp.bfloat16)
    o_ref[...] = (
        jnp.dot(h, w_ref[...], preferred_element_type=jnp.float32) + b_ref[...]
    ).astype(o_ref.dtype)


def ln_relu_linear(x, gamma, beta, w_bf16, b, *, tm):
    n_pad, hdim = x.shape
    m = w_bf16.shape[1]
    return pl.pallas_call(
        _ln_relu_linear_kernel,
        out_shape=jax.ShapeDtypeStruct((n_pad, m), jnp.float32),
        grid=(n_pad // tm,),
        in_specs=[
            pl.BlockSpec((tm, hdim), lambda i: (i, 0)),
            pl.BlockSpec((1, hdim), lambda i: (0, 0)),
            pl.BlockSpec((1, hdim), lambda i: (0, 0)),
            pl.BlockSpec((hdim, m), lambda i: (0, 0)),
            pl.BlockSpec((1, m), lambda i: (0, 0)),
        ],
        out_specs=pl.BlockSpec((tm, m), lambda i: (i, 0)),
        compiler_params=pltpu.CompilerParams(
            dimension_semantics=("parallel",), vmem_limit_bytes=VMEM_LIMIT),
    )(x, gamma.reshape(1, hdim), beta.reshape(1, hdim), w_bf16, b.reshape(1, m))


# ----------------------------------------------------------------------------
# fused SAGEConv (k-blocked mean aggregation, tile-nnz skip) + residual VQ epilogue
# ----------------------------------------------------------------------------
def _sage_vq_kernel(mask_ref, a_ref, xk_ref, xi_ref, wl_ref, bl_ref, wr_ref,
                    cbt_ref, cb_ref, cbsq_ref,
                    o_ref, ids_ref, loss_ref, acc_ref):
    i = pl.program_id(0)
    k = pl.program_id(1)
    nk = pl.num_programs(1)

    @pl.when(k == 0)
    def _():
        acc_ref[...] = jnp.zeros_like(acc_ref)

    # Skip the aggregation matmul for adjacency tiles with no edges (prefetched nnz mask).
    @pl.when(mask_ref[i * nk + k] > 0)
    def _():
        acc_ref[...] += jnp.dot(a_ref[...], xk_ref[...],
                                preferred_element_type=jnp.float32)

    @pl.when(k == nk - 1)
    def _():
        agg = acc_ref[...].astype(jnp.bfloat16)
        out = (
            jnp.dot(agg, wl_ref[...], preferred_element_type=jnp.float32)
            + bl_ref[...]
            + jnp.dot(xi_ref[...], wr_ref[...], preferred_element_type=jnp.float32)
        )
        o_ref[...] = out

        # ----- fused residual VQ on the fresh SAGE output (still in VMEM) -----
        r = out                                         # f32 (tm, H)
        rows = r.shape[0]
        groups = cbt_ref.shape[0]
        kpad = cbt_ref.shape[2]
        lane = jax.lax.broadcasted_iota(jnp.int32, (rows, kpad), 1)
        loss_acc = jnp.zeros((rows, 1), jnp.float32)
        for g in range(groups):                         # static unroll (groups = 3)
            ct = cbt_ref[g]                             # (H, Kpad) bf16, pre-transposed
            c = cb_ref[g]                               # (Kpad, H) f32, for the gather
            cn = cbsq_ref[g:g + 1, :]                   # (1, Kpad), 1e30 on padded codes
            # |r|^2 term is constant per row -> dropped (cannot change the argmin).
            # bf16 operands on the MXU; argmin tie-breaks may differ from f32 on near ties.
            d = cn - 2.0 * jnp.dot(r.astype(jnp.bfloat16), ct,
                                   preferred_element_type=jnp.float32)
            dmin = jnp.min(d, axis=-1, keepdims=True)
            idx = jnp.min(jnp.where(d <= dmin, lane, kpad), axis=-1, keepdims=True)
            onehot = (lane == idx).astype(jnp.float32)
            q = jnp.dot(onehot, c, preferred_element_type=jnp.float32)  # MXU gather
            diff = q - r
            loss_acc = loss_acc + jnp.mean(diff * diff, axis=-1, keepdims=True)
            r = r - q
            ids_ref[:, g:g + 1] = idx
        loss_ref[...] = loss_acc * (1.0 / groups)


def sage_vq(a_bf16, tile_mask, h_act, wl_bf16, bl, wr_bf16, cbt, cb, cbsq, *, tm, tk):
    """out = (A_mean @ h_act) @ Wl + bl + h_act @ Wr, followed by fused residual VQ.
    h_act is the pre-activated bf16 relu(LN(h)) buffer (LN hoisted out of the k-loop)."""
    n_pad, hdim = h_act.shape
    groups, kpad = cbsq.shape
    ni, nk = n_pad // tm, n_pad // tk
    flops = (2 * n_pad * n_pad * hdim            # aggregation (upper bound, pre-skip)
             + 4 * n_pad * hdim * hdim           # Wl + Wr
             + groups * 4 * n_pad * hdim * kpad) # VQ distance + gather matmuls
    bytes_acc = (a_bf16.size * 2
                 + ni * h_act.size * 2           # neighbor stream re-read per row tile
                 + h_act.size * 2                # self stream
                 + n_pad * hdim * 4              # output
                 + 2 * (wl_bf16.size + wr_bf16.size)
                 + cbt.size * 2 + cb.size * 4 + cbsq.size * 4
                 + n_pad * (groups + 1) * 4)
    return pl.pallas_call(
        _sage_vq_kernel,
        out_shape=(jax.ShapeDtypeStruct((n_pad, hdim), jnp.float32),
                   jax.ShapeDtypeStruct((n_pad, groups), jnp.int32),
                   jax.ShapeDtypeStruct((n_pad, 1), jnp.float32)),
        grid_spec=pltpu.PrefetchScalarGridSpec(
            num_scalar_prefetch=1,
            grid=(ni, nk),
            in_specs=[
                pl.BlockSpec((tm, tk), lambda i, k, m: (i, k)),            # A_mean block
                pl.BlockSpec((tk, hdim), lambda i, k, m: (k, 0)),          # neighbor acts
                pl.BlockSpec((tm, hdim), lambda i, k, m: (i, 0)),          # self acts
                pl.BlockSpec((hdim, hdim), lambda i, k, m: (0, 0)),        # Wl
                pl.BlockSpec((1, hdim), lambda i, k, m: (0, 0)),           # bl
                pl.BlockSpec((hdim, hdim), lambda i, k, m: (0, 0)),        # Wr
                pl.BlockSpec((groups, hdim, kpad), lambda i, k, m: (0, 0, 0)),  # cb^T bf16
                pl.BlockSpec((groups, kpad, hdim), lambda i, k, m: (0, 0, 0)),  # cb f32
                pl.BlockSpec((groups, kpad), lambda i, k, m: (0, 0)),      # |cb|^2 (padded)
            ],
            out_specs=(
                pl.BlockSpec((tm, hdim), lambda i, k, m: (i, 0)),
                pl.BlockSpec((tm, groups), lambda i, k, m: (i, 0)),
                pl.BlockSpec((tm, 1), lambda i, k, m: (i, 0)),
            ),
            scratch_shapes=[pltpu.VMEM((tm, hdim), jnp.float32)]),
        compiler_params=pltpu.CompilerParams(
            dimension_semantics=("parallel", "arbitrary"),
            vmem_limit_bytes=VMEM_LIMIT),
        cost_estimate=pl.CostEstimate(flops=int(flops), transcendentals=0,
                                      bytes_accessed=int(bytes_acc)),
    )(tile_mask, a_bf16, h_act, h_act, wl_bf16, bl.reshape(1, hdim), wr_bf16,
      cbt, cb, cbsq)


# ----------------------------------------------------------------------------
# Glue (plain JAX) + forward
# ----------------------------------------------------------------------------
def build_mean_adj(edge_index, n_pad, tm, tk):
    # TODO(synk): for production-scale graphs replace this dense O(N^2) adjacency with a
    # CSR segment-mean gather kernel (scalar-prefetched row offsets + manual
    # make_async_copy of neighbor rows); here the dense A is glue and empty (tm,tk) tiles
    # are skipped in-kernel via the prefetched nnz mask.
    src, dst = edge_index[0], edge_index[1]
    a = jnp.zeros((n_pad, n_pad), jnp.float32)
    a = a.at[dst, src].add(1.0)
    deg = jnp.sum(a, axis=1, keepdims=True)
    a_mean = a / jnp.maximum(deg, 1.0)
    ni, nk = n_pad // tm, n_pad // tk
    mask = (a.reshape(ni, tm, nk, tk).sum(axis=(1, 3)) > 0).astype(jnp.int32)
    return a_mean.astype(jnp.bfloat16), mask.reshape(-1)


def prep_codebook(codebook, kpad=KPAD):
    """(G, K, H) -> gather codebook (G, Kpad, H) f32, transposed (G, H, Kpad) bf16,
    and squared norms (G, Kpad) f32 with 1e30 on padded codes (never win the argmin)."""
    g, k, h = codebook.shape
    cb_f32 = codebook.astype(jnp.float32)
    cb_pad = jnp.zeros((g, kpad, h), jnp.float32).at[:, :k, :].set(cb_f32)
    cbt = jnp.transpose(cb_pad, (0, 2, 1)).astype(jnp.bfloat16)
    cbsq = jnp.full((g, kpad), 1e30, jnp.float32).at[:, :k].set(
        jnp.sum(cb_f32 * cb_f32, axis=-1))
    return cb_pad, cbt, cbsq


def gnn_forward(params, x, edge_index):
    n = x.shape[0]
    hidden = params["lin1_w"].shape[1]
    out_ch = params["lin2_w"].shape[1]

    n_pad, tm, tk = _tile_plan(n)
    x_p = jnp.pad(x, ((0, n_pad - n), (0, 0)))
    a_mean, tile_mask = build_mean_adj(edge_index, n_pad, tm, tk)

    # bf16 weight copies for the MXU (f32 accumulation in-kernel).
    w1 = params["lin1_w"].astype(jnp.bfloat16)
    m_pad = _round_up(out_ch, 128)                       # lane-dense lin2 output slab
    w2 = jnp.zeros((hidden, m_pad), jnp.float32).at[:, :out_ch].set(params["lin2_w"])
    b2 = jnp.zeros((m_pad,), jnp.float32).at[:out_ch].set(params["lin2_b"])
    w2 = w2.astype(jnp.bfloat16)

    h = linear(x_p, w1, params["lin1_b"], tm=tm)

    id_list = []
    total_commit_loss = jnp.float32(0.0)
    for layer in params["layers"]:
        # norm -> relu (dropout = identity in eval), hoisted ONCE per layer, bf16 buffer.
        h_act = ln_relu_cast(h, layer["norm_g"], layer["norm_b"], tm=tm)
        cb_pad, cbt, cbsq = prep_codebook(layer["codebook"])
        # TODO(synk): vqtorch ResidualVectorQuant affine/EMA/sync_nu/replace-freq codebook
        # dynamics are not reproduced; this is plain residual VQ (argmin + MSE commitment),
        # matching the tensors the GNN forward actually consumes in eval.
        h, ids, loss_rows = sage_vq(
            a_mean, tile_mask, h_act,
            layer["wl"].astype(jnp.bfloat16), layer["bl"],
            layer["wr"].astype(jnp.bfloat16),
            cbt, cb_pad, cbsq, tm=tm, tk=tk)
        id_list.append(ids[:n])
        total_commit_loss = total_commit_loss + jnp.mean(loss_rows[:n, 0])

    # final norm -> relu -> lin2 fused; slice the padded lane-dense slab.
    out = ln_relu_linear(h, params["norm_g"], params["norm_b"], w2, b2, tm=tm)
    out = out[:n, :out_ch]
    return out, total_commit_loss, jnp.concatenate(id_list, axis=1)


def init_params(key, in_ch, hidden, out_ch, num_layers, num_codes=16, groups=3):
    keys = iter(jax.random.split(key, 4 + 6 * num_layers))

    def lin_init(k, fan_in, fan_out):
        return jax.random.normal(k, (fan_in, fan_out), jnp.float32) / jnp.sqrt(fan_in)

    params = {
        "lin1_w": lin_init(next(keys), in_ch, hidden),
        "lin1_b": jnp.zeros((hidden,), jnp.float32),
        "lin2_w": lin_init(next(keys), hidden, out_ch),
        "lin2_b": jnp.zeros((out_ch,), jnp.float32),
        "norm_g": jnp.ones((hidden,), jnp.float32),
        "norm_b": jnp.zeros((hidden,), jnp.float32),
        "layers": [],
    }
    for _ in range(num_layers):
        params["layers"].append({
            "norm_g": jnp.ones((hidden,), jnp.float32),
            "norm_b": jnp.zeros((hidden,), jnp.float32),
            "wl": lin_init(next(keys), hidden, hidden),
            "bl": jnp.zeros((hidden,), jnp.float32),
            "wr": lin_init(next(keys), hidden, hidden),
            "codebook": jax.random.normal(next(keys), (groups, num_codes, hidden),
                                          jnp.float32) * 0.1,
        })
    return params


if __name__ == "__main__":
    IN_CH, HIDDEN, OUT_CH = 16, 32, 8
    NUM_LAYERS, NUM_CODES, GROUPS = 2, 16, 3
    N_NODES, N_EDGES = 64, 256

    root = jax.random.PRNGKey(0)
    k_x, k_e, k_p = jax.random.split(root, 3)

    x = jax.random.normal(k_x, (N_NODES, IN_CH), jnp.float32)
    edge_index = jax.random.randint(k_e, (2, N_EDGES), 0, N_NODES, dtype=jnp.int32)
    params = init_params(k_p, IN_CH, HIDDEN, OUT_CH, NUM_LAYERS, NUM_CODES, GROUPS)

    fwd = jax.jit(gnn_forward)
    logits, commit_loss, ids = fwd(params, x, edge_index)
    jax.block_until_ready((logits, commit_loss, ids))

    assert logits.shape == (N_NODES, OUT_CH)
    assert ids.shape == (N_NODES, GROUPS * NUM_LAYERS)
    assert bool(jnp.isfinite(logits).all()) and bool(jnp.isfinite(commit_loss))
    assert bool((ids >= 0).all()) and bool((ids < NUM_CODES).all())
    print("KERNEL_OK")
</pallas_src>

<mosaic_0001>
module attributes {stable_mosaic.version = 11 : i64} {
  func.func private @main(%arg0: i32) attributes {dimension_semantics = [#tpu.dimension_semantics<core_parallel>], iteration_bounds = array<i64: 2>, tpu.core_type = #tpu.core_type<sc_scalar_subcore>, window_params = []} {
    return
  }
}

module attributes {stable_mosaic.version = 11 : i64} {
  func.func private @main(%arg0: i32) attributes {dimension_semantics = [#tpu.dimension_semantics<core_parallel>], iteration_bounds = array<i64: 2>, tpu.core_type = #tpu.core_type<sc_scalar_subcore>, window_params = []} {
    return
  }
}

module attributes {stable_mosaic.version = 11 : i64} {
  func.func @_linear_kernel(%arg0: i32, %arg1: memref<64x16xf32, #tpu.memory_space<vmem>>, %arg2: memref<16x32xbf16, #tpu.memory_space<vmem>>, %arg3: memref<1x32xf32, #tpu.memory_space<vmem>>, %arg4: memref<64x32xf32, #tpu.memory_space<vmem>>) attributes {dimension_semantics = [#tpu.dimension_semantics<parallel>], iteration_bounds = array<i64: 1>, scalar_prefetch = 0 : i64, scratch_operands = 0 : i64, tpu.core_type = #tpu.core_type<tc>, window_params = [{transform_indices = @transform_0, window_bounds = array<i64: 64, 16>}, {pipeline_mode = #tpu.pipeline_mode<synchronous>, transform_indices = @transform_1, window_bounds = array<i64: 16, 32>}, {pipeline_mode = #tpu.pipeline_mode<synchronous>, transform_indices = @transform_2, window_bounds = array<i64: 1, 32>}, {transform_indices = @transform_3, window_bounds = array<i64: 64, 32>}]} {
    %c0 = arith.constant 0 : index
    %c0_0 = arith.constant 0 : index
    %0 = vector.load %arg1[%c0, %c0_0] : memref<64x16xf32, #tpu.memory_space<vmem>>, vector<64x16xf32>
    %1 = arith.truncf %0 : vector<64x16xf32> to vector<64x16xbf16>
    %c0_1 = arith.constant 0 : index
    %c0_2 = arith.constant 0 : index
    %2 = vector.load %arg2[%c0_1, %c0_2] : memref<16x32xbf16, #tpu.memory_space<vmem>>, vector<16x32xbf16>
    %cst = arith.constant dense<0.000000e+00> : vector<64x32xf32>
    %3 = tpu.matmul %1, %2, %cst {dimension_numbers = #tpu.dot_dimension_numbers<[1], [0], [0], [1], [0, 0, 1, 1], [], []>} : vector<64x16xbf16>, vector<16x32xbf16>, vector<64x32xf32> -> vector<64x32xf32>
    %c0_3 = arith.constant 0 : index
    %c0_4 = arith.constant 0 : index
    %4 = vector.load %arg3[%c0_3, %c0_4] : memref<1x32xf32, #tpu.memory_space<vmem>>, vector<1x32xf32>
    %5 = vector.broadcast %4 : vector<1x32xf32> to vector<64x32xf32>
    %6 = arith.addf %3, %5 : vector<64x32xf32>
    %c0_5 = arith.constant 0 : index
    %c0_6 = arith.constant 0 : index
    %7 = vector.load %arg4[%c0_5, %c0_6] : memref<64x32xf32, #tpu.memory_space<vmem>>, vector<64x32xf32>
    tpu.vector_store %arg4[%c0_5, %c0_6], %6 {strides = array<i32>} : memref<64x32xf32, #tpu.memory_space<vmem>>, vector<64x32xf32>,
    return
  }
  func.func @transform_0(%arg0: i32) -> (i32, i32) {
    %c0_i32 = arith.constant 0 : i32
    %c0_i32_0 = arith.constant 0 : i32
    return %arg0, %c0_i32 : i32, i32
  }
  func.func @transform_1(%arg0: i32) -> (i32, i32) {
    %c0_i32 = arith.constant 0 : i32
    %c0_i32_0 = arith.constant 0 : i32
    %c0_i32_1 = arith.constant 0 : i32
    return %c0_i32, %c0_i32_0 : i32, i32
  }
  func.func @transform_2(%arg0: i32) -> (i32, i32) {
    %c0_i32 = arith.constant 0 : i32
    %c0_i32_0 = arith.constant 0 : i32
    %c0_i32_1 = arith.constant 0 : i32
    return %c0_i32, %c0_i32_0 : i32, i32
  }
  func.func @transform_3(%arg0: i32) -> (i32, i32) {
    %c0_i32 = arith.constant 0 : i32
    %c0_i32_0 = arith.constant 0 : i32
    return %arg0, %c0_i32 : i32, i32
  }
}

module attributes {stable_mosaic.version = 11 : i64} {
  func.func @_ln_relu_cast_kernel(%arg0: i32, %arg1: memref<64x32xf32, #tpu.memory_space<vmem>>, %arg2: memref<1x32xf32, #tpu.memory_space<vmem>>, %arg3: memref<1x32xf32, #tpu.memory_space<vmem>>, %arg4: memref<64x32xbf16, #tpu.memory_space<vmem>>) attributes {dimension_semantics = [#tpu.dimension_semantics<parallel>], iteration_bounds = array<i64: 1>, scalar_prefetch = 0 : i64, scratch_operands = 0 : i64, tpu.core_type = #tpu.core_type<tc>, window_params = [{transform_indices = @transform_0, window_bounds = array<i64: 64, 32>}, {pipeline_mode = #tpu.pipeline_mode<synchronous>, transform_indices = @transform_1, window_bounds = array<i64: 1, 32>}, {pipeline_mode = #tpu.pipeline_mode<synchronous>, transform_indices = @transform_2, window_bounds = array<i64: 1, 32>}, {transform_indices = @transform_3, window_bounds = array<i64: 64, 32>}]} {
    %c0 = arith.constant 0 : index
    %c0_0 = arith.constant 0 : index
    %0 = vector.load %arg1[%c0, %c0_0] : memref<64x32xf32, #tpu.memory_space<vmem>>, vector<64x32xf32>
    %c0_1 = arith.constant 0 : index
    %c0_2 = arith.constant 0 : index
    %1 = vector.load %arg2[%c0_1, %c0_2] : memref<1x32xf32, #tpu.memory_space<vmem>>, vector<1x32xf32>
    %c0_3 = arith.constant 0 : index
    %c0_4 = arith.constant 0 : index
    %2 = vector.load %arg3[%c0_3, %c0_4] : memref<1x32xf32, #tpu.memory_space<vmem>>, vector<1x32xf32>
    %cst = arith.constant dense<0.000000e+00> : vector<64xf32>
    %3 = vector.multi_reduction <add>, %0, %cst [1] : vector<64x32xf32> to vector<64xf32>
    %4 = vector.shape_cast %3 : vector<64xf32> to vector<64x1xf32>
    %cst_5 = arith.constant 3.200000e+01 : f32
    %5 = vector.broadcast %cst_5 : f32 to vector<64x1xf32>
    %6 = arith.divf %4, %5 : vector<64x1xf32>
    %7 = vector.broadcast %6 : vector<64x1xf32> to vector<64x32xf32>
    %8 = arith.subf %0, %7 : vector<64x32xf32>
    %9 = arith.mulf %8, %8 : vector<64x32xf32>
    %cst_6 = arith.constant dense<0.000000e+00> : vector<64xf32>
    %10 = vector.multi_reduction <add>, %9, %cst_6 [1] : vector<64x32xf32> to vector<64xf32>
    %11 = vector.shape_cast %10 : vector<64xf32> to vector<64x1xf32>
    %cst_7 = arith.constant 3.200000e+01 : f32
    %12 = vector.broadcast %cst_7 : f32 to vector<64x1xf32>
    %13 = arith.divf %11, %12 : vector<64x1xf32>
    %cst_8 = arith.constant 9.99999974E-6 : f32
    %14 = vector.broadcast %cst_8 : f32 to vector<64x1xf32>
    %15 = arith.addf %13, %14 : vector<64x1xf32>
    %16 = math.rsqrt %15 : vector<64x1xf32>
    %17 = vector.broadcast %16 : vector<64x1xf32> to vector<64x32xf32>
    %18 = arith.mulf %8, %17 : vector<64x32xf32>
    %19 = vector.broadcast %1 : vector<1x32xf32> to vector<64x32xf32>
    %20 = arith.mulf %18, %19 : vector<64x32xf32>
    %21 = vector.broadcast %2 : vector<1x32xf32> to vector<64x32xf32>
    %22 = arith.addf %20, %21 : vector<64x32xf32>
    %cst_9 = arith.constant 0.000000e+00 : f32
    %23 = vector.broadcast %cst_9 : f32 to vector<64x32xf32>
    %24 = arith.maximumf %22, %23 : vector<64x32xf32>
    %25 = arith.truncf %24 : vector<64x32xf32> to vector<64x32xbf16>
    %c0_10 = arith.constant 0 : index
    %c0_11 = arith.constant 0 : index
    %26 = vector.load %arg4[%c0_10, %c0_11] : memref<64x32xbf16, #tpu.memory_space<vmem>>, vector<64x32xbf16>
    tpu.vector_store %arg4[%c0_10, %c0_11], %25 {strides = array<i32>} : memref<64x32xbf16, #tpu.memory_space<vmem>>, vector<64x32xbf16>,
    return
  }
  func.func @transform_0(%arg0: i32) -> (i32, i32) {
    %c0_i32 = arith.constant 0 : i32
    %c0_i32_0 = arith.constant 0 : i32
    return %arg0, %c0_i32 : i32, i32
  }
  func.func @transform_1(%arg0: i32) -> (i32, i32) {
    %c0_i32 = arith.constant 0 : i32
    %c0_i32_0 = arith.constant 0 : i32
    %c0_i32_1 = arith.constant 0 : i32
    return %c0_i32, %c0_i32_0 : i32, i32
  }
  func.func @transform_2(%arg0: i32) -> (i32, i32) {
    %c0_i32 = arith.constant 0 : i32
    %c0_i32_0 = arith.constant 0 : i32
    %c0_i32_1 = arith.constant 0 : i32
    return %c0_i32, %c0_i32_0 : i32, i32
  }
  func.func @transform_3(%arg0: i32) -> (i32, i32) {
    %c0_i32 = arith.constant 0 : i32
    %c0_i32_0 = arith.constant 0 : i32
    return %arg0, %c0_i32 : i32, i32
  }
}

module attributes {stable_mosaic.version = 11 : i64} {
  func.func @_ln_relu_linear_kernel(%arg0: i32, %arg1: memref<64x32xf32, #tpu.memory_space<vmem>>, %arg2: memref<1x32xf32, #tpu.memory_space<vmem>>, %arg3: memref<1x32xf32, #tpu.memory_space<vmem>>, %arg4: memref<32x128xbf16, #tpu.memory_space<vmem>>, %arg5: memref<1x128xf32, #tpu.memory_space<vmem>>, %arg6: memref<64x128xf32, #tpu.memory_space<vmem>>) attributes {dimension_semantics = [#tpu.dimension_semantics<parallel>], iteration_bounds = array<i64: 1>, scalar_prefetch = 0 : i64, scratch_operands = 0 : i64, tpu.core_type = #tpu.core_type<tc>, window_params = [{transform_indices = @transform_0, window_bounds = array<i64: 64, 32>}, {pipeline_mode = #tpu.pipeline_mode<synchronous>, transform_indices = @transform_1, window_bounds = array<i64: 1, 32>}, {pipeline_mode = #tpu.pipeline_mode<synchronous>, transform_indices = @transform_2, window_bounds = array<i64: 1, 32>}, {pipeline_mode = #tpu.pipeline_mode<synchronous>, transform_indices = @transform_3, window_bounds = array<i64: 32, 128>}, {pipeline_mode = #tpu.pipeline_mode<synchronous>, transform_indices = @transform_4, window_bounds = array<i64: 1, 128>}, {transform_indices = @transform_5, window_bounds = array<i64: 64, 128>}]} {
    %c0 = arith.constant 0 : index
    %c0_0 = arith.constant 0 : index
    %0 = vector.load %arg1[%c0, %c0_0] : memref<64x32xf32, #tpu.memory_space<vmem>>, vector<64x32xf32>
    %c0_1 = arith.constant 0 : index
    %c0_2 = arith.constant 0 : index
    %1 = vector.load %arg2[%c0_1, %c0_2] : memref<1x32xf32, #tpu.memory_space<vmem>>, vector<1x32xf32>
    %c0_3 = arith.constant 0 : index
    %c0_4 = arith.constant 0 : index
    %2 = vector.load %arg3[%c0_3, %c0_4] : memref<1x32xf32, #tpu.memory_space<vmem>>, vector<1x32xf32>
    %cst = arith.constant dense<0.000000e+00> : vector<64xf32>
    %3 = vector.multi_reduction <add>, %0, %cst [1] : vector<64x32xf32> to vector<64xf32>
    %4 = vector.shape_cast %3 : vector<64xf32> to vector<64x1xf32>
    %cst_5 = arith.constant 3.200000e+01 : f32
    %5 = vector.broadcast %cst_5 : f32 to vector<64x1xf32>
    %6 = arith.divf %4, %5 : vector<64x1xf32>
    %7 = vector.broadcast %6 : vector<64x1xf32> to vector<64x32xf32>
    %8 = arith.subf %0, %7 : vector<64x32xf32>
    %9 = arith.mulf %8, %8 : vector<64x32xf32>
    %cst_6 = arith.constant dense<0.000000e+00> : vector<64xf32>
    %10 = vector.multi_reduction <add>, %9, %cst_6 [1] : vector<64x32xf32> to vector<64xf32>
    %11 = vector.shape_cast %10 : vector<64xf32> to vector<64x1xf32>
    %cst_7 = arith.constant 3.200000e+01 : f32
    %12 = vector.broadcast %cst_7 : f32 to vector<64x1xf32>
    %13 = arith.divf %11, %12 : vector<64x1xf32>
    %cst_8 = arith.constant 9.99999974E-6 : f32
    %14 = vector.broadcast %cst_8 : f32 to vector<64x1xf32>
    %15 = arith.addf %13, %14 : vector<64x1xf32>
    %16 = math.rsqrt %15 : vector<64x1xf32>
    %17 = vector.broadcast %16 : vector<64x1xf32> to vector<64x32xf32>
    %18 = arith.mulf %8, %17 : vector<64x32xf32>
    %19 = vector.broadcast %1 : vector<1x32xf32> to vector<64x32xf32>
    %20 = arith.mulf %18, %19 : vector<64x32xf32>
    %21 = vector.broadcast %2 : vector<1x32xf32> to vector<64x32xf32>
    %22 = arith.addf %20, %21 : vector<64x32xf32>
    %cst_9 = arith.constant 0.000000e+00 : f32
    %23 = vector.broadcast %cst_9 : f32 to vector<64x32xf32>
    %24 = arith.maximumf %22, %23 : vector<64x32xf32>
    %25 = arith.truncf %24 : vector<64x32xf32> to vector<64x32xbf16>
    %c0_10 = arith.constant 0 : index
    %c0_11 = arith.constant 0 : index
    %26 = vector.load %arg4[%c0_10, %c0_11] : memref<32x128xbf16, #tpu.memory_space<vmem>>, vector<32x128xbf16>
    %cst_12 = arith.constant dense<0.000000e+00> : vector<64x128xf32>
    %27 = tpu.matmul %25, %26, %cst_12 {dimension_numbers = #tpu.dot_dimension_numbers<[1], [0], [0], [1], [0, 0, 1, 1], [], []>} : vector<64x32xbf16>, vector<32x128xbf16>, vector<64x128xf32> -> vector<64x128xf32>
    %c0_13 = arith.constant 0 : index
    %c0_14 = arith.constant 0 : index
    %28 = vector.load %arg5[%c0_13, %c0_14] : memref<1x128xf32, #tpu.memory_space<vmem>>, vector<1x128xf32>
    %29 = vector.broadcast %28 : vector<1x128xf32> to vector<64x128xf32>
    %30 = arith.addf %27, %29 : vector<64x128xf32>
    %c0_15 = arith.constant 0 : index
    %c0_16 = arith.constant 0 : index
    %31 = vector.load %arg6[%c0_15, %c0_16] : memref<64x128xf32, #tpu.memory_space<vmem>>, vector<64x128xf32>
    tpu.vector_store %arg6[%c0_15, %c0_16], %30 {strides = array<i32>} : memref<64x128xf32, #tpu.memory_space<vmem>>, vector<64x128xf32>,
    return
  }
  func.func @transform_0(%arg0: i32) -> (i32, i32) {
    %c0_i32 = arith.constant 0 : i32
    %c0_i32_0 = arith.constant 0 : i32
    return %arg0, %c0_i32 : i32, i32
  }
  func.func @transform_1(%arg0: i32) -> (i32, i32) {
    %c0_i32 = arith.constant 0 : i32
    %c0_i32_0 = arith.constant 0 : i32
    %c0_i32_1 = arith.constant 0 : i32
    return %c0_i32, %c0_i32_0 : i32, i32
  }
  func.func @transform_2(%arg0: i32) -> (i32, i32) {
    %c0_i32 = arith.constant 0 : i32
    %c0_i32_0 = arith.constant 0 : i32
    %c0_i32_1 = arith.constant 0 : i32
    return %c0_i32, %c0_i32_0 : i32, i32
  }
  func.func @transform_3(%arg0: i32) -> (i32, i32) {
    %c0_i32 = arith.constant 0 : i32
    %c0_i32_0 = arith.constant 0 : i32
    %c0_i32_1 = arith.constant 0 : i32
    return %c0_i32, %c0_i32_0 : i32, i32
  }
  func.func @transform_4(%arg0: i32) -> (i32, i32) {
    %c0_i32 = arith.constant 0 : i32
    %c0_i32_0 = arith.constant 0 : i32
    %c0_i32_1 = arith.constant 0 : i32
    return %c0_i32, %c0_i32_0 : i32, i32
  }
  func.func @transform_5(%arg0: i32) -> (i32, i32) {
    %c0_i32 = arith.constant 0 : i32
    %c0_i32_0 = arith.constant 0 : i32
    return %arg0, %c0_i32 : i32, i32
  }
}

module attributes {stable_mosaic.version = 11 : i64} {
  func.func @_sage_vq_kernel(%arg0: i32, %arg1: i32, %arg2: memref<1xi32, #tpu.memory_space<smem>>, %arg3: memref<64x64xbf16, #tpu.memory_space<vmem>>, %arg4: memref<64x32xbf16, #tpu.memory_space<vmem>>, %arg5: memref<64x32xbf16, #tpu.memory_space<vmem>>, %arg6: memref<32x32xbf16, #tpu.memory_space<vmem>>, %arg7: memref<1x32xf32, #tpu.memory_space<vmem>>, %arg8: memref<32x32xbf16, #tpu.memory_space<vmem>>, %arg9: memref<3x32x128xbf16, #tpu.memory_space<vmem>>, %arg10: memref<3x128x32xf32, #tpu.memory_space<vmem>>, %arg11: memref<3x128xf32, #tpu.memory_space<vmem>>, %arg12: memref<64x32xf32, #tpu.memory_space<vmem>>, %arg13: memref<64x3xi32, #tpu.memory_space<vmem>>, %arg14: memref<64x1xf32, #tpu.memory_space<vmem>>, %arg15: memref<64x32xf32, #tpu.memory_space<vmem>>) attributes {dimension_semantics = [#tpu.dimension_semantics<parallel>, #tpu.dimension_semantics<arbitrary>], iteration_bounds = array<i64: 1, 1>, scalar_prefetch = 1 : i64, scratch_operands = 1 : i64, tpu.core_type = #tpu.core_type<tc>, window_params = [{transform_indices = @transform_0, window_bounds = array<i64: 64, 64>}, {transform_indices = @transform_1, window_bounds = array<i64: 64, 32>}, {transform_indices = @transform_2, window_bounds = array<i64: 64, 32>}, {pipeline_mode = #tpu.pipeline_mode<synchronous>, transform_indices = @transform_3, window_bounds = array<i64: 32, 32>}, {pipeline_mode = #tpu.pipeline_mode<synchronous>, transform_indices = @transform_4, window_bounds = array<i64: 1, 32>}, {pipeline_mode = #tpu.pipeline_mode<synchronous>, transform_indices = @transform_5, window_bounds = array<i64: 32, 32>}, {pipeline_mode = #tpu.pipeline_mode<synchronous>, transform_indices = @transform_6, window_bounds = array<i64: 3, 32, 128>}, {pipeline_mode = #tpu.pipeline_mode<synchronous>, transform_indices = @transform_7, window_bounds = array<i64: 3, 128, 32>}, {pipeline_mode = #tpu.pipeline_mode<synchronous>, transform_indices = @transform_8, window_bounds = array<i64: 3, 128>}, {transform_indices = @transform_9, window_bounds = array<i64: 64, 32>}, {transform_indices = @transform_10, window_bounds = array<i64: 64, 3>}, {transform_indices = @transform_11, window_bounds = array<i64: 64, 1>}]} {
    %c0_i32 = arith.constant 0 : i32
    %0 = arith.cmpi eq, %arg1, %c0_i32 : i32
    %1 = arith.extui %0 : i1 to i32
    %c0_i32_0 = arith.constant 0 : i32
    %2 = arith.cmpi ne, %1, %c0_i32_0 : i32
    scf.if %2 {
      %cst = arith.constant 0.000000e+00 : f32
      %13 = vector.broadcast %cst : f32 to vector<64x32xf32>
      %c0 = arith.constant 0 : index
      %c0_5 = arith.constant 0 : index
      %14 = vector.load %arg15[%c0, %c0_5] : memref<64x32xf32, #tpu.memory_space<vmem>>, vector<64x32xf32>
      tpu.vector_store %arg15[%c0, %c0_5], %13 {strides = array<i32>} : memref<64x32xf32, #tpu.memory_space<vmem>>, vector<64x32xf32>,
    } else {
    }
    %c1_i32 = arith.constant 1 : i32
    %3 = arith.muli %arg0, %c1_i32 : i32
    %4 = arith.addi %3, %arg1 : i32
    %5 = arith.index_cast %4 : i32 to index
    %6 = memref.load %arg2[%5] : memref<1xi32, #tpu.memory_space<smem>>
    %c0_i32_1 = arith.constant 0 : i32
    %7 = arith.cmpi sgt, %6, %c0_i32_1 : i32
    %8 = arith.extui %7 : i1 to i32
    %c0_i32_2 = arith.constant 0 : i32
    %9 = arith.cmpi ne, %8, %c0_i32_2 : i32
    scf.if %9 {
      %c0 = arith.constant 0 : index
      %c0_5 = arith.constant 0 : index
      %13 = vector.load %arg15[%c0, %c0_5] : memref<64x32xf32, #tpu.memory_space<vmem>>, vector<64x32xf32>
      %c0_6 = arith.constant 0 : index
      %c0_7 = arith.constant 0 : index
      %14 = vector.load %arg3[%c0_6, %c0_7] : memref<64x64xbf16, #tpu.memory_space<vmem>>, vector<64x64xbf16>
      %c0_8 = arith.constant 0 : index
      %c0_9 = arith.constant 0 : index
      %15 = vector.load %arg4[%c0_8, %c0_9] : memref<64x32xbf16, #tpu.memory_space<vmem>>, vector<64x32xbf16>
      %cst = arith.constant dense<0.000000e+00> : vector<64x32xf32>
      %16 = tpu.matmul %14, %15, %cst {dimension_numbers = #tpu.dot_dimension_numbers<[1], [0], [0], [1], [0, 0, 1, 1], [], []>} : vector<64x64xbf16>, vector<64x32xbf16>, vector<64x32xf32> -> vector<64x32xf32>
      %17 = arith.addf %13, %16 : vector<64x32xf32>
      %c0_10 = arith.constant 0 : index
      %c0_11 = arith.constant 0 : index
      %18 = vector.load %arg15[%c0_10, %c0_11] : memref<64x32xf32, #tpu.memory_space<vmem>>, vector<64x32xf32>
      tpu.vector_store %arg15[%c0_10, %c0_11], %17 {strides = array<i32>} : memref<64x32xf32, #tpu.memory_space<vmem>>, vector<64x32xf32>,
    } else {
    }
    %c0_i32_3 = arith.constant 0 : i32
    %10 = arith.cmpi eq, %arg1, %c0_i32_3 : i32
    %11 = arith.extui %10 : i1 to i32
    %c0_i32_4 = arith.constant 0 : i32
    %12 = arith.cmpi ne, %11, %c0_i32_4 : i32
    scf.if %12 {
      %c0 = arith.constant 0 : index
      %c0_5 = arith.constant 0 : index
      %13 = vector.load %arg15[%c0, %c0_5] : memref<64x32xf32, #tpu.memory_space<vmem>>, vector<64x32xf32>
      %14 = arith.truncf %13 : vector<64x32xf32> to vector<64x32xbf16>
      %c0_6 = arith.constant 0 : index
      %c0_7 = arith.constant 0 : index
      %15 = vector.load %arg6[%c0_6, %c0_7] : memref<32x32xbf16, #tpu.memory_space<vmem>>, vector<32x32xbf16>
      %cst = arith.constant dense<0.000000e+00> : vector<64x32xf32>
      %16 = tpu.matmul %14, %15, %cst {dimension_numbers = #tpu.dot_dimension_numbers<[1], [0], [0], [1], [0, 0, 1, 1], [], []>} : vector<64x32xbf16>, vector<32x32xbf16>, vector<64x32xf32> -> vector<64x32xf32>
      %c0_8 = arith.constant 0 : index
      %c0_9 = arith.constant 0 : index
      %17 = vector.load %arg7[%c0_8, %c0_9] : memref<1x32xf32, #tpu.memory_space<vmem>>, vector<1x32xf32>
      %18 = vector.broadcast %17 : vector<1x32xf32> to vector<64x32xf32>
      %19 = arith.addf %16, %18 : vector<64x32xf32>
      %c0_10 = arith.constant 0 : index
      %c0_11 = arith.constant 0 : index
      %20 = vector.load %arg5[%c0_10, %c0_11] : memref<64x32xbf16, #tpu.memory_space<vmem>>, vector<64x32xbf16>
      %c0_12 = arith.constant 0 : index
      %c0_13 = arith.constant 0 : index
      %21 = vector.load %arg8[%c0_12, %c0_13] : memref<32x32xbf16, #tpu.memory_space<vmem>>, vector<32x32xbf16>
      %cst_14 = arith.constant dense<0.000000e+00> : vector<64x32xf32>
      %22 = tpu.matmul %20, %21, %cst_14 {dimension_numbers = #tpu.dot_dimension_numbers<[1], [0], [0], [1], [0, 0, 1, 1], [], []>} : vector<64x32xbf16>, vector<32x32xbf16>, vector<64x32xf32> -> vector<64x32xf32>
      %23 = arith.addf %19, %22 : vector<64x32xf32>
      %c0_15 = arith.constant 0 : index
      %c0_16 = arith.constant 0 : index
      %24 = vector.load %arg12[%c0_15, %c0_16] : memref<64x32xf32, #tpu.memory_space<vmem>>, vector<64x32xf32>
      tpu.vector_store %arg12[%c0_15, %c0_16], %23 {strides = array<i32>} : memref<64x32xf32, #tpu.memory_space<vmem>>, vector<64x32xf32>,
      %25 = tpu.iota {dimensions = array<i32: 1>} : vector<64x128xi32>
      %cst_17 = arith.constant 0.000000e+00 : f32
      %26 = vector.broadcast %cst_17 : f32 to vector<64x1xf32>
      %c0_18 = arith.constant 0 : index
      %c0_19 = arith.constant 0 : index
      %c0_20 = arith.constant 0 : index
      %27 = vector.load %arg9[%c0_18, %c0_19, %c0_20] : memref<3x32x128xbf16, #tpu.memory_space<vmem>>, vector<1x32x128xbf16>
      %28 = vector.shape_cast %27 : vector<1x32x128xbf16> to vector<32x128xbf16>
      %c0_21 = arith.constant 0 : index
      %c0_22 = arith.constant 0 : index
      %c0_23 = arith.constant 0 : index
      %29 = vector.load %arg10[%c0_21, %c0_22, %c0_23] : memref<3x128x32xf32, #tpu.memory_space<vmem>>, vector<1x128x32xf32>
      %30 = vector.shape_cast %29 : vector<1x128x32xf32> to vector<128x32xf32>
      %c0_24 = arith.constant 0 : index
      %c0_25 = arith.constant 0 : index
      %31 = vector.load %arg11[%c0_24, %c0_25] : memref<3x128xf32, #tpu.memory_space<vmem>>, vector<1x128xf32>
      %32 = arith.truncf %23 : vector<64x32xf32> to vector<64x32xbf16>
      %cst_26 = arith.constant dense<0.000000e+00> : vector<64x128xf32>
      %33 = tpu.matmul %32, %28, %cst_26 {dimension_numbers = #tpu.dot_dimension_numbers<[1], [0], [0], [1], [0, 0, 1, 1], [], []>} : vector<64x32xbf16>, vector<32x128xbf16>, vector<64x128xf32> -> vector<64x128xf32>
      %cst_27 = arith.constant 2.000000e+00 : f32
      %34 = vector.broadcast %cst_27 : f32 to vector<64x128xf32>
      %35 = arith.mulf %34, %33 : vector<64x128xf32>
      %36 = vector.broadcast %31 : vector<1x128xf32> to vector<64x128xf32>
      %37 = arith.subf %36, %35 : vector<64x128xf32>
      %cst_28 = arith.constant dense<0x7F800000> : vector<64xf32>
      %38 = vector.multi_reduction <minimumf>, %37, %cst_28 [1] : vector<64x128xf32> to vector<64xf32>
      %39 = vector.shape_cast %38 : vector<64xf32> to vector<64x1xf32>
      %40 = vector.broadcast %39 : vector<64x1xf32> to vector<64x128xf32>
      %41 = arith.cmpf ole, %37, %40 : vector<64x128xf32>
      %c128_i32 = arith.constant 128 : i32
      %42 = vector.broadcast %c128_i32 : i32 to vector<64x128xi32>
      %43 = arith.select %41, %25, %42 : vector<64x128xi1>, vector<64x128xi32>
      %cst_29 = arith.constant dense<2147483647> : vector<64xi32>
      %44 = vector.multi_reduction <minsi>, %43, %cst_29 [1] : vector<64x128xi32> to vector<64xi32>
      %45 = vector.shape_cast %44 : vector<64xi32> to vector<64x1xi32>
      %46 = vector.broadcast %45 : vector<64x1xi32> to vector<64x128xi32>
      %47 = arith.cmpi eq, %25, %46 : vector<64x128xi32>
      %48 = arith.extui %47 : vector<64x128xi1> to vector<64x128xi32>
      %49 = arith.sitofp %48 : vector<64x128xi32> to vector<64x128xf32>
      %cst_30 = arith.constant dense<0.000000e+00> : vector<64x32xf32>
      %50 = tpu.matmul %49, %30, %cst_30 {dimension_numbers = #tpu.dot_dimension_numbers<[1], [0], [0], [1], [0, 0, 1, 1], [], []>} : vector<64x128xf32>, vector<128x32xf32>, vector<64x32xf32> -> vector<64x32xf32>
      %51 = arith.subf %50, %23 : vector<64x32xf32>
      %52 = arith.mulf %51, %51 : vector<64x32xf32>
      %cst_31 = arith.constant dense<0.000000e+00> : vector<64xf32>
      %53 = vector.multi_reduction <add>, %52, %cst_31 [1] : vector<64x32xf32> to vector<64xf32>
      %54 = vector.shape_cast %53 : vector<64xf32> to vector<64x1xf32>
      %cst_32 = arith.constant 3.200000e+01 : f32
      %55 = vector.broadcast %cst_32 : f32 to vector<64x1xf32>
      %56 = arith.divf %54, %55 : vector<64x1xf32>
      %57 = arith.addf %26, %56 : vector<64x1xf32>
      %58 = arith.subf %23, %50 : vector<64x32xf32>
      %c0_33 = arith.constant 0 : index
      %c0_34 = arith.constant 0 : index
      %59 = vector.load %arg13[%c0_33, %c0_34] : memref<64x3xi32, #tpu.memory_space<vmem>>, vector<64x1xi32>
      tpu.vector_store %arg13[%c0_33, %c0_34], %45 {strides = array<i32>} : memref<64x3xi32, #tpu.memory_space<vmem>>, vector<64x1xi32>,
      %c1 = arith.constant 1 : index
      %c0_35 = arith.constant 0 : index
      %c0_36 = arith.constant 0 : index
      %60 = vector.load %arg9[%c1, %c0_35, %c0_36] : memref<3x32x128xbf16, #tpu.memory_space<vmem>>, vector<1x32x128xbf16>
      %61 = vector.shape_cast %60 : vector<1x32x128xbf16> to vector<32x128xbf16>
      %c1_37 = arith.constant 1 : index
      %c0_38 = arith.constant 0 : index
      %c0_39 = arith.constant 0 : index
      %62 = vector.load %arg10[%c1_37, %c0_38, %c0_39] : memref<3x128x32xf32, #tpu.memory_space<vmem>>, vector<1x128x32xf32>
      %63 = vector.shape_cast %62 : vector<1x128x32xf32> to vector<128x32xf32>
      %c1_40 = arith.constant 1 : index
      %c0_41 = arith.constant 0 : index
      %64 = vector.load %arg11[%c1_40, %c0_41] : memref<3x128xf32, #tpu.memory_space<vmem>>, vector<1x128xf32>
      %65 = arith.truncf %58 : vector<64x32xf32> to vector<64x32xbf16>
      %cst_42 = arith.constant dense<0.000000e+00> : vector<64x128xf32>
      %66 = tpu.matmul %65, %61, %cst_42 {dimension_numbers = #tpu.dot_dimension_numbers<[1], [0], [0], [1], [0, 0, 1, 1], [], []>} : vector<64x32xbf16>, vector<32x128xbf16>, vector<64x128xf32> -> vector<64x128xf32>
      %cst_43 = arith.constant 2.000000e+00 : f32
      %67 = vector.broadcast %cst_43 : f32 to vector<64x128xf32>
      %68 = arith.mulf %67, %66 : vector<64x128xf32>
      %69 = vector.broadcast %64 : vector<1x128xf32> to vector<64x128xf32>
      %70 = arith.subf %69, %68 : vector<64x128xf32>
      %cst_44 = arith.constant dense<0x7F800000> : vector<64xf32>
      %71 = vector.multi_reduction <minimumf>, %70, %cst_44 [1] : vector<64x128xf32> to vector<64xf32>
      %72 = vector.shape_cast %71 : vector<64xf32> to vector<64x1xf32>
      %73 = vector.broadcast %72 : vector<64x1xf32> to vector<64x128xf32>
      %74 = arith.cmpf ole, %70, %73 : vector<64x128xf32>
      %c128_i32_45 = arith.constant 128 : i32
      %75 = vector.broadcast %c128_i32_45 : i32 to vector<64x128xi32>
      %76 = arith.select %74, %25, %75 : vector<64x128xi1>, vector<64x128xi32>
      %cst_46 = arith.constant dense<2147483647> : vector<64xi32>
      %77 = vector.multi_reduction <minsi>, %76, %cst_46 [1] : vector<64x128xi32> to vector<64xi32>
      %78 = vector.shape_cast %77 : vector<64xi32> to vector<64x1xi32>
      %79 = vector.broadcast %78 : vector<64x1xi32> to vector<64x128xi32>
      %80 = arith.cmpi eq, %25, %79 : vector<64x128xi32>
      %81 = arith.extui %80 : vector<64x128xi1> to vector<64x128xi32>
      %82 = arith.sitofp %81 : vector<64x128xi32> to vector<64x128xf32>
      %cst_47 = arith.constant dense<0.000000e+00> : vector<64x32xf32>
      %83 = tpu.matmul %82, %63, %cst_47 {dimension_numbers = #tpu.dot_dimension_numbers<[1], [0], [0], [1], [0, 0, 1, 1], [], []>} : vector<64x128xf32>, vector<128x32xf32>, vector<64x32xf32> -> vector<64x32xf32>
      %84 = arith.subf %83, %58 : vector<64x32xf32>
      %85 = arith.mulf %84, %84 : vector<64x32xf32>
      %cst_48 = arith.constant dense<0.000000e+00> : vector<64xf32>
      %86 = vector.multi_reduction <add>, %85, %cst_48 [1] : vector<64x32xf32> to vector<64xf32>
      %87 = vector.shape_cast %86 : vector<64xf32> to vector<64x1xf32>
      %cst_49 = arith.constant 3.200000e+01 : f32
      %88 = vector.broadcast %cst_49 : f32 to vector<64x1xf32>
      %89 = arith.divf %87, %88 : vector<64x1xf32>
      %90 = arith.addf %57, %89 : vector<64x1xf32>
      %91 = arith.subf %58, %83 : vector<64x32xf32>
      %c0_50 = arith.constant 0 : index
      %c1_51 = arith.constant 1 : index
      %92 = vector.load %arg13[%c0_50, %c1_51] : memref<64x3xi32, #tpu.memory_space<vmem>>, vector<64x1xi32>
      tpu.vector_store %arg13[%c0_50, %c1_51], %78 {strides = array<i32>} : memref<64x3xi32, #tpu.memory_space<vmem>>, vector<64x1xi32>,
      %c2 = arith.constant 2 : index
      %c0_52 = arith.constant 0 : index
      %c0_53 = arith.constant 0 : index
      %93 = vector.load %arg9[%c2, %c0_52, %c0_53] : memref<3x32x128xbf16, #tpu.memory_space<vmem>>, vector<1x32x128xbf16>
      %94 = vector.shape_cast %93 : vector<1x32x128xbf16> to vector<32x128xbf16>
      %c2_54 = arith.constant 2 : index
      %c0_55 = arith.constant 0 : index
      %c0_56 = arith.constant 0 : index
      %95 = vector.load %arg10[%c2_54, %c0_55, %c0_56] : memref<3x128x32xf32, #tpu.memory_space<vmem>>, vector<1x128x32xf32>
      %96 = vector.shape_cast %95 : vector<1x128x32xf32> to vector<128x32xf32>
      %c2_57 = arith.constant 2 : index
      %c0_58 = arith.constant 0 : index
      %97 = vector.load %arg11[%c2_57, %c0_58] : memref<3x128xf32, #tpu.memory_space<vmem>>, vector<1x128xf32>
      %98 = arith.truncf %91 : vector<64x32xf32> to vector<64x32xbf16>
      %cst_59 = arith.constant dense<0.000000e+00> : vector<64x128xf32>
      %99 = tpu.matmul %98, %94, %cst_59 {dimension_numbers = #tpu.dot_dimension_numbers<[1], [0], [0], [1], [0, 0, 1, 1], [], []>} : vector<64x32xbf16>, vector<32x128xbf16>, vector<64x128xf32> -> vector<64x128xf32>
      %cst_60 = arith.constant 2.000000e+00 : f32
      %100 = vector.broadcast %cst_60 : f32 to vector<64x128xf32>
      %101 = arith.mulf %100, %99 : vector<64x128xf32>
      %102 = vector.broadcast %97 : vector<1x128xf32> to vector<64x128xf32>
      %103 = arith.subf %102, %101 : vector<64x128xf32>
      %cst_61 = arith.constant dense<0x7F800000> : vector<64xf32>
      %104 = vector.multi_reduction <minimumf>, %103, %cst_61 [1] : vector<64x128xf32> to vector<64xf32>
      %105 = vector.shape_cast %104 : vector<64xf32> to vector<64x1xf32>
      %106 = vector.broadcast %105 : vector<64x1xf32> to vector<64x128xf32>
      %107 = arith.cmpf ole, %103, %106 : vector<64x128xf32>
      %c128_i32_62 = arith.constant 128 : i32
      %108 = vector.broadcast %c128_i32_62 : i32 to vector<64x128xi32>
      %109 = arith.select %107, %25, %108 : vector<64x128xi1>, vector<64x128xi32>
      %cst_63 = arith.constant dense<2147483647> : vector<64xi32>
      %110 = vector.multi_reduction <minsi>, %109, %cst_63 [1] : vector<64x128xi32> to vector<64xi32>
      %111 = vector.shape_cast %110 : vector<64xi32> to vector<64x1xi32>
      %112 = vector.broadcast %111 : vector<64x1xi32> to vector<64x128xi32>
      %113 = arith.cmpi eq, %25, %112 : vector<64x128xi32>
      %114 = arith.extui %113 : vector<64x128xi1> to vector<64x128xi32>
      %115 = arith.sitofp %114 : vector<64x128xi32> to vector<64x128xf32>
      %cst_64 = arith.constant dense<0.000000e+00> : vector<64x32xf32>
      %116 = tpu.matmul %115, %96, %cst_64 {dimension_numbers = #tpu.dot_dimension_numbers<[1], [0], [0], [1], [0, 0, 1, 1], [], []>} : vector<64x128xf32>, vector<128x32xf32>, vector<64x32xf32> -> vector<64x32xf32>
      %117 = arith.subf %116, %91 : vector<64x32xf32>
      %118 = arith.mulf %117, %117 : vector<64x32xf32>
      %cst_65 = arith.constant dense<0.000000e+00> : vector<64xf32>
      %119 = vector.multi_reduction <add>, %118, %cst_65 [1] : vector<64x32xf32> to vector<64xf32>
      %120 = vector.shape_cast %119 : vector<64xf32> to vector<64x1xf32>
      %cst_66 = arith.constant 3.200000e+01 : f32
      %121 = vector.broadcast %cst_66 : f32 to vector<64x1xf32>
      %122 = arith.divf %120, %121 : vector<64x1xf32>
      %123 = arith.addf %90, %122 : vector<64x1xf32>
      %c0_67 = arith.constant 0 : index
      %c2_68 = arith.constant 2 : index
      %124 = vector.load %arg13[%c0_67, %c2_68] : memref<64x3xi32, #tpu.memory_space<vmem>>, vector<64x1xi32>
      tpu.vector_store %arg13[%c0_67, %c2_68], %111 {strides = array<i32>} : memref<64x3xi32, #tpu.memory_space<vmem>>, vector<64x1xi32>,
      %cst_69 = arith.constant 0.333333343 : f32
      %125 = vector.broadcast %cst_69 : f32 to vector<64x1xf32>
      %126 = arith.mulf %123, %125 : vector<64x1xf32>
      %c0_70 = arith.constant 0 : index
      %c0_71 = arith.constant 0 : index
      %127 = vector.load %arg14[%c0_70, %c0_71] : memref<64x1xf32, #tpu.memory_space<vmem>>, vector<64x1xf32>
      tpu.vector_store %arg14[%c0_70, %c0_71], %126 {strides = array<i32>} : memref<64x1xf32, #tpu.memory_space<vmem>>, vector<64x1xf32>,
    } else {
    }
    return
  }
  func.func @transform_0(%arg0: i32, %arg1: i32, %arg2: memref<1xi32, #tpu.memory_space<smem>>) -> (i32, i32) {
    %c0_i32 = arith.constant 0 : i32
    return %arg0, %arg1 : i32, i32
  }
  func.func @transform_1(%arg0: i32, %arg1: i32, %arg2: memref<1xi32, #tpu.memory_space<smem>>) -> (i32, i32) {
    %c0_i32 = arith.constant 0 : i32
    %c0_i32_0 = arith.constant 0 : i32
    return %arg1, %c0_i32 : i32, i32
  }
  func.func @transform_2(%arg0: i32, %arg1: i32, %arg2: memref<1xi32, #tpu.memory_space<smem>>) -> (i32, i32) {
    %c0_i32 = arith.constant 0 : i32
    %c0_i32_0 = arith.constant 0 : i32
    return %arg0, %c0_i32 : i32, i32
  }
  func.func @transform_3(%arg0: i32, %arg1: i32, %arg2: memref<1xi32, #tpu.memory_space<smem>>) -> (i32, i32) {
    %c0_i32 = arith.constant 0 : i32
    %c0_i32_0 = arith.constant 0 : i32
    %c0_i32_1 = arith.constant 0 : i32
    return %c0_i32, %c0_i32_0 : i32, i32
  }
  func.func @transform_4(%arg0: i32, %arg1: i32, %arg2: memref<1xi32, #tpu.memory_space<smem>>) -> (i32, i32) {
    %c0_i32 = arith.constant 0 : i32
    %c0_i32_0 = arith.constant 0 : i32
    %c0_i32_1 = arith.constant 0 : i32
    return %c0_i32, %c0_i32_0 : i32, i32
  }
  func.func @transform_5(%arg0: i32, %arg1: i32, %arg2: memref<1xi32, #tpu.memory_space<smem>>) -> (i32, i32) {
    %c0_i32 = arith.constant 0 : i32
    %c0_i32_0 = arith.constant 0 : i32
    %c0_i32_1 = arith.constant 0 : i32
    return %c0_i32, %c0_i32_0 : i32, i32
  }
  func.func @transform_6(%arg0: i32, %arg1: i32, %arg2: memref<1xi32, #tpu.memory_space<smem>>) -> (i32, i32, i32) {
    %c0_i32 = arith.constant 0 : i32
    %c0_i32_0 = arith.constant 0 : i32
    %c0_i32_1 = arith.constant 0 : i32
    %c0_i32_2 = arith.constant 0 : i32
    return %c0_i32, %c0_i32_0, %c0_i32_1 : i32, i32, i32
  }
  func.func @transform_7(%arg0: i32, %arg1: i32, %arg2: memref<1xi32, #tpu.memory_space<smem>>) -> (i32, i32, i32) {
    %c0_i32 = arith.constant 0 : i32
    %c0_i32_0 = arith.constant 0 : i32
    %c0_i32_1 = arith.constant 0 : i32
    %c0_i32_2 = arith.constant 0 : i32
    return %c0_i32, %c0_i32_0, %c0_i32_1 : i32, i32, i32
  }
  func.func @transform_8(%arg0: i32, %arg1: i32, %arg2: memref<1xi32, #tpu.memory_space<smem>>) -> (i32, i32) {
    %c0_i32 = arith.constant 0 : i32
    %c0_i32_0 = arith.constant 0 : i32
    %c0_i32_1 = arith.constant 0 : i32
    return %c0_i32, %c0_i32_0 : i32, i32
  }
  func.func @transform_9(%arg0: i32, %arg1: i32, %arg2: memref<1xi32, #tpu.memory_space<smem>>) -> (i32, i32) {
    %c0_i32 = arith.constant 0 : i32
    %c0_i32_0 = arith.constant 0 : i32
    return %arg0, %c0_i32 : i32, i32
  }
  func.func @transform_10(%arg0: i32, %arg1: i32, %arg2: memref<1xi32, #tpu.memory_space<smem>>) -> (i32, i32) {
    %c0_i32 = arith.constant 0 : i32
    %c0_i32_0 = arith.constant 0 : i32
    return %arg0, %c0_i32 : i32, i32
  }
  func.func @transform_11(%arg0: i32, %arg1: i32, %arg2: memref<1xi32, #tpu.memory_space<smem>>) -> (i32, i32) {
    %c0_i32 = arith.constant 0 : i32
    %c0_i32_0 = arith.constant 0 : i32
    return %arg0, %c0_i32 : i32, i32
  }
}

</mosaic_0001>

<bundles_post_ra>
// kernel: gnn_forward.6
= control target key start
LH: loop header
LB: loop body
LE: loop exit
PB: predicated region body
PF: predicated region fallthrough
CT: control target
= control target key end

     0   :  { %vm42_vm0 = vcmask 130048   ;;  %vm120_vm1 = vcmask 261120   ;;  %s243_s1 = inlined_call_operand.vmem [shape: bf16[16,32], index: 1, kind: input, shape index: {}]   ;;  %s244_s0 = inlined_call_operand.vmem [shape: f32[64,16], index: 0, kind: input, shape index: {}]   ;;  %s245_s2 = inlined_call_operand.vmem [shape: f32[1,32], index: 2, kind: input, shape index: {}]   ;;  %s246_s3 = inlined_call_operand.vmem [shape: f32[64,32], index: 3, kind: output, shape index: {}]  }
   0x1   :  { %v156_v0 = vld [vmem:[%s243_s1] sm:$0xff]   ;;  %v16_v2 = vld [vmem:[%s244_s0 + $0x8] sm:$0xff]  ;;  %v17_v6 = vld [vmem:[%s244_s0 + $0x10] sm:$0xff] }
   0x2   :  { %v15_v1 = vld [vmem:[%s244_s0] sm:$0xff]  ;;  %144 = vmatprep.subr.bf16.mxu0 %v156_v0  ;;  %154 = vmatprep.subr.bf16.mxu1 %v156_v0  ;;  %v20_v5 = vld [vmem:[%s244_s0 + $0x28] sm:$0xff]  ;;  %v18_v7 = vld [vmem:[%s244_s0 + $0x18] sm:$0xff] }
   0x3   :  { %v19_v3 = vld [vmem:[%s244_s0 + $0x20] sm:$0xff]  ;;  %v23_v4 = vpack.c.bf16 %v16_v2, %v15_v1  ;;  %145 = vmatpush3.bf16.msra.mxu0 %v156_v0  ;;  %155 = vmatpush3.bf16.msra.mxu1 %v156_v0  ;;  %v24_v9 = vpack.c.bf16 %v18_v7, %v17_v6  ;;  %v21_v10 = vld [vmem:[%s244_s0 + $0x30] sm:$0xff]  ;;  %v22_v11 = vld [vmem:[%s244_s0 + $0x38] sm:$0xff] }
   0x4   :  { %v25_v8 = vpack.c.bf16 %v20_v5, %v19_v3  ;;  %v26_v12 = vpack.c.bf16 %v22_v11, %v21_v10  ;;  %v133_v13 = vld [vmem:[%s245_s2] ss:$0 sm:$0xff] }
   0x5   :  { %146 = vmatprep.mubr.msk.bf16.mxu0 %vm42_vm0, %v23_v4 }
   0x6   :  { %150 = vmatprep.mubr.msk.bf16.mxu1 %vm42_vm0, %v25_v8  ;;  %147 = vmatmul.mubr.msk.bf16.vlgmr.msra.gmra.mrb[0].mxu0 %vm42_vm0, %v24_v9 }
   0x7   :  { %151 = vmatmul.mubr.msk.bf16.vlgmr.msra.gmra.mrb[0].mxu1 %vm42_vm0, %v26_v12 }
  0xd9   :  { %v148_v14 = vpop.f32.mrb[0].mxu0 }
  0xda   :  { %v152_v15 = vpop.f32.mrb[0].mxu1  ;;  %v98_v16 = vadd.f32 %v148_v14, %v133_v13  ;;  %v89_v18 = vpop.f32.mrb[1].mxu0 }
  0xdb   :  { %v114_v17 = vadd.f32 %v152_v15, %v133_v13  ;;  %v105_v19 = vpop.f32.mrb[1].mxu1  ;;  %v90_v20 = vadd.f32 %v133_v13, %v89_v18  ;;  %v149_v22 = vpop.f32.mrb[2].mxu0 }
  0xdc   :  { %v106_v21 = vadd.f32 %v133_v13, %v105_v19  ;;  %v153_v23 = vpop.f32.mrb[2].mxu1  ;;  %123 = vst.msk [vmem:[%s246_s3 + $0x10] sm:$0xff] %vm120_vm1, %v98_v16  ;;  %v101_v24 = vadd.f32 %v149_v22, %v133_v13  ;;  %v92_v26 = vpop.f32.mrb[3].mxu0 }
  0xdd   :  { %127 = vst.msk [vmem:[%s246_s3 + $0x30] sm:$0xff] %vm120_vm1, %v114_v17  ;;  %v117_v25 = vadd.f32 %v153_v23, %v133_v13  ;;  %v108_v27 = vpop.f32.mrb[3].mxu1  ;;  %121 = vst.msk [vmem:[%s246_s3] sm:$0xff] %vm120_vm1, %v90_v20  ;;  %v93_v28 = vadd.f32 %v133_v13, %v92_v26 }
  0xde   :  { %125 = vst.msk [vmem:[%s246_s3 + $0x20] sm:$0xff] %vm120_vm1, %v106_v21  ;;  %v109_v29 = vadd.f32 %v133_v13, %v108_v27  ;;  %124 = vst.msk [vmem:[%s246_s3 + $0x18] sm:$0xff] %vm120_vm1, %v101_v24 }
  0xdf   :  { %128 = vst.msk [vmem:[%s246_s3 + $0x38] sm:$0xff] %vm120_vm1, %v117_v25  ;;  %122 = vst.msk [vmem:[%s246_s3 + $0x8] sm:$0xff] %vm120_vm1, %v93_v28 }
  0xe0   :  { %126 = vst.msk [vmem:[%s246_s3 + $0x28] sm:$0xff] %vm120_vm1, %v109_v29 }

// kernel: gnn_forward.7
= control target key start
LH: loop header
LB: loop body
LE: loop exit
PB: predicated region body
PF: predicated region fallthrough
CT: control target
= control target key end

     0   :  { %vm24_vm0 = vcmask 261120   ;;  %vm198_vm1 = vcmask 257024   ;;  %s383_s0 = inlined_call_operand.vmem [shape: f32[64,32], index: 0, kind: input, shape index: {}]   ;;  %s384_s1 = inlined_call_operand.vmem [shape: f32[1,32], index: 1, kind: input, shape index: {}]   ;;  %s385_s2 = inlined_call_operand.vmem [shape: f32[1,32], index: 2, kind: input, shape index: {}]   ;;  %s386_s3 = inlined_call_operand.vmem [shape: bf16[64,32], index: 3, kind: output, shape index: {}]  }
   0x1   :  { %v14_v0 = vld [vmem:[%s383_s0] sm:$0xff]  ;;  %v16_v1 = vld [vmem:[%s383_s0 + $0x10] sm:$0xff]  ;;  %v15_v2 = vld [vmem:[%s383_s0 + $0x8] sm:$0xff] }
   0x2   :  { %v25_v3 = vsel %vm24_vm0, %v14_v0, 0.0  ;;  %v31_v4 = vsel %vm24_vm0, %v16_v1, 0.0  ;;  %v17_v5 = vld [vmem:[%s383_s0 + $0x18] sm:$0xff]  ;;  %v28_v6 = vsel %vm24_vm0, %v15_v2, 0.0  ;;  %v18_v8 = vld [vmem:[%s383_s0 + $0x20] sm:$0xff]  ;;  %v19_v9 = vld [vmem:[%s383_s0 + $0x28] sm:$0xff] }
   0x3   :  { %26 = vadd.xlane.f32.xlu0 %v25_v3  ;;  %32 = vadd.xlane.f32.xlu1 %v31_v4  ;;  %v34_v7 = vsel %vm24_vm0, %v17_v5, 0.0  ;;  %v37_v10 = vsel %vm24_vm0, %v18_v8, 0.0  ;;  %v40_v11 = vsel %vm24_vm0, %v19_v9, 0.0  ;;  %v20_v12 = vld [vmem:[%s383_s0 + $0x30] sm:$0xff]  ;;  %v21_v13 = vld [vmem:[%s383_s0 + $0x38] sm:$0xff] }
   0x4   :  { %v43_v14 = vsel %vm24_vm0, %v20_v12, 0.0  ;;  %v46_v15 = vsel %vm24_vm0, %v21_v13, 0.0 }
   0x7   :  { %29 = vadd.xlane.f32.xlu0 %v28_v6  ;;  %35 = vadd.xlane.f32.xlu1 %v34_v7 }
   0xb   :  { %38 = vadd.xlane.f32.xlu0 %v37_v10  ;;  %41 = vadd.xlane.f32.xlu1 %v40_v11 }
   0xf   :  { %44 = vadd.xlane.f32.xlu0 %v43_v14  ;;  %47 = vadd.xlane.f32.xlu1 %v46_v15 }
  0x90   :  { %v27_v16 = vpop.xlane.xlu0 %26  ;;  %v33_v17 = vpop.xlane.xlu1 %32 }
  0x91   :  { %v50_v18 = vmul.f32 0.03125, %v27_v16  ;;  %v52_v19 = vmul.f32 0.03125, %v33_v17  ;;  %v212_v17 = vld [vmem:[%s385_s2] ss:$0 sm:$0xff] }
  0x93   :  { %v297_v20 = vsub.f32 %v14_v0, %v50_v18  ;;  %v299_v21 = vsub.f32 %v16_v1, %v52_v19 }
  0x94   :  { %v30_v22 = vpop.xlane.xlu0 %29  ;;  %v36_v23 = vpop.xlane.xlu1 %35 }
  0x95   :  { %v51_v24 = vmul.f32 0.03125, %v30_v22  ;;  %v53_v25 = vmul.f32 0.03125, %v36_v23  ;;  %v66_v26 = vmul.f32 %v297_v20, %v297_v20  ;;  %v68_v27 = vmul.f32 %v299_v21, %v299_v21 }
  0x97   :  { %v305_v28 = vsub.f32 %v15_v2, %v51_v24  ;;  %v307_v29 = vsub.f32 %v17_v5, %v53_v25  ;;  %v74_v30 = vsel %vm24_vm0, %v66_v26, 0.0  ;;  %v80_v33 = vsel %vm24_vm0, %v68_v27, 0.0 }
  0x98   :  { %75 = vadd.xlane.f32.xlu0 %v74_v30  ;;  %v39_v31 = vpop.xlane.xlu0 %38  ;;  %v42_v32 = vpop.xlane.xlu1 %41 }
  0x99   :  { %v54_v34 = vmul.f32 0.03125, %v39_v31  ;;  %v55_v35 = vmul.f32 0.03125, %v42_v32  ;;  %v67_v36 = vmul.f32 %v305_v28, %v305_v28  ;;  %v69_v37 = vmul.f32 %v307_v29, %v307_v29 }
  0x9b   :  { %v315_v38 = vsub.f32 %v18_v8, %v54_v34  ;;  %v317_v39 = vsub.f32 %v19_v9, %v55_v35  ;;  %v77_v40 = vsel %vm24_vm0, %v67_v36, 0.0  ;;  %v83_v43 = vsel %vm24_vm0, %v69_v37, 0.0 }
  0x9c   :  { %81 = vadd.xlane.f32.xlu0 %v80_v33  ;;  %78 = vadd.xlane.f32.xlu1 %v77_v40  ;;  %v45_v41 = vpop.xlane.xlu0 %44  ;;  %v48_v42 = vpop.xlane.xlu1 %47 }
  0x9d   :  { %v56_v44 = vmul.f32 0.03125, %v45_v41  ;;  %v57_v45 = vmul.f32 0.03125, %v48_v42  ;;  %v70_v46 = vmul.f32 %v315_v38, %v315_v38  ;;  %v71_v47 = vmul.f32 %v317_v39, %v317_v39 }
  0x9f   :  { %v325_v48 = vsub.f32 %v20_v12, %v56_v44  ;;  %v327_v49 = vsub.f32 %v21_v13, %v57_v45  ;;  %v86_v50 = vsel %vm24_vm0, %v70_v46, 0.0  ;;  %v89_v51 = vsel %vm24_vm0, %v71_v47, 0.0  ;;  %v211_v12 = vld [vmem:[%s384_s1] ss:$0 sm:$0xff] }
  0xa0   :  { %84 = vadd.xlane.f32.xlu1 %v83_v43  ;;  %87 = vadd.xlane.f32.xlu0 %v86_v50 }
  0xa1   :  { %v72_v52 = vmul.f32 %v325_v48, %v325_v48  ;;  %v73_v53 = vmul.f32 %v327_v49, %v327_v49 }
  0xa3   :  { %v92_v54 = vsel %vm24_vm0, %v72_v52, 0.0  ;;  %v95_v55 = vsel %vm24_vm0, %v73_v53, 0.0 }
  0xa4   :  { %90 = vadd.xlane.f32.xlu1 %v89_v51  ;;  %93 = vadd.xlane.f32.xlu0 %v92_v54 }
  0xa8   :  { %96 = vadd.xlane.f32.xlu1 %v95_v55 }
 0x125   :  { %v76_v56 = vpop.xlane.xlu0 %75 }
 0x126   :  { %v98_v57 = vmul.f32 0.03125, %v76_v56 }
 0x128   :  { %v106_v58 = vadd.f32 1e-05, %v98_v57 }
 0x129   :  { %v79_v59 = vpop.xlane.xlu1 %78  ;;  %v82_v60 = vpop.xlane.xlu0 %81 }
 0x12a   :  { %229 = vrsqrt.f32 %v106_v58  ;;  %v99_v61 = vmul.f32 0.03125, %v79_v59  ;;  %v100_v62 = vmul.f32 0.03125, %v82_v60 }
 0x12c   :  { %v107_v63 = vadd.f32 1e-05, %v99_v61  ;;  %v108_v0 = vadd.f32 1e-05, %v100_v62 }
 0x12d   :  { %v85_v1 = vpop.xlane.xlu1 %84  ;;  %v88_v2 = vpop.xlane.xlu0 %87 }
 0x12e   :  { %231 = vrsqrt.f32 %v107_v63  ;;  %v101_v3 = vmul.f32 0.03125, %v85_v1  ;;  %v102_v4 = vmul.f32 0.03125, %v88_v2 }
 0x12f   :  { %233 = vrsqrt.f32 %v108_v0 }
 0x130   :  { %v109_v5 = vadd.f32 1e-05, %v101_v3  ;;  %v110_v6 = vadd.f32 1e-05, %v102_v4 }
 0x131   :  { %v91_v7 = vpop.xlane.xlu1 %90  ;;  %v94_v8 = vpop.xlane.xlu0 %93 }
 0x132   :  { %235 = vrsqrt.f32 %v109_v5  ;;  %v103_v9 = vmul.f32 0.03125, %v91_v7  ;;  %v104_v10 = vmul.f32 0.03125, %v94_v8 }
 0x133   :  { %237 = vrsqrt.f32 %v110_v6 }
 0x134   :  { %v230_v11 = vpop.eup %229  ;;  %v111_v13 = vadd.f32 1e-05, %v103_v9  ;;  %v112_v14 = vadd.f32 1e-05, %v104_v10 }
 0x135   :  { %v122_v15 = vmul.f32 %v230_v11, %v297_v20  ;;  %v97_v16 = vpop.xlane.xlu1 %96 }
 0x136   :  { %239 = vrsqrt.f32 %v111_v13  ;;  %v105_v18 = vmul.f32 0.03125, %v97_v16 }
 0x137   :  { %v136_v19 = vmul.f32 %v211_v12, %v122_v15  ;;  %241 = vrsqrt.f32 %v112_v14 }
 0x138   :  { %v232_v22 = vpop.eup %231  ;;  %v113_v23 = vadd.f32 1e-05, %v105_v18 }
 0x139   :  { %v234_v24 = vpop.eup %233  ;;  %v150_v25 = vadd.f32 %v212_v17, %v136_v19  ;;  %v123_v26 = vmul.f32 %v232_v22, %v305_v28 }
 0x13a   :  { %v124_v27 = vmul.f32 %v234_v24, %v299_v21  ;;  %243 = vrsqrt.f32 %v113_v23 }
 0x13b   :  { %v158_v30 = vmax.f32 %v150_v25, 0.0  ;;  %v137_v20 = vmul.f32 %v211_v12, %v123_v26 }
 0x13c   :  { %v236_v31 = vpop.eup %235  ;;  %v138_v32 = vmul.f32 %v211_v12, %v124_v27 }
 0x13d   :  { %v238_v33 = vpop.eup %237  ;;  %v221_v34 = vpack.c.bf16 %v158_v30, %v158_v30  ;;  %v151_v35 = vadd.f32 %v212_v17, %v137_v20  ;;  %v125_v36 = vmul.f32 %v236_v31, %v307_v29 }
 0x13e   :  { %v152_v37 = vadd.f32 %v212_v17, %v138_v32  ;;  %v126_v40 = vmul.f32 %v238_v33, %v315_v38 }
 0x13f   :  { %199 = vst.msk [vmem:[%s386_s3] sm:$0xf] %vm198_vm1, %v221_v34  ;;  %v159_v21 = vmax.f32 %v151_v35, 0.0  ;;  %v139_v28 = vmul.f32 %v211_v12, %v125_v36 }
 0x140   :  { %v240_v41 = vpop.eup %239  ;;  %v160_v42 = vmax.f32 %v152_v37, 0.0  ;;  %v140_v43 = vmul.f32 %v211_v12, %v126_v40 }
 0x141   :  { %v242_v44 = vpop.eup %241  ;;  %v222_v45 = vpack.c.bf16 %v159_v21, %v159_v21  ;;  %v153_v46 = vadd.f32 %v212_v17, %v139_v28  ;;  %v127_v47 = vmul.f32 %v240_v41, %v317_v39 }
 0x142   :  { %v223_v50 = vpack.c.bf16 %v160_v42, %v160_v42  ;;  %v154_v29 = vadd.f32 %v212_v17, %v140_v43  ;;  %v128_v51 = vmul.f32 %v242_v44, %v325_v48 }
 0x143   :  { %200 = vst.msk [vmem:[%s386_s3 + $0x4] sm:$0xf] %vm198_vm1, %v222_v45  ;;  %v161_v38 = vmax.f32 %v153_v46, 0.0  ;;  %v141_v52 = vmul.f32 %v211_v12, %v127_v47 }
 0x144   :  { %v244_v53 = vpop.eup %243  ;;  %201 = vst.msk [vmem:[%s386_s3 + $0x8] sm:$0xf] %vm198_vm1, %v223_v50  ;;  %v162_v54 = vmax.f32 %v154_v29, 0.0  ;;  %v142_v55 = vmul.f32 %v211_v12, %v128_v51 }
 0x145   :  { %v224_v39 = vpack.c.bf16 %v161_v38, %v161_v38  ;;  %v155_v56 = vadd.f32 %v212_v17, %v141_v52  ;;  %v129_v57 = vmul.f32 %v244_v53, %v327_v49 }
 0x146   :  { %v225_v48 = vpack.c.bf16 %v162_v54, %v162_v54  ;;  %v156_v58 = vadd.f32 %v212_v17, %v142_v55 }
 0x147   :  { %202 = vst.msk [vmem:[%s386_s3 + $0xc] sm:$0xf] %vm198_vm1, %v224_v39  ;;  %v163_v59 = vmax.f32 %v155_v56, 0.0  ;;  %v143_v60 = vmul.f32 %v211_v12, %v129_v57 }
 0x148   :  { %203 = vst.msk [vmem:[%s386_s3 + $0x10] sm:$0xf] %vm198_vm1, %v225_v48  ;;  %v164_v61 = vmax.f32 %v156_v58, 0.0 }
 0x149   :  { %v226_v62 = vpack.c.bf16 %v163_v59, %v163_v59  ;;  %v157_v63 = vadd.f32 %v212_v17, %v143_v60 }
 0x14a   :  { %v227_v0 = vpack.c.bf16 %v164_v61, %v164_v61 }
 0x14b   :  { %204 = vst.msk [vmem:[%s386_s3 + $0x14] sm:$0xf] %vm198_vm1, %v226_v62  ;;  %v165_v49 = vmax.f32 %v157_v63, 0.0 }
 0x14c   :  { %205 = vst.msk [vmem:[%s386_s3 + $0x18] sm:$0xf] %vm198_vm1, %v227_v0 }
 0x14d   :  { %v228_v1 = vpack.c.bf16 %v165_v49, %v165_v49 }
 0x14f   :  { %206 = vst.msk [vmem:[%s386_s3 + $0x1c] sm:$0xf] %vm198_vm1, %v228_v1 }

// kernel: gnn_forward.11
= control target key start
LH: loop header
LB: loop body
LE: loop exit
PB: predicated region body
PF: predicated region fallthrough
CT: control target
= control target key end

     0   :  { %vm31_vm0 = vcmask 261120   ;;  %s491_s0 = inlined_call_operand.vmem [shape: f32[64,32], index: 0, kind: input, shape index: {}]   ;;  %s492_s3 = inlined_call_operand.vmem [shape: bf16[32,128], index: 3, kind: input, shape index: {}]   ;;  %s493_s1 = inlined_call_operand.vmem [shape: f32[1,32], index: 1, kind: input, shape index: {}]   ;;  %s494_s2 = inlined_call_operand.vmem [shape: f32[1,32], index: 2, kind: input, shape index: {}]   ;;  %s495_s4 = inlined_call_operand.vmem [shape: f32[1,128], index: 4, kind: input, shape index: {}]   ;;  %s496_s5 = inlined_call_operand.vmem [shape: f32[64,128], index: 5, kind: output, shape index: {}]  }
   0x1   :  { %v21_v0 = vld [vmem:[%s491_s0] sm:$0xff]  ;;  %v22_v2 = vld [vmem:[%s491_s0 + $0x8] sm:$0xff]  ;;  %v23_v8 = vld [vmem:[%s491_s0 + $0x10] sm:$0xff] }
   0x2   :  { %v25_v1 = vld [vmem:[%s491_s0 + $0x20] sm:$0xff]  ;;  %v32_v3 = vsel %vm31_vm0, %v21_v0, 0.0  ;;  %v26_v5 = vld [vmem:[%s491_s0 + $0x28] sm:$0xff]  ;;  %v35_v6 = vsel %vm31_vm0, %v22_v2, 0.0  ;;  %v24_v9 = vld [vmem:[%s491_s0 + $0x18] sm:$0xff]  ;;  %v38_v10 = vsel %vm31_vm0, %v23_v8, 0.0 }
   0x3   :  { %v44_v4 = vsel %vm31_vm0, %v25_v1, 0.0  ;;  %33 = vadd.xlane.f32.xlu0 %v32_v3  ;;  %v47_v7 = vsel %vm31_vm0, %v26_v5, 0.0  ;;  %v41_v11 = vsel %vm31_vm0, %v24_v9, 0.0  ;;  %v27_v12 = vld [vmem:[%s491_s0 + $0x30] sm:$0xff]  ;;  %v28_v13 = vld [vmem:[%s491_s0 + $0x38] sm:$0xff]  ;;  %v320_v56 = vld [vmem:[%s492_s3] sm:$0xff]  }
   0x4   :  { %45 = vadd.xlane.f32.xlu1 %v44_v4  ;;  %v50_v14 = vsel %vm31_vm0, %v27_v12, 0.0  ;;  %v53_v15 = vsel %vm31_vm0, %v28_v13, 0.0  ;;  %304 = vmatprep.subr.bf16.mxu0 %v320_v56  ;;  %v321_v57 = vld [vmem:[%s492_s3 + $0x8] sm:$0xff]  }
   0x5   :  { %316 = vmatprep.subr.bf16.mxu1 %v320_v56  ;;  %305 = vmatpush3.bf16.msra.mxu0 %v320_v56 }
   0x6   :  { %318 = vmatpush3.bf16.msra.mxu1 %v320_v56  ;;  %306 = vmatprep.subr.bf16.mxu0 %v321_v57 }
   0x7   :  { %36 = vadd.xlane.f32.xlu0 %v35_v6  ;;  %317 = vmatprep.subr.bf16.mxu1 %v321_v57 }
   0x8   :  { %48 = vadd.xlane.f32.xlu1 %v47_v7 }
   0x9   :  { %307 = vmatpush3.bf16.msra.mxu0 %v321_v57 }
   0xa   :  { %319 = vmatpush3.bf16.msra.mxu1 %v321_v57 }
   0xb   :  { %39 = vadd.xlane.f32.xlu0 %v38_v10 }
   0xc   :  { %42 = vadd.xlane.f32.xlu1 %v41_v11 }
   0xf   :  { %51 = vadd.xlane.f32.xlu0 %v50_v14 }
  0x10   :  { %54 = vadd.xlane.f32.xlu1 %v53_v15 }
  0x90   :  { %v34_v16 = vpop.xlane.xlu0 %33 }
  0x91   :  { %v46_v17 = vpop.xlane.xlu1 %45  ;;  %v57_v18 = vmul.f32 0.03125, %v34_v16  ;;  %v289_v16 = vld [vmem:[%s493_s1] ss:$0 sm:$0xff] }
  0x92   :  { %v61_v19 = vmul.f32 0.03125, %v46_v17 }
  0x93   :  { %v400_v20 = vsub.f32 %v21_v0, %v57_v18 }
  0x94   :  { %v402_v21 = vsub.f32 %v25_v1, %v61_v19  ;;  %v37_v22 = vpop.xlane.xlu0 %36 }
  0x95   :  { %v49_v23 = vpop.xlane.xlu1 %48  ;;  %v58_v24 = vmul.f32 0.03125, %v37_v22  ;;  %v73_v26 = vmul.f32 %v400_v20, %v400_v20 }
  0x96   :  { %v62_v25 = vmul.f32 0.03125, %v49_v23  ;;  %v77_v27 = vmul.f32 %v402_v21, %v402_v21 }
  0x97   :  { %v408_v28 = vsub.f32 %v22_v2, %v58_v24  ;;  %v81_v30 = vsel %vm31_vm0, %v73_v26, 0.0 }
  0x98   :  { %v410_v29 = vsub.f32 %v26_v5, %v62_v25  ;;  %82 = vadd.xlane.f32.xlu0 %v81_v30  ;;  %v40_v31 = vpop.xlane.xlu0 %39  ;;  %v93_v33 = vsel %vm31_vm0, %v77_v27, 0.0  ;;  %v290_v25 = vld [vmem:[%s494_s2] ss:$0 sm:$0xff] }
  0x99   :  { %v43_v32 = vpop.xlane.xlu1 %42  ;;  %v59_v34 = vmul.f32 0.03125, %v40_v31  ;;  %v74_v36 = vmul.f32 %v408_v28, %v408_v28 }
  0x9a   :  { %v60_v35 = vmul.f32 0.03125, %v43_v32  ;;  %v78_v37 = vmul.f32 %v410_v29, %v410_v29 }
  0x9b   :  { %v418_v38 = vsub.f32 %v23_v8, %v59_v34  ;;  %v84_v40 = vsel %vm31_vm0, %v74_v36, 0.0 }
  0x9c   :  { %v420_v39 = vsub.f32 %v24_v9, %v60_v35  ;;  %94 = vadd.xlane.f32.xlu0 %v93_v33  ;;  %85 = vadd.xlane.f32.xlu1 %v84_v40  ;;  %v52_v41 = vpop.xlane.xlu0 %51  ;;  %v96_v43 = vsel %vm31_vm0, %v78_v37, 0.0 }
  0x9d   :  { %v55_v42 = vpop.xlane.xlu1 %54  ;;  %v63_v44 = vmul.f32 0.03125, %v52_v41  ;;  %v75_v46 = vmul.f32 %v418_v38, %v418_v38 }
  0x9e   :  { %v64_v45 = vmul.f32 0.03125, %v55_v42  ;;  %v76_v47 = vmul.f32 %v420_v39, %v420_v39 }
  0x9f   :  { %v428_v48 = vsub.f32 %v27_v12, %v63_v44  ;;  %v87_v50 = vsel %vm31_vm0, %v75_v46, 0.0 }
  0xa0   :  { %v430_v49 = vsub.f32 %v28_v13, %v64_v45  ;;  %97 = vadd.xlane.f32.xlu1 %v96_v43  ;;  %88 = vadd.xlane.f32.xlu0 %v87_v50  ;;  %v90_v51 = vsel %vm31_vm0, %v76_v47, 0.0 }
  0xa1   :  { %v79_v52 = vmul.f32 %v428_v48, %v428_v48 }
  0xa2   :  { %v80_v53 = vmul.f32 %v430_v49, %v430_v49 }
  0xa3   :  { %v99_v54 = vsel %vm31_vm0, %v79_v52, 0.0 }
  0xa4   :  { %91 = vadd.xlane.f32.xlu1 %v90_v51  ;;  %100 = vadd.xlane.f32.xlu0 %v99_v54  ;;  %v102_v55 = vsel %vm31_vm0, %v80_v53, 0.0 }
  0xa8   :  { %103 = vadd.xlane.f32.xlu1 %v102_v55 }
 0x125   :  { %v83_v58 = vpop.xlane.xlu0 %82 }
 0x126   :  { %v105_v59 = vmul.f32 0.03125, %v83_v58 }
 0x128   :  { %v113_v60 = vadd.f32 1e-05, %v105_v59 }
 0x129   :  { %v86_v61 = vpop.xlane.xlu1 %85  ;;  %v95_v62 = vpop.xlane.xlu0 %94 }
 0x12a   :  { %322 = vrsqrt.f32 %v113_v60  ;;  %v106_v63 = vmul.f32 0.03125, %v86_v61  ;;  %v109_v0 = vmul.f32 0.03125, %v95_v62 }
 0x12c   :  { %v114_v1 = vadd.f32 1e-05, %v106_v63  ;;  %v117_v2 = vadd.f32 1e-05, %v109_v0 }
 0x12d   :  { %v98_v3 = vpop.xlane.xlu1 %97  ;;  %v89_v4 = vpop.xlane.xlu0 %88 }
 0x12e   :  { %324 = vrsqrt.f32 %v114_v1  ;;  %v110_v5 = vmul.f32 0.03125, %v98_v3  ;;  %v107_v6 = vmul.f32 0.03125, %v89_v4 }
 0x12f   :  { %326 = vrsqrt.f32 %v117_v2 }
 0x130   :  { %v118_v7 = vadd.f32 1e-05, %v110_v5  ;;  %v115_v8 = vadd.f32 1e-05, %v107_v6 }
 0x131   :  { %v92_v9 = vpop.xlane.xlu1 %91  ;;  %v101_v10 = vpop.xlane.xlu0 %100 }
 0x132   :  { %328 = vrsqrt.f32 %v118_v7  ;;  %v108_v11 = vmul.f32 0.03125, %v92_v9  ;;  %v111_v12 = vmul.f32 0.03125, %v101_v10 }
 0x133   :  { %330 = vrsqrt.f32 %v115_v8 }
 0x134   :  { %v323_v13 = vpop.eup %322  ;;  %v116_v14 = vadd.f32 1e-05, %v108_v11  ;;  %v119_v15 = vadd.f32 1e-05, %v111_v12 }
 0x135   :  { %v104_v17 = vpop.xlane.xlu1 %103  ;;  %v129_v18 = vmul.f32 %v323_v13, %v400_v20 }
 0x136   :  { %332 = vrsqrt.f32 %v116_v14  ;;  %v112_v19 = vmul.f32 0.03125, %v104_v17 }
 0x137   :  { %334 = vrsqrt.f32 %v119_v15  ;;  %v143_v22 = vmul.f32 %v289_v16, %v129_v18 }
 0x138   :  { %v325_v23 = vpop.eup %324  ;;  %v120_v24 = vadd.f32 1e-05, %v112_v19 }
 0x139   :  { %v327_v26 = vpop.eup %326  ;;  %v130_v27 = vmul.f32 %v325_v23, %v408_v28  ;;  %v157_v32 = vadd.f32 %v290_v25, %v143_v22 }
 0x13a   :  { %336 = vrsqrt.f32 %v120_v24  ;;  %v133_v30 = vmul.f32 %v327_v26, %v402_v21 }
 0x13b   :  { %v144_v31 = vmul.f32 %v289_v16, %v130_v27  ;;  %v165_v40 = vmax.f32 %v157_v32, 0.0 }
 0x13c   :  { %v329_v33 = vpop.eup %328  ;;  %v147_v20 = vmul.f32 %v289_v16, %v133_v30 }
 0x13d   :  { %v331_v34 = vpop.eup %330  ;;  %v158_v35 = vadd.f32 %v290_v25, %v144_v31  ;;  %v134_v36 = vmul.f32 %v329_v33, %v410_v29 }
 0x13e   :  { %v131_v37 = vmul.f32 %v331_v34, %v418_v38  ;;  %v161_v43 = vadd.f32 %v290_v25, %v147_v20 }
 0x13f   :  { %v166_v41 = vmax.f32 %v158_v35, 0.0  ;;  %v148_v42 = vmul.f32 %v289_v16, %v134_v36 }
 0x140   :  { %v333_v44 = vpop.eup %332  ;;  %v145_v45 = vmul.f32 %v289_v16, %v131_v37  ;;  %v169_v51 = vmax.f32 %v161_v43, 0.0 }
 0x141   :  { %v335_v28 = vpop.eup %334  ;;  %v132_v46 = vmul.f32 %v333_v44, %v420_v39  ;;  %v173_v21 = vpack.c.bf16 %v166_v41, %v165_v40  ;;  %v162_v47 = vadd.f32 %v290_v25, %v148_v42 }
 0x142   :  { %v135_v50 = vmul.f32 %v335_v28, %v428_v48  ;;  %v159_v53 = vadd.f32 %v290_v25, %v145_v45 }
 0x143   :  { %308 = vmatprep.mubr.msk.bf16.mxu0 %vm31_vm0, %v173_v21  ;;  %v170_v52 = vmax.f32 %v162_v47, 0.0  ;;  %v146_v29 = vmul.f32 %v289_v16, %v132_v46 }
 0x144   :  { %v337_v38 = vpop.eup %336  ;;  %v149_v54 = vmul.f32 %v289_v16, %v135_v50  ;;  %v167_v58 = vmax.f32 %v159_v53, 0.0 }
 0x145   :  { %v136_v55 = vmul.f32 %v337_v38, %v430_v49  ;;  %v175_v56 = vpack.c.bf16 %v170_v52, %v169_v51  ;;  %v160_v57 = vadd.f32 %v290_v25, %v146_v29  ;;  %v291_v49 = vld [vmem:[%s495_s4] ss:$0 sm:$0xff] }
 0x146   :  { %v163_v60 = vadd.f32 %v290_v25, %v149_v54 }
 0x147   :  { %312 = vmatprep.mubr.msk.bf16.mxu1 %vm31_vm0, %v175_v56  ;;  %v168_v39 = vmax.f32 %v160_v57, 0.0  ;;  %v150_v59 = vmul.f32 %v289_v16, %v136_v55 }
 0x148   :  { %v171_v62 = vmax.f32 %v163_v60, 0.0 }
 0x149   :  { %v174_v61 = vpack.c.bf16 %v168_v39, %v167_v58  ;;  %v164_v48 = vadd.f32 %v290_v25, %v150_v59 }
 0x14b   :  { %309 = vmatmul.mubr.msk.bf16.vlgmr.msra.gmra.mrb[0].mxu0 %vm31_vm0, %v174_v61  ;;  %v172_v63 = vmax.f32 %v164_v48, 0.0 }
 0x14d   :  { %v176_v0 = vpack.c.bf16 %v172_v63, %v171_v62 }
 0x14f   :  { %313 = vmatmul.mubr.msk.bf16.vlgmr.msra.gmra.mrb[0].mxu1 %vm31_vm0, %v176_v0 }
 0x21e   :  { %v310_v1 = vpop.f32.mrb[0].mxu0 }
 0x21f   :  { %v255_v2 = vadd.f32 %v310_v1, %v291_v49  ;;  %v246_v3 = vpop.f32.mrb[1].mxu0 }
 0x220   :  { %v247_v4 = vadd.f32 %v291_v49, %v246_v3  ;;  %v311_v5 = vpop.f32.mrb[2].mxu0 }
 0x221   :  { %279 = vst [vmem:[%s496_s5 + $0x10] sm:$0xff] %v255_v2  ;;  %v258_v6 = vadd.f32 %v311_v5, %v291_v49  ;;  %v249_v7 = vpop.f32.mrb[3].mxu0 }
 0x222   :  { %277 = vst [vmem:[%s496_s5] sm:$0xff] %v247_v4  ;;  %v250_v8 = vadd.f32 %v291_v49, %v249_v7  ;;  %v314_v9 = vpop.f32.mrb[0].mxu1 }
 0x223   :  { %280 = vst [vmem:[%s496_s5 + $0x18] sm:$0xff] %v258_v6  ;;  %v271_v10 = vadd.f32 %v314_v9, %v291_v49  ;;  %v262_v11 = vpop.f32.mrb[1].mxu1 }
 0x224   :  { %278 = vst [vmem:[%s496_s5 + $0x8] sm:$0xff] %v250_v8  ;;  %v263_v12 = vadd.f32 %v291_v49, %v262_v11  ;;  %v315_v13 = vpop.f32.mrb[2].mxu1 }
 0x225   :  { %283 = vst [vmem:[%s496_s5 + $0x30] sm:$0xff] %v271_v10  ;;  %v274_v14 = vadd.f32 %v315_v13, %v291_v49  ;;  %v265_v15 = vpop.f32.mrb[3].mxu1 }
 0x226   :  { %281 = vst [vmem:[%s496_s5 + $0x20] sm:$0xff] %v263_v12  ;;  %v266_v16 = vadd.f32 %v291_v49, %v265_v15 }
 0x227   :  { %284 = vst [vmem:[%s496_s5 + $0x38] sm:$0xff] %v274_v14 }
 0x228   :  { %282 = vst [vmem:[%s496_s5 + $0x28] sm:$0xff] %v266_v16 }

// kernel: gnn_forward.8
= control target key start
LH: loop header
LB: loop body
LE: loop exit
PB: predicated region body
PF: predicated region fallthrough
CT: control target
= control target key end

     0   :  { %vm42_vm0 = vcmask 261120   ;;  %v2541_v0 = vmov 0.0   ;;  %s3563_s0 = inlined_call_operand.<no memory space> [shape: s32[1], index: 0, kind: input, shape index: {}]   ;;  %s3564_s1 = inlined_call_operand.vmem [shape: bf16[64,64], index: 1, kind: input, shape index: {}]   ;;  %s3565_s2 = inlined_call_operand.vmem [shape: bf16[64,32], index: 2, kind: input, shape index: {}, may-alias: {2,3}]   ;;  %s3566_s3 = inlined_call_operand.vmem [shape: bf16[64,32], index: 3, kind: input, shape index: {}, may-alias: {2,3}]   ;;  %s3567_s4 = inlined_call_operand.vmem [shape: bf16[32,32], index: 4, kind: input, shape index: {}]   ;;  %s3568_s5 = inlined_call_operand.vmem [shape: f32[1,32], index: 5, kind: input, shape index: {}]   ;;  %s3569_s6 = inlined_call_operand.vmem [shape: bf16[32,32], index: 6, kind: input, shape index: {}]   ;;  %s3570_s7 = inlined_call_operand.vmem [shape: bf16[3,32,128], index: 7, kind: input, shape index: {}]   ;;  %s3571_s8 = inlined_call_operand.vmem [shape: f32[3,128,32], index: 8, kind: input, shape index: {}]   ;;  %s3572_s9 = inlined_call_operand.vmem [shape: f32[3,128], index: 9, kind: input, shape index: {}]   ;;  %s3573_s10 = inlined_call_operand.vmem [shape: f32[64,32], index: 10, kind: output, shape index: {0}]   ;;  %s3574_s11 = inlined_call_operand.vmem [shape: s32[64,3], index: 11, kind: output, shape index: {1}]   ;;  %s3575_s12 = inlined_call_operand.vmem [shape: f32[64,1], index: 12, kind: output, shape index: {2}]  }
   0x1   :  { %43 = vst.msk [vmem:[#allocation2] sm:$0xff] %vm42_vm0, %v2541_v0  ;;  %44 = vst.msk [vmem:[#allocation2 + $0x8] sm:$0xff] %vm42_vm0, %v2541_v0  ;;  %p1940_p0 = scmp.le.s32.totalorder %s3563_s0, 0 }
   0x2   :  { %45 = vst.msk [vmem:[#allocation2 + $0x10] sm:$0xff] %vm42_vm0, %v2541_v0  ;;  %46 = vst.msk [vmem:[#allocation2 + $0x18] sm:$0xff] %vm42_vm0, %v2541_v0  ;;  %v2519_v1 = vld [vmem:[%s3565_s2] sm:$0xff] (!%p1940_p0)   ;;  %v2520_v2 = vld [vmem:[%s3565_s2 + $0x8] sm:$0xff] (!%p1940_p0)   ;;  %vm125_vm1 = vcmask (!%p1940_p0), 523264  }
   0x3   :  { %47 = vst.msk [vmem:[#allocation2 + $0x20] sm:$0xff] %vm42_vm0, %v2541_v0  ;;  %48 = vst.msk [vmem:[#allocation2 + $0x28] sm:$0xff] %vm42_vm0, %v2541_v0  ;;  %56 = sbr.rel (%p1940_p0) target bundleno = 237 (0xed), region = 45  ;;  %2189 = vmatprep.subr.bf16.mxu0 (!%p1940_p0), %v2519_v1  ;;  %2493 = vmatprep.subr.bf16.mxu1 (!%p1940_p0), %v2519_v1  ;;  %v2521_v3 = vld [vmem:[%s3565_s2 + $0x10] sm:$0xff] (!%p1940_p0)   ;;  %v2523_v4 = vld [vmem:[%s3564_s1] sm:$0xff] (!%p1940_p0)  }
   0x4   :  { %49 = vst.msk [vmem:[#allocation2 + $0x30] sm:$0xff] %vm42_vm0, %v2541_v0  ;;  %50 = vst.msk [vmem:[#allocation2 + $0x38] sm:$0xff] %vm42_vm0, %v2541_v0  ;;  %2190 = vmatpush3.bf16.msra.mxu0 (!%p1940_p0), %v2519_v1  ;;  %2497 = vmatpush3.bf16.msra.mxu1 (!%p1940_p0), %v2519_v1  ;;  %v2524_v5 = vld [vmem:[%s3564_s1 + $0x10] sm:$0xff] (!%p1940_p0)   ;;  %v2522_v6 = vld [vmem:[%s3565_s2 + $0x18] sm:$0xff] (!%p1940_p0)  }
   0x5   :  { %2191 = vmatprep.subr.bf16.mxu0 (!%p1940_p0), %v2520_v2  ;;  %2494 = vmatprep.subr.bf16.mxu1 (!%p1940_p0), %v2520_v2  ;;  %v2525_v7 = vld [vmem:[%s3564_s1 + $0x8] sm:$0xff] (!%p1940_p0)   ;;  %v2526_v8 = vld [vmem:[%s3564_s1 + $0x18] sm:$0xff] (!%p1940_p0)  }
   0x6   :  { %2197 = vmatprep.mubr.msk.bf16.mxu0 (!%p1940_p0), %vm125_vm1, %v2523_v4  ;;  %2201 = vmatprep.mubr.msk.bf16.mxu1 (!%p1940_p0), %vm125_vm1, %v2524_v5 }
   0x8   :  { %2192 = vmatpush3.bf16.msra.mxu0 (!%p1940_p0), %v2520_v2  ;;  %2498 = vmatpush3.bf16.msra.mxu1 (!%p1940_p0), %v2520_v2  ;;  %v57_v11 = vld [vmem:[#allocation2] sm:$0xff] (!%p1940_p0)  ;;  %v58_v21 = vld [vmem:[#allocation2 + $0x8] sm:$0xff] (!%p1940_p0) }
   0x9   :  { %2193 = vmatprep.subr.bf16.mxu0 (!%p1940_p0), %v2521_v3  ;;  %2495 = vmatprep.subr.bf16.mxu1 (!%p1940_p0), %v2521_v3  ;;  %v59_v9 = vld [vmem:[#allocation2 + $0x10] sm:$0xff] (!%p1940_p0)  ;;  %v60_v15 = vld [vmem:[#allocation2 + $0x18] sm:$0xff] (!%p1940_p0) }
   0xa   :  { %v61_v12 = vld [vmem:[#allocation2 + $0x20] sm:$0xff]  ;;  %v62_v22 = vld [vmem:[#allocation2 + $0x28] sm:$0xff] }
   0xb   :  { %v63_v10 = vld [vmem:[#allocation2 + $0x30] sm:$0xff]  ;;  %v64_v16 = vld [vmem:[#allocation2 + $0x38] sm:$0xff] }
   0xc   :  { %2194 = vmatpush3.bf16.msra.mxu0 %v2521_v3  ;;  %2499 = vmatpush3.bf16.msra.mxu1 %v2521_v3 }
   0xd   :  { %2195 = vmatprep.subr.bf16.mxu0 %v2522_v6  ;;  %2496 = vmatprep.subr.bf16.mxu1 %v2522_v6 }
  0x10   :  { %2196 = vmatpush3.bf16.msra.mxu0 %v2522_v6  ;;  %2500 = vmatpush3.bf16.msra.mxu1 %v2522_v6 }
  0x13   :  { %2198 = vmatmul.mubr.msk.bf16.vlgmr.msra.gmra.mrb[0].mxu0 %vm125_vm1, %v2525_v7  ;;  %2202 = vmatmul.mubr.msk.bf16.vlgmr.msra.gmra.mrb[0].mxu1 %vm125_vm1, %v2526_v8 }
  0xe6   :  { %v2199_v13 = vpop.f32.mrb[0].mxu0  ;;  %v2203_v14 = vpop.f32.mrb[0].mxu1 }
  0xe7   :  { %v205_v17 = vadd.f32 %v2199_v13, %v59_v9  ;;  %v209_v18 = vadd.f32 %v2203_v14, %v63_v10  ;;  %v172_v19 = vpop.f32.mrb[1].mxu0  ;;  %v188_v20 = vpop.f32.mrb[1].mxu1 }
  0xe8   :  { %v203_v23 = vadd.f32 %v172_v19, %v57_v11  ;;  %v207_v24 = vadd.f32 %v188_v20, %v61_v12  ;;  %v2200_v25 = vpop.f32.mrb[2].mxu0  ;;  %v2204_v26 = vpop.f32.mrb[2].mxu1 }
  0xe9   :  { %214 = vst.msk [vmem:[#allocation2 + $0x10] sm:$0xff] %vm42_vm0, %v205_v17  ;;  %218 = vst.msk [vmem:[#allocation2 + $0x30] sm:$0xff] %vm42_vm0, %v209_v18  ;;  %v206_v27 = vadd.f32 %v2200_v25, %v60_v15  ;;  %v210_v28 = vadd.f32 %v2204_v26, %v64_v16  ;;  %v175_v29 = vpop.f32.mrb[3].mxu0  ;;  %v191_v30 = vpop.f32.mrb[3].mxu1 }
  0xea   :  { %212 = vst.msk [vmem:[#allocation2] sm:$0xff] %vm42_vm0, %v203_v23  ;;  %216 = vst.msk [vmem:[#allocation2 + $0x20] sm:$0xff] %vm42_vm0, %v207_v24  ;;  %v204_v31 = vadd.f32 %v175_v29, %v58_v21  ;;  %v208_v32 = vadd.f32 %v191_v30, %v62_v22 }
  0xeb   :  { %215 = vst.msk [vmem:[#allocation2 + $0x18] sm:$0xff] %vm42_vm0, %v206_v27  ;;  %219 = vst.msk [vmem:[#allocation2 + $0x38] sm:$0xff] %vm42_vm0, %v210_v28 }
  0xec   :  { %213 = vst.msk [vmem:[#allocation2 + $0x8] sm:$0xff] %vm42_vm0, %v204_v31  ;;  %217 = vst.msk [vmem:[#allocation2 + $0x28] sm:$0xff] %vm42_vm0, %v208_v32 }
  0xed PF:  { %v2527_v33 = vld [vmem:[%s3567_s4] sm:$0xff]   ;;  %v2528_v34 = vld [vmem:[%s3567_s4 + $0x8] sm:$0xff]   ;;  %v2533_v51 = vld [vmem:[%s3566_s3 + $0x10] sm:$0xff]  }
  0xee   :  { %2205 = vmatprep.subr.bf16.mxu0 %v2527_v33  ;;  %v2529_v40 = vld [vmem:[%s3569_s6] sm:$0xff]   ;;  %v2530_v45 = vld [vmem:[%s3569_s6 + $0x8] sm:$0xff]   ;;  %v2534_v52 = vld [vmem:[%s3566_s3 + $0x18] sm:$0xff]  }
  0xef   :  { %2206 = vmatpush3.bf16.msra.mxu0 %v2527_v33  ;;  %v2531_v49 = vld [vmem:[%s3566_s3] sm:$0xff]   ;;  %v2532_v50 = vld [vmem:[%s3566_s3 + $0x8] sm:$0xff]  }
  0xf0   :  { %v225_v37 = vld [vmem:[#allocation2 + $0x10] sm:$0xff]  ;;  %2207 = vmatprep.subr.bf16.mxu0 %v2528_v34  ;;  %v2535_v53 = vld [vmem:[%s3570_s7] sm:$0xff]   ;;  %v2536_v54 = vld [vmem:[%s3570_s7 + $0x8] sm:$0xff]  }
  0xf1   :  { %v223_v35 = vld [vmem:[#allocation2] sm:$0xff]  ;;  %v229_v46 = vld [vmem:[#allocation2 + $0x30] sm:$0xff]  ;;  %2229 = vmatprep.subr.bf16.mxu1 %v2535_v53 }
  0xf2   :  { %v226_v39 = vld [vmem:[#allocation2 + $0x18] sm:$0xff]  ;;  %v227_v41 = vld [vmem:[#allocation2 + $0x20] sm:$0xff]  ;;  %2230 = vmatpush3.bf16.msra.mxu1 %v2535_v53 }
  0xf3   :  { %v224_v36 = vld [vmem:[#allocation2 + $0x8] sm:$0xff]  ;;  %v232_v43 = vpack.c.bf16 %v226_v39, %v225_v37  ;;  %2208 = vmatpush3.bf16.msra.mxu0 %v2528_v34  ;;  %v230_v47 = vld [vmem:[#allocation2 + $0x38] sm:$0xff]  ;;  %2231 = vmatprep.subr.bf16.mxu1 %v2536_v54  ;;  %v1953_v55 = vld [vmem:[%s3568_s5] ss:$0 sm:$0xff]  ;;  %v473_v37 = vlaneseq }
  0xf4   :  { %v231_v38 = vpack.c.bf16 %v224_v36, %v223_v35  ;;  %v228_v42 = vld [vmem:[#allocation2 + $0x28] sm:$0xff]  ;;  %2217 = vmatprep.subr.bf16.mxu0 %v2529_v40  ;;  %v234_v48 = vpack.c.bf16 %v230_v47, %v229_v46  ;;  %v1976_v13 = vld [vmem:[%s3572_s9] ss:$0 sm:$0xff] }
  0xf5   :  { %v233_v44 = vpack.c.bf16 %v228_v42, %v227_v41 }
  0xf6   :  { %2209 = vmatprep.mubr.msk.bf16.mxu0 %vm42_vm0, %v231_v38  ;;  %2232 = vmatpush3.bf16.msra.mxu1 %v2536_v54  ;;  %v2767_v38 = vand.u32 127, %v473_v37 }
  0xf7   :  { %2210 = vmatmul.mubr.msk.bf16.vlgmr.msra.gmra.mrb[0].mxu0 %vm42_vm0, %v232_v43 }
  0xf8   :  { %2218 = vmatpush3.bf16.msra.mxu0 %v2529_v40  ;;  %2213 = vmatprep.mubr.msk.bf16.mxu0 %vm42_vm0, %v233_v44 }
  0xf9   :  { %2219 = vmatprep.subr.bf16.mxu0 %v2530_v45 }
  0xfc   :  { %2220 = vmatpush3.bf16.msra.mxu0 %v2530_v45 }
  0xff   :  { %2214 = vmatmul.mubr.msk.bf16.gmra.mrb[4].mxu0 %vm42_vm0, %v234_v48 }
 0x100   :  { %2221 = vmatprep.mubr.msk.bf16.mxu0 %vm42_vm0, %v2531_v49 }
 0x107   :  { %2222 = vmatmul.mubr.msk.bf16.vlgmr.msra.gmra.mrb[0].mxu0 %vm42_vm0, %v2532_v50 }
 0x108   :  { %2225 = vmatprep.mubr.msk.bf16.mxu0 %vm42_vm0, %v2533_v51 }
 0x10f   :  { %2226 = vmatmul.mubr.msk.bf16.gmra.mrb[4].mxu0 %vm42_vm0, %v2534_v52 }
 0x1da   :  { %v2223_v56 = vpop.f32.mrb[0].mxu0 }
 0x1db   :  { %v2696_v57 = vadd.f32 %v2223_v56, %v1953_v55  ;;  %v426_v58 = vpop.f32.mrb[1].mxu0 }
 0x1dc   :  { %v2698_v59 = vadd.f32 %v1953_v55, %v426_v58  ;;  %v2224_v60 = vpop.f32.mrb[2].mxu0 }
 0x1dd   :  { %467 = vst.msk [vmem:[%s3573_s10 + $0x10] sm:$0xff] %vm42_vm0, %v2696_v57  ;;  %v2705_v61 = vadd.f32 %v2224_v60, %v1953_v55  ;;  %v429_v62 = vpop.f32.mrb[3].mxu0 }
 0x1de   :  { %465 = vst.msk [vmem:[%s3573_s10] sm:$0xff] %vm42_vm0, %v2698_v59  ;;  %v2712_v63 = vadd.f32 %v1953_v55, %v429_v62 }
 0x1df   :  { %468 = vst.msk [vmem:[%s3573_s10 + $0x18] sm:$0xff] %vm42_vm0, %v2705_v61  ;;  %v497_v1 = vpack.c.bf16 %v2705_v61, %v2696_v57 }
 0x1e0   :  { %466 = vst.msk [vmem:[%s3573_s10 + $0x8] sm:$0xff] %vm42_vm0, %v2712_v63  ;;  %v496_v0 = vpack.c.bf16 %v2712_v63, %v2698_v59 }
 0x1e2   :  { %v2227_v2 = vpop.f32.mrb[4].mxu0  ;;  %2233 = vmatprep.mubr.msk.bf16.mxu1 %vm42_vm0, %v496_v0 }
 0x1e3   :  { %v2729_v3 = vadd.f32 %v2227_v2, %v1953_v55  ;;  %v442_v4 = vpop.f32.mrb[5].mxu0  ;;  %2234 = vmatmul.mubr.msk.bf16.vlgmr.msra.gmra.mrb[0].mxu1 %vm42_vm0, %v497_v1 }
 0x1e4   :  { %v2732_v5 = vadd.f32 %v1953_v55, %v442_v4  ;;  %v2228_v6 = vpop.f32.mrb[6].mxu0 }
 0x1e5   :  { %471 = vst.msk [vmem:[%s3573_s10 + $0x30] sm:$0xff] %vm42_vm0, %v2729_v3  ;;  %v2739_v7 = vadd.f32 %v2228_v6, %v1953_v55  ;;  %v445_v8 = vpop.f32.mrb[7].mxu0 }
 0x1e6   :  { %469 = vst.msk [vmem:[%s3573_s10 + $0x20] sm:$0xff] %vm42_vm0, %v2732_v5  ;;  %v2746_v9 = vadd.f32 %v1953_v55, %v445_v8 }
 0x1e7   :  { %472 = vst.msk [vmem:[%s3573_s10 + $0x38] sm:$0xff] %vm42_vm0, %v2739_v7  ;;  %v499_v11 = vpack.c.bf16 %v2739_v7, %v2729_v3 }
 0x1e8   :  { %470 = vst.msk [vmem:[%s3573_s10 + $0x28] sm:$0xff] %vm42_vm0, %v2746_v9  ;;  %v498_v10 = vpack.c.bf16 %v2746_v9, %v2732_v5 }
 0x1ea   :  { %2237 = vmatprep.mubr.msk.bf16.mxu1 %vm42_vm0, %v498_v10 }
 0x1eb   :  { %2238 = vmatmul.mubr.msk.bf16.gmra.mrb[4].mxu1 %vm42_vm0, %v499_v11 }
 0x2b6   :  { %v2235_v12 = vpop.f32.mrb[0].mxu1 }
 0x2b7   :  { %v591_v14 = vmul.f32 2.0, %v2235_v12  ;;  %v558_v15 = vpop.f32.mrb[1].mxu1 }
 0x2b8   :  { %v589_v16 = vmul.f32 2.0, %v558_v15  ;;  %v2236_v17 = vpop.f32.mrb[2].mxu1  ;;  %v479_v15 = vld [vmem:[%s3571_s8] sm:$0xff] }
 0x2b9   :  { %v592_v18 = vmul.f32 2.0, %v2236_v17  ;;  %v561_v19 = vpop.f32.mrb[3].mxu1  ;;  %v603_v20 = vsub.f32 %v1976_v13, %v591_v14  ;;  %v481_v17 = vld [vmem:[%s3571_s8 + $0x10] sm:$0xff] }
 0x2ba   :  { %v590_v21 = vmul.f32 2.0, %v561_v19  ;;  %v601_v22 = vsub.f32 %v1976_v13, %v589_v16  ;;  %v480_v16 = vld [vmem:[%s3571_s8 + $0x8] sm:$0xff]  ;;  %v482_v19 = vld [vmem:[%s3571_s8 + $0x18] sm:$0xff] }
 0x2bb   :  { %613 = vmin.xlane.f32.xlu1 %v603_v20  ;;  %v604_v23 = vsub.f32 %v1976_v13, %v592_v18  ;;  %v2397_v18 = vpack.c.bf16 %v480_v16, %v479_v15  ;;  %v494_v15 = vld [vmem:[%s3571_s8 + $0x78] sm:$0xff] }
 0x2bc   :  { %609 = vmin.xlane.f32.xlu0 %v601_v22  ;;  %v602_v25 = vsub.f32 %v1976_v13, %v590_v21  ;;  %v483_v21 = vld [vmem:[%s3571_s8 + $0x20] sm:$0xff] }
 0x2bd   :  { %2398 = vmatprep.subr.bf16.mxu1 %v2397_v18 }
 0x2be   :  { %v2239_v24 = vpop.f32.mrb[4].mxu1  ;;  %2400 = vmatpush3.bf16.msra.mxu1 %v2397_v18 }
 0x2bf   :  { %615 = vmin.xlane.f32.xlu1 %v604_v23  ;;  %v574_v26 = vpop.f32.mrb[5].mxu1  ;;  %v595_v30 = vmul.f32 2.0, %v2239_v24  ;;  %v485_v24 = vld [vmem:[%s3571_s8 + $0x30] sm:$0xff] }
 0x2c0   :  { %v593_v27 = vmul.f32 2.0, %v574_v26  ;;  %611 = vmin.xlane.f32.xlu0 %v602_v25  ;;  %v2240_v28 = vpop.f32.mrb[6].mxu1 }
 0x2c1   :  { %v577_v29 = vpop.f32.mrb[7].mxu1  ;;  %v596_v33 = vmul.f32 2.0, %v2240_v28  ;;  %v607_v35 = vsub.f32 %v1976_v13, %v595_v30  ;;  %v488_v28 = vld [vmem:[%s3571_s8 + $0x48] sm:$0xff]  ;;  %v489_v30 = vld [vmem:[%s3571_s8 + $0x50] sm:$0xff] }
 0x2c2   :  { %v594_v31 = vmul.f32 2.0, %v577_v29  ;;  %v605_v32 = vsub.f32 %v1976_v13, %v593_v27  ;;  %v487_v27 = vld [vmem:[%s3571_s8 + $0x40] sm:$0xff] }
 0x2c3   :  { %v608_v36 = vsub.f32 %v1976_v13, %v596_v33  ;;  %v2413_v29 = vpack.c.bf16 %v488_v28, %v487_v27 }
 0x2c4   :  { %617 = vmin.xlane.f32.xlu0 %v605_v32  ;;  %v606_v34 = vsub.f32 %v1976_v13, %v594_v31  ;;  %v490_v31 = vld [vmem:[%s3571_s8 + $0x58] sm:$0xff] }
 0x2c6   :  { %619 = vmin.xlane.f32.xlu1 %v606_v34 }
 0x2c8   :  { %621 = vmin.xlane.f32.xlu0 %v607_v35 }
 0x2ca   :  { %623 = vmin.xlane.f32.xlu1 %v608_v36 }
 0x348   :  { %v614_v39 = vpop.xlane.xlu1 %613 }
 0x349   :  { %vm627_vm2 = vcmp.le.f32.partialorder %v603_v20, %v614_v39  ;;  %v610_v40 = vpop.xlane.xlu0 %609  ;;  %v2401_v20 = vpack.c.bf16 %v482_v19, %v481_v17 }
 0x34a   :  { %vm625_vm3 = vcmp.le.f32.partialorder %v601_v22, %v610_v40  ;;  %v2770_v41 = vsel %vm627_vm2, %v2767_v38, 128  ;;  %v484_v22 = vld [vmem:[%s3571_s8 + $0x28] sm:$0xff] }
 0x34b   :  { %v2773_v42 = vsel %vm625_vm3, %v2767_v38, 128  ;;  %v670_v47 = vshra.s32 %v2770_v41, 16  ;;  %2402 = vmatprep.subr.bf16.mxu1 %v2401_v20  ;;  %vm947_vm3 = vcmask 7168  }
 0x34c   :  { %v616_v43 = vpop.xlane.xlu1 %615  ;;  %v642_v44 = vshra.s32 %v2773_v42, 16  ;;  %2404 = vmatpush3.bf16.msra.mxu1 %v2401_v20  ;;  %v641_v33 = vand.u32 65535, %v2773_v42 }
 0x34d   :  { %vm628_vm4 = vcmp.le.f32.partialorder %v604_v23, %v616_v43  ;;  %v612_v45 = vpop.xlane.xlu0 %611  ;;  %v2787_v52 = vcvt.s32.f32 %v670_v47  ;;  %v2405_v23 = vpack.c.bf16 %v484_v22, %v483_v21 }
 0x34e   :  { %vm626_vm5 = vcmp.le.f32.partialorder %v602_v25, %v612_v45  ;;  %v2776_v46 = vcvt.s32.f32 %v642_v44  ;;  %v2780_v48 = vsel %vm628_vm4, %v2767_v38, 128  ;;  %v486_v25 = vld [vmem:[%s3571_s8 + $0x38] sm:$0xff]  ;;  %v643_v37 = vcvt.s32.f32 %v641_v33 }
 0x34f   :  { %v2783_v49 = vsel %vm626_vm5, %v2767_v38, 128  ;;  %v684_v54 = vshra.s32 %v2780_v48, 16  ;;  %2406 = vmatprep.subr.bf16.mxu1 %v2405_v23  ;;  %v2409_v26 = vpack.c.bf16 %v486_v25, %v485_v24  ;;  %v683_v40 = vand.u32 65535, %v2780_v48 }
 0x350   :  { %645 = vmin.xlane.f32.xlu0 %v2776_v46  ;;  %v656_v50 = vshra.s32 %v2783_v49, 16  ;;  %2408 = vmatpush3.bf16.msra.mxu1 %v2405_v23 }
 0x351   :  { %v618_v51 = vpop.xlane.xlu0 %617  ;;  %v2803_v1 = vcvt.s32.f32 %v684_v54  ;;  %2410 = vmatprep.subr.bf16.mxu1 %v2409_v26 }
 0x352   :  { %vm629_vm6 = vcmp.le.f32.partialorder %v605_v32, %v618_v51  ;;  %v2789_v53 = vcvt.s32.f32 %v656_v50  ;;  %v2417_v32 = vpack.c.bf16 %v490_v31, %v489_v30 }
 0x353   :  { %v2793_v55 = vsel %vm629_vm6, %v2767_v38, 128  ;;  %v620_v56 = vpop.xlane.xlu1 %619 }
 0x354   :  { %vm630_vm7 = vcmp.le.f32.partialorder %v606_v34, %v620_v56  ;;  %673 = vmin.xlane.f32.xlu0 %v2787_v52  ;;  %659 = vmin.xlane.f32.xlu1 %v2789_v53  ;;  %v698_v58 = vshra.s32 %v2793_v55, 16  ;;  %v669_v34 = vand.u32 65535, %v2770_v41  ;;  %v697_v43 = vand.u32 65535, %v2793_v55 }
 0x355   :  { %v2799_v60 = vsel %vm630_vm7, %v2767_v38, 128  ;;  %v622_v62 = vpop.xlane.xlu0 %621  ;;  %2412 = vmatpush3.bf16.msra.mxu1 %v2409_v26  ;;  %v685_v55 = vcvt.s32.f32 %v683_v40 }
 0x356   :  { %vm631_vm8 = vcmp.le.f32.partialorder %v607_v35, %v622_v62  ;;  %v2801_v0 = vcvt.s32.f32 %v698_v58  ;;  %v712_v2 = vshra.s32 %v2799_v60, 16  ;;  %2414 = vmatprep.subr.bf16.mxu1 %v2413_v29  ;;  %v655_v35 = vand.u32 65535, %v2783_v49 }
 0x357   :  { %v2807_v4 = vsel %vm631_vm8, %v2767_v38, 128  ;;  %v624_v6 = vpop.xlane.xlu1 %623  ;;  %v671_v47 = vcvt.s32.f32 %v669_v34  ;;  %v699_v54 = vcvt.s32.f32 %v697_v43 }
 0x358   :  { %vm632_vm9 = vcmp.le.f32.partialorder %v608_v36, %v624_v6  ;;  %701 = vmin.xlane.f32.xlu0 %v2801_v0  ;;  %687 = vmin.xlane.f32.xlu1 %v2803_v1  ;;  %v726_v8 = vshra.s32 %v2807_v4, 16  ;;  %v2817_v12 = vcvt.s32.f32 %v712_v2  ;;  %v657_v50 = vcvt.s32.f32 %v655_v35 }
 0x359   :  { %v2813_v10 = vsel %vm632_vm9, %v2767_v38, 128  ;;  %2416 = vmatpush3.bf16.msra.mxu1 %v2413_v29  ;;  %v725_v48 = vand.u32 65535, %v2807_v4 }
 0x35a   :  { %v2815_v11 = vcvt.s32.f32 %v726_v8  ;;  %v740_v13 = vshra.s32 %v2813_v10, 16  ;;  %2418 = vmatprep.subr.bf16.mxu1 %v2417_v32  ;;  %v491_v8 = vld [vmem:[%s3571_s8 + $0x60] sm:$0xff] }
 0x35c   :  { %729 = vmin.xlane.f32.xlu0 %v2815_v11  ;;  %715 = vmin.xlane.f32.xlu1 %v2817_v12  ;;  %v2822_v14 = vcvt.s32.f32 %v740_v13  ;;  %v493_v13 = vld [vmem:[%s3571_s8 + $0x70] sm:$0xff] }
 0x35d   :  { %2420 = vmatpush3.bf16.msra.mxu1 %v2417_v32  ;;  %v2425_v16 = vpack.c.bf16 %v494_v15, %v493_v13  ;;  %v3576_v32 = vmov 1.0  }
 0x360   :  { %743 = vmin.xlane.f32.xlu1 %v2822_v14 }
 0x3dd   :  { %v646_v36 = vpop.xlane.xlu0 %645 }
 0x3de   :  { %vm647_vm10 = vcmp.eq.f32.partialorder %v2776_v46, %v646_v36  ;;  %v711_v46 = vand.u32 65535, %v2799_v60  ;;  %v727_v60 = vcvt.s32.f32 %v725_v48  ;;  %v652_v17 = vcvt.f32.s32 %v646_v36 }
 0x3df   :  { %v648_v39 = vsel %vm647_vm10, %v643_v37, inf }
 0x3e0   :  { %649 = vmin.xlane.f32.xlu0 %v648_v39  ;;  %v713_v2 = vcvt.s32.f32 %v711_v46  ;;  %v653_v20 = vshll.u32 %v652_v17, 16 }
 0x3e1   :  { %v674_v44 = vpop.xlane.xlu0 %673  ;;  %v2867_v45 = vpop.xlane.xlu1 %659 }
 0x3e2   :  { %vm675_vm11 = vcmp.eq.f32.partialorder %v2787_v52, %v674_v44  ;;  %vm661_vm12 = vcmp.eq.f32.partialorder %v2789_v53, %v2867_v45  ;;  %v739_v53 = vand.u32 65535, %v2813_v10  ;;  %v492_v10 = vld [vmem:[%s3571_s8 + $0x68] sm:$0xff]  ;;  %v680_v18 = vcvt.f32.s32 %v674_v44 }
 0x3e3   :  { %v676_v41 = vsel %vm675_vm11, %v671_v47, inf  ;;  %v662_v42 = vsel %vm661_vm12, %v657_v50, inf  ;;  %v666_v21 = vcvt.f32.s32 %v2867_v45 }
 0x3e4   :  { %677 = vmin.xlane.f32.xlu0 %v676_v41  ;;  %663 = vmin.xlane.f32.xlu1 %v662_v42  ;;  %v741_v6 = vcvt.s32.f32 %v739_v53  ;;  %v681_v24 = vshll.u32 %v680_v18, 16 }
 0x3e5   :  { %v702_v49 = vpop.xlane.xlu0 %701  ;;  %v688_v51 = vpop.xlane.xlu1 %687  ;;  %v667_v29 = vshll.u32 %v666_v21, 16 }
 0x3e6   :  { %vm703_vm13 = vcmp.eq.f32.partialorder %v2801_v0, %v702_v49  ;;  %vm689_vm14 = vcmp.eq.f32.partialorder %v2803_v1, %v688_v51  ;;  %v708_v25 = vcvt.f32.s32 %v702_v49  ;;  %v694_v26 = vcvt.f32.s32 %v688_v51 }
 0x3e7   :  { %v704_v52 = vsel %vm703_vm13, %v699_v54, inf  ;;  %v690_v56 = vsel %vm689_vm14, %v685_v55, inf }
 0x3e8   :  { %705 = vmin.xlane.f32.xlu0 %v704_v52  ;;  %691 = vmin.xlane.f32.xlu1 %v690_v56  ;;  %v709_v35 = vshll.u32 %v708_v25, 16  ;;  %v695_v36 = vshll.u32 %v694_v26, 16  ;;  %v2019_v26 = vld [vmem:[%s3572_s9 + $0x1] ss:$0 sm:$0xff] }
 0x3e9   :  { %v2877_v58 = vpop.xlane.xlu0 %729  ;;  %v2879_v62 = vpop.xlane.xlu1 %715 }
 0x3ea   :  { %vm731_vm15 = vcmp.eq.f32.partialorder %v2815_v11, %v2877_v58  ;;  %vm717_vm1 = vcmp.eq.f32.partialorder %v2817_v12, %v2879_v62  ;;  %v2421_v11 = vpack.c.bf16 %v492_v10, %v491_v8  ;;  %v736_v37 = vcvt.f32.s32 %v2877_v58 }
 0x3eb   :  { %v732_v0 = vsel %vm731_vm15, %v727_v60, inf  ;;  %v718_v1 = vsel %vm717_vm1, %v713_v2, inf  ;;  %v722_v39 = vcvt.f32.s32 %v2879_v62  ;;  %v2538_v60 = vld [vmem:[%s3570_s7 + $0x18] sm:$0xff]  }
 0x3ec   :  { %733 = vmin.xlane.f32.xlu0 %v732_v0  ;;  %719 = vmin.xlane.f32.xlu1 %v718_v1  ;;  %v737_v41 = vshll.u32 %v736_v37, 16 }
 0x3ed   :  { %v2885_v4 = vpop.xlane.xlu1 %743  ;;  %2422 = vmatprep.subr.bf16.mxu1 %v2421_v11  ;;  %v723_v42 = vshll.u32 %v722_v39, 16 }
 0x3ee   :  { %vm745_vm2 = vcmp.eq.f32.partialorder %v2822_v14, %v2885_v4  ;;  %2424 = vmatpush3.bf16.msra.mxu1 %v2421_v11  ;;  %v2537_v14 = vld [vmem:[%s3570_s7 + $0x10] sm:$0xff]   ;;  %v750_v46 = vcvt.f32.s32 %v2885_v4 }
 0x3ef   :  { %v746_v12 = vsel %vm745_vm2, %v741_v6, inf  ;;  %2426 = vmatprep.subr.bf16.mxu1 %v2425_v16  ;;  %2285 = vmatprep.subr.bf16.mxu0 %v2537_v14 }
 0x3f0   :  { %747 = vmin.xlane.f32.xlu1 %v746_v12  ;;  %2286 = vmatpush3.bf16.msra.mxu0 %v2537_v14  ;;  %v751_v53 = vshll.u32 %v750_v46, 16 }
 0x3f1   :  { %2287 = vmatprep.subr.bf16.mxu0 %v2538_v60 }
 0x3f2   :  { %2428 = vmatpush3.bf16.msra.mxu1 %v2425_v16 }
 0x3f4   :  { %2288 = vmatpush3.bf16.msra.mxu0 %v2538_v60 }
 0x46d   :  { %v650_v19 = vpop.xlane.xlu0 %649 }
 0x46e   :  { %v651_v22 = vcvt.f32.s32 %v650_v19 }
 0x470   :  { %v654_v23 = vadd.s32 %v653_v20, %v651_v22 }
 0x471   :  { %v678_v27 = vpop.xlane.xlu0 %677  ;;  %v664_v28 = vpop.xlane.xlu1 %663 }
 0x472   :  { %948 = vst.msk [vmem:[%s3574_s11] sm:$0xff] %vm947_vm3, %v654_v23  ;;  %v679_v30 = vcvt.f32.s32 %v678_v27  ;;  %v665_v31 = vcvt.f32.s32 %v664_v28  ;;  %vm753_vm4 = vcmp.eq.s32.totalorder %v2767_v38, %v654_v23 }
 0x473   :  { %2273 = vmatprep.mubr.msk.f32.mxu1 %vm753_vm4, %v3576_v32 }
 0x474   :  { %v682_v33 = vadd.s32 %v681_v24, %v679_v30  ;;  %v668_v34 = vadd.s32 %v667_v29, %v665_v31 }
 0x475   :  { %v706_v40 = vpop.xlane.xlu0 %705  ;;  %v692_v43 = vpop.xlane.xlu1 %691 }
 0x476   :  { %950 = vst.msk [vmem:[%s3574_s11 + $0x10] sm:$0xff] %vm947_vm3, %v682_v33  ;;  %vm754_vm5 = vcmp.eq.s32.totalorder %v2767_v38, %v668_v34  ;;  %949 = vst.msk [vmem:[%s3574_s11 + $0x8] sm:$0xff] %vm947_vm3, %v668_v34  ;;  %v707_v44 = vcvt.f32.s32 %v706_v40  ;;  %v693_v45 = vcvt.f32.s32 %v692_v43  ;;  %vm755_vm6 = vcmp.eq.s32.totalorder %v2767_v38, %v682_v33 }
 0x477   :  { %2274 = vmatmul.mubr.msk.f32.vlgmr.msra.gmra.mrb[8].mxu1 %vm754_vm5, %v3576_v32 }
 0x478   :  { %v710_v47 = vadd.s32 %v709_v35, %v707_v44  ;;  %v696_v50 = vadd.s32 %v695_v36, %v693_v45  ;;  %2276 = vmatprep.mubr.msk.f32.mxu1 %vm755_vm6, %v3576_v32 }
 0x479   :  { %v734_v48 = vpop.xlane.xlu0 %733  ;;  %v720_v49 = vpop.xlane.xlu1 %719 }
 0x47a   :  { %952 = vst.msk [vmem:[%s3574_s11 + $0x20] sm:$0xff] %vm947_vm3, %v710_v47  ;;  %951 = vst.msk [vmem:[%s3574_s11 + $0x18] sm:$0xff] %vm947_vm3, %v696_v50  ;;  %v735_v51 = vcvt.f32.s32 %v734_v48  ;;  %v721_v54 = vcvt.f32.s32 %v720_v49  ;;  %vm756_vm7 = vcmp.eq.s32.totalorder %v2767_v38, %v696_v50  ;;  %vm757_vm8 = vcmp.eq.s32.totalorder %v2767_v38, %v710_v47 }
 0x47b   :  { %2277 = vmatmul.mubr.msk.f32.gmra.mrb[10].mxu1 %vm756_vm7, %v3576_v32 }
 0x47c   :  { %v738_v55 = vadd.s32 %v737_v41, %v735_v51  ;;  %v724_v52 = vadd.s32 %v723_v42, %v721_v54  ;;  %2279 = vmatprep.mubr.msk.f32.mxu1 %vm757_vm8, %v3576_v32 }
 0x47d   :  { %v748_v56 = vpop.xlane.xlu1 %747 }
 0x47e   :  { %954 = vst.msk [vmem:[%s3574_s11 + $0x30] sm:$0xff] %vm947_vm3, %v738_v55  ;;  %953 = vst.msk [vmem:[%s3574_s11 + $0x28] sm:$0xff] %vm947_vm3, %v724_v52  ;;  %v749_v58 = vcvt.f32.s32 %v748_v56  ;;  %vm758_vm9 = vcmp.eq.s32.totalorder %v2767_v38, %v724_v52  ;;  %vm759_vm10 = vcmp.eq.s32.totalorder %v2767_v38, %v738_v55 }
 0x47f   :  { %2280 = vmatmul.mubr.msk.f32.gmra.mrb[12].mxu1 %vm758_vm9, %v3576_v32 }
 0x480   :  { %v752_v62 = vadd.s32 %v751_v53, %v749_v58  ;;  %2282 = vmatprep.mubr.msk.f32.mxu1 %vm759_vm10, %v3576_v32 }
 0x482   :  { %955 = vst.msk [vmem:[%s3574_s11 + $0x38] sm:$0xff] %vm947_vm3, %v752_v62  ;;  %vm760_vm11 = vcmp.eq.s32.totalorder %v2767_v38, %v752_v62 }
 0x483   :  { %2283 = vmatmul.mubr.msk.f32.gmra.mrb[14].mxu1 %vm760_vm11, %v3576_v32 }
 0x54a   :  { %v2959_v2 = vpop.f32.mrb[8].mxu1 }
 0x54b   :  { %v2963_v0 = vsub.f32 %v2712_v63, %v2959_v2  ;;  %v2965_v1 = vpop.f32.mrb[9].mxu1 }
 0x54c   :  { %v2969_v4 = vsub.f32 %v2698_v59, %v2965_v1 }
 0x54e   :  { %v2971_v6 = vpop.f32.mrb[10].mxu1  ;;  %v979_v8 = vpack.c.bf16 %v2963_v0, %v2969_v4 }
 0x54f   :  { %v2977_v10 = vsub.f32 %v2705_v61, %v2971_v6  ;;  %v2979_v11 = vpop.f32.mrb[11].mxu1 }
 0x550   :  { %v2983_v12 = vsub.f32 %v2696_v57, %v2979_v11  ;;  %2289 = vmatprep.mubr.msk.bf16.mxu0 %vm42_vm0, %v979_v8 }
 0x552   :  { %v980_v13 = vpack.c.bf16 %v2977_v10, %v2983_v12  ;;  %v2988_v15 = vpop.f32.mrb[12].mxu1 }
 0x553   :  { %v2992_v16 = vsub.f32 %v2746_v9, %v2988_v15  ;;  %v2994_v14 = vpop.f32.mrb[13].mxu1 }
 0x554   :  { %v2998_v17 = vsub.f32 %v2732_v5, %v2994_v14  ;;  %2290 = vmatmul.mubr.msk.bf16.vlgmr.msra.gmra.mrb[8].mxu0 %vm42_vm0, %v980_v13 }
 0x556   :  { %v3001_v18 = vpop.f32.mrb[14].mxu1  ;;  %v981_v19 = vpack.c.bf16 %v2992_v16, %v2998_v17 }
 0x557   :  { %v3007_v20 = vsub.f32 %v2739_v7, %v3001_v18  ;;  %v3009_v21 = vpop.f32.mrb[15].mxu1 }
 0x558   :  { %v3013_v22 = vsub.f32 %v2729_v3, %v3009_v21  ;;  %2293 = vmatprep.mubr.msk.bf16.mxu0 %vm42_vm0, %v981_v19 }
 0x55a   :  { %v982_v23 = vpack.c.bf16 %v3007_v20, %v3013_v22 }
 0x55c   :  { %2294 = vmatmul.mubr.msk.bf16.gmra.mrb[12].mxu0 %vm42_vm0, %v982_v23 }
 0x627   :  { %v2291_v24 = vpop.f32.mrb[8].mxu0 }
 0x628   :  { %v1041_v25 = vpop.f32.mrb[9].mxu0  ;;  %v1074_v30 = vmul.f32 2.0, %v2291_v24 }
 0x629   :  { %v1072_v27 = vmul.f32 2.0, %v1041_v25  ;;  %v2292_v28 = vpop.f32.mrb[10].mxu0 }
 0x62a   :  { %v1044_v29 = vpop.f32.mrb[11].mxu0  ;;  %v1075_v34 = vmul.f32 2.0, %v2292_v28  ;;  %v1086_v37 = vsub.f32 %v2019_v26, %v1074_v30 }
 0x62b   :  { %v1073_v31 = vmul.f32 2.0, %v1044_v29  ;;  %v1084_v33 = vsub.f32 %v2019_v26, %v1072_v27 }
 0x62c   :  { %v1087_v44 = vsub.f32 %v2019_v26, %v1075_v34 }
 0x62d   :  { %1092 = vmin.xlane.f32.xlu0 %v1084_v33  ;;  %v1085_v35 = vsub.f32 %v2019_v26, %v1073_v31 }
 0x62f   :  { %1094 = vmin.xlane.f32.xlu1 %v1085_v35  ;;  %v2295_v36 = vpop.f32.mrb[12].mxu0 }
 0x630   :  { %v1057_v39 = vpop.f32.mrb[13].mxu0  ;;  %v1078_v47 = vmul.f32 2.0, %v2295_v36 }
 0x631   :  { %v1076_v40 = vmul.f32 2.0, %v1057_v39  ;;  %1096 = vmin.xlane.f32.xlu0 %v1086_v37  ;;  %v2296_v43 = vpop.f32.mrb[14].mxu0 }
 0x632   :  { %v1060_v45 = vpop.f32.mrb[15].mxu0  ;;  %v1079_v42 = vmul.f32 2.0, %v2296_v43  ;;  %v1090_v48 = vsub.f32 %v2019_v26, %v1078_v47 }
 0x633   :  { %v1077_v50 = vmul.f32 2.0, %v1060_v45  ;;  %1098 = vmin.xlane.f32.xlu1 %v1087_v44  ;;  %v1088_v41 = vsub.f32 %v2019_v26, %v1076_v40 }
 0x634   :  { %v1091_v49 = vsub.f32 %v2019_v26, %v1079_v42  ;;  %v1999_v42 = vld [vmem:[%s3571_s8 + $0x90] sm:$0xff] }
 0x635   :  { %1100 = vmin.xlane.f32.xlu0 %v1088_v41  ;;  %v1089_v46 = vsub.f32 %v2019_v26, %v1077_v50  ;;  %v1997_v50 = vld [vmem:[%s3571_s8 + $0x80] sm:$0xff] }
 0x637   :  { %1102 = vmin.xlane.f32.xlu1 %v1089_v46 }
 0x639   :  { %1104 = vmin.xlane.f32.xlu0 %v1090_v48 }
 0x63b   :  { %1106 = vmin.xlane.f32.xlu1 %v1091_v49 }
 0x6ba   :  { %v1093_v51 = vpop.xlane.xlu0 %1092 }
 0x6bb   :  { %vm1108_vm12 = vcmp.le.f32.partialorder %v1084_v33, %v1093_v51  ;;  %v2001_v51 = vld [vmem:[%s3571_s8 + $0xa0] sm:$0xff] }
 0x6bc   :  { %v3023_v54 = vsel %vm1108_vm12, %v2767_v38, 128  ;;  %v1095_v55 = vpop.xlane.xlu1 %1094 }
 0x6bd   :  { %vm1109_vm13 = vcmp.le.f32.partialorder %v1085_v35, %v1095_v55  ;;  %v1125_v52 = vshra.s32 %v3023_v54, 16  ;;  %v2002_v55 = vld [vmem:[%s3571_s8 + $0xa8] sm:$0xff] }
 0x6be   :  { %v3027_v56 = vsel %vm1109_vm13, %v2767_v38, 128  ;;  %v1097_v53 = vpop.xlane.xlu0 %1096 }
 0x6bf   :  { %vm1110_vm14 = vcmp.le.f32.partialorder %v1086_v37, %v1097_v53  ;;  %v3029_v58 = vcvt.s32.f32 %v1125_v52  ;;  %v1139_v62 = vshra.s32 %v3027_v56, 16  ;;  %v2437_v52 = vpack.c.bf16 %v2002_v55, %v2001_v51  ;;  %v2003_v53 = vld [vmem:[%s3571_s8 + $0xb0] sm:$0xff] }
 0x6c0   :  { %v3033_v60 = vsel %vm1110_vm14, %v2767_v38, 128  ;;  %v1099_v8 = vpop.xlane.xlu1 %1098  ;;  %vm1429_vm14 = vcmask 15368  }
 0x6c1   :  { %vm1111_vm15 = vcmp.le.f32.partialorder %v1087_v44, %v1099_v8  ;;  %1128 = vmin.xlane.f32.xlu0 %v3029_v58  ;;  %v3036_v13 = vcvt.s32.f32 %v1139_v62  ;;  %v1153_v19 = vshra.s32 %v3033_v60, 16  ;;  %v2004_v62 = vld [vmem:[%s3571_s8 + $0xb8] sm:$0xff] }
 0x6c2   :  { %v3040_v23 = vsel %vm1111_vm15, %v2767_v38, 128  ;;  %v1101_v24 = vpop.xlane.xlu0 %1100  ;;  %v2441_v8 = vpack.c.bf16 %v2004_v62, %v2003_v53 }
 0x6c3   :  { %vm1112_vm1 = vcmp.le.f32.partialorder %v1088_v41, %v1101_v24  ;;  %1142 = vmin.xlane.f32.xlu1 %v3036_v13  ;;  %v3043_v25 = vcvt.s32.f32 %v1153_v19  ;;  %v1167_v26 = vshra.s32 %v3040_v23, 16  ;;  %v1998_v41 = vld [vmem:[%s3571_s8 + $0x88] sm:$0xff]  ;;  %v2005_v19 = vld [vmem:[%s3571_s8 + $0xc0] sm:$0xff] }
 0x6c4   :  { %v3047_v27 = vsel %vm1112_vm1, %v2767_v38, 128  ;;  %v1103_v28 = vpop.xlane.xlu1 %1102  ;;  %v2006_v24 = vld [vmem:[%s3571_s8 + $0xc8] sm:$0xff] }
 0x6c5   :  { %vm1113_vm2 = vcmp.le.f32.partialorder %v1089_v46, %v1103_v28  ;;  %1156 = vmin.xlane.f32.xlu0 %v3043_v25  ;;  %v3050_v29 = vcvt.s32.f32 %v1167_v26  ;;  %v1181_v30 = vshra.s32 %v3047_v27, 16  ;;  %v2429_v46 = vpack.c.bf16 %v1998_v41, %v1997_v50  ;;  %v2007_v28 = vld [vmem:[%s3571_s8 + $0xd0] sm:$0xff] }
 0x6c6   :  { %v3054_v31 = vsel %vm1113_vm2, %v2767_v38, 128  ;;  %v1105_v33 = vpop.xlane.xlu0 %1104  ;;  %v2445_v26 = vpack.c.bf16 %v2006_v24, %v2005_v19  ;;  %v1138_v50 = vand.u32 65535, %v3027_v56  ;;  %v1152_v41 = vand.u32 65535, %v3033_v60 }
 0x6c7   :  { %vm1114_vm4 = vcmp.le.f32.partialorder %v1090_v48, %v1105_v33  ;;  %1170 = vmin.xlane.f32.xlu1 %v3050_v29  ;;  %v3057_v34 = vcvt.s32.f32 %v1181_v30  ;;  %v1195_v35 = vshra.s32 %v3054_v31, 16  ;;  %v2000_v48 = vld [vmem:[%s3571_s8 + $0x98] sm:$0xff]  ;;  %2430 = vmatprep.subr.bf16.mxu0 %v2429_v46  ;;  %v1194_v56 = vand.u32 65535, %v3054_v31 }
 0x6c8   :  { %v3061_v36 = vsel %vm1114_vm4, %v2767_v38, 128  ;;  %v1107_v37 = vpop.xlane.xlu1 %1106  ;;  %2432 = vmatpush3.bf16.msra.mxu0 %v2429_v46  ;;  %v2008_v30 = vld [vmem:[%s3571_s8 + $0xd8] sm:$0xff]  ;;  %v1140_v55 = vcvt.s32.f32 %v1138_v50  ;;  %v1154_v62 = vcvt.s32.f32 %v1152_v41 }
 0x6c9   :  { %vm1115_vm5 = vcmp.le.f32.partialorder %v1091_v49, %v1107_v37  ;;  %1184 = vmin.xlane.f32.xlu0 %v3057_v34  ;;  %v3064_v39 = vcvt.s32.f32 %v1195_v35  ;;  %v1209_v40 = vshra.s32 %v3061_v36, 16  ;;  %v2433_v49 = vpack.c.bf16 %v2000_v48, %v1999_v42  ;;  %v2009_v35 = vld [vmem:[%s3571_s8 + $0xe0] sm:$0xff]  ;;  %v2010_v37 = vld [vmem:[%s3571_s8 + $0xe8] sm:$0xff] }
 0x6ca   :  { %v3068_v43 = vsel %vm1115_vm5, %v2767_v38, 128  ;;  %v2449_v33 = vpack.c.bf16 %v2008_v30, %v2007_v28  ;;  %v1166_v48 = vand.u32 65535, %v3040_v23  ;;  %v1208_v23 = vand.u32 65535, %v3061_v36 }
 0x6cb   :  { %1198 = vmin.xlane.f32.xlu1 %v3064_v39  ;;  %v3071_v44 = vcvt.s32.f32 %v1209_v40  ;;  %v1223_v45 = vshra.s32 %v3068_v43, 16  ;;  %2434 = vmatprep.subr.bf16.mxu0 %v2433_v49  ;;  %v2453_v40 = vpack.c.bf16 %v2010_v37, %v2009_v35  ;;  %v1196_v28 = vcvt.s32.f32 %v1194_v56  ;;  %v2012_v35 = vld [vmem:[%s3571_s8 + $0xf8] sm:$0xff] }
 0x6cc   :  { %2436 = vmatpush3.bf16.msra.mxu0 %v2433_v49 }
 0x6cd   :  { %1212 = vmin.xlane.f32.xlu0 %v3071_v44  ;;  %v3075_v47 = vcvt.s32.f32 %v1223_v45  ;;  %2438 = vmatprep.subr.bf16.mxu0 %v2437_v52  ;;  %v1124_v45 = vand.u32 65535, %v3023_v54 }
 0x6cf   :  { %1226 = vmin.xlane.f32.xlu1 %v3075_v47  ;;  %v1126_v46 = vcvt.s32.f32 %v1124_v45 }
 0x6d0   :  { %2440 = vmatpush3.bf16.msra.mxu0 %v2437_v52  ;;  %v1180_v52 = vand.u32 65535, %v3047_v27  ;;  %v1222_v27 = vand.u32 65535, %v3068_v43 }
 0x6d1   :  { %2442 = vmatprep.subr.bf16.mxu0 %v2441_v8 }
 0x6d2   :  { %v1182_v24 = vcvt.s32.f32 %v1180_v52 }
 0x6d4   :  { %2444 = vmatpush3.bf16.msra.mxu0 %v2441_v8  ;;  %v1168_v8 = vcvt.s32.f32 %v1166_v48 }
 0x6d5   :  { %2446 = vmatprep.subr.bf16.mxu0 %v2445_v26 }
 0x6d8   :  { %2448 = vmatpush3.bf16.msra.mxu0 %v2445_v26 }
 0x6d9   :  { %2450 = vmatprep.subr.bf16.mxu0 %v2449_v33 }
 0x6dc   :  { %2452 = vmatpush3.bf16.msra.mxu0 %v2449_v33 }
 0x6dd   :  { %2454 = vmatprep.subr.bf16.mxu0 %v2453_v40 }
 0x6e0   :  { %2456 = vmatpush3.bf16.msra.mxu0 %v2453_v40 }
 0x74e   :  { %v1129_v42 = vpop.xlane.xlu0 %1128 }
 0x74f   :  { %vm1130_vm6 = vcmp.eq.f32.partialorder %v3029_v58, %v1129_v42 }
 0x750   :  { %v1143_v49 = vpop.xlane.xlu1 %1142  ;;  %v1131_v51 = vsel %vm1130_vm6, %v1126_v46, inf }
 0x751   :  { %1132 = vmin.xlane.f32.xlu0 %v1131_v51  ;;  %vm1144_vm7 = vcmp.eq.f32.partialorder %v3036_v13, %v1143_v49  ;;  %v1149_v40 = vcvt.f32.s32 %v1143_v49 }
 0x752   :  { %v1157_v53 = vpop.xlane.xlu0 %1156  ;;  %v1145_v54 = vsel %vm1144_vm7, %v1140_v55, inf }
 0x753   :  { %1146 = vmin.xlane.f32.xlu1 %v1145_v54  ;;  %vm1158_vm8 = vcmp.eq.f32.partialorder %v3043_v25, %v1157_v53  ;;  %v1163_v41 = vcvt.f32.s32 %v1157_v53  ;;  %v1150_v51 = vshll.u32 %v1149_v40, 16 }
 0x754   :  { %v1171_v60 = vpop.xlane.xlu1 %1170  ;;  %v1159_v58 = vsel %vm1158_vm8, %v1154_v62, inf }
 0x755   :  { %1160 = vmin.xlane.f32.xlu0 %v1159_v58  ;;  %vm1172_vm9 = vcmp.eq.f32.partialorder %v3050_v29, %v1171_v60  ;;  %v1210_v29 = vcvt.s32.f32 %v1208_v23  ;;  %v1177_v55 = vcvt.f32.s32 %v1171_v60  ;;  %v1164_v58 = vshll.u32 %v1163_v41, 16 }
 0x756   :  { %v1185_v19 = vpop.xlane.xlu0 %1184  ;;  %v1173_v13 = vsel %vm1172_vm9, %v1168_v8, inf }
 0x757   :  { %1174 = vmin.xlane.f32.xlu1 %v1173_v13  ;;  %vm1186_vm10 = vcmp.eq.f32.partialorder %v3057_v34, %v1185_v19  ;;  %v1224_v34 = vcvt.s32.f32 %v1222_v27  ;;  %v1191_v62 = vcvt.f32.s32 %v1185_v19  ;;  %v1178_v23 = vshll.u32 %v1177_v55, 16 }
 0x758   :  { %v1199_v26 = vpop.xlane.xlu1 %1198  ;;  %v1187_v25 = vsel %vm1186_vm10, %v1182_v24, inf }
 0x759   :  { %1188 = vmin.xlane.f32.xlu0 %v1187_v25  ;;  %vm1200_vm11 = vcmp.eq.f32.partialorder %v3064_v39, %v1199_v26  ;;  %v2011_v39 = vld [vmem:[%s3571_s8 + $0xf0] sm:$0xff]  ;;  %v1205_v53 = vcvt.f32.s32 %v1199_v26  ;;  %v1192_v13 = vshll.u32 %v1191_v62, 16 }
 0x75a   :  { %v3134_v31 = vpop.xlane.xlu0 %1212  ;;  %v1201_v30 = vsel %vm1200_vm11, %v1196_v28, inf  ;;  %v2457_v37 = vpack.c.bf16 %v2012_v35, %v2011_v39 }
 0x75b   :  { %1202 = vmin.xlane.f32.xlu1 %v1201_v30  ;;  %vm1214_vm12 = vcmp.eq.f32.partialorder %v3071_v44, %v3134_v31  ;;  %v2539_v44 = vld [vmem:[%s3570_s7 + $0x20] sm:$0xff]   ;;  %v1219_v27 = vcvt.f32.s32 %v3134_v31  ;;  %v1206_v28 = vshll.u32 %v1205_v53, 16 }
 0x75c   :  { %v3138_v36 = vpop.xlane.xlu1 %1226  ;;  %v1215_v33 = vsel %vm1214_vm12, %v1210_v29, inf  ;;  %2458 = vmatprep.subr.bf16.mxu0 %v2457_v37  ;;  %2341 = vmatprep.subr.bf16.mxu1 %v2539_v44 }
 0x75d   :  { %1216 = vmin.xlane.f32.xlu0 %v1215_v33  ;;  %vm1228_vm13 = vcmp.eq.f32.partialorder %v3075_v47, %v3138_v36  ;;  %2460 = vmatpush3.bf16.msra.mxu0 %v2457_v37  ;;  %v1135_v47 = vcvt.f32.s32 %v1129_v42  ;;  %v1233_v29 = vcvt.f32.s32 %v3138_v36 }
 0x75e   :  { %v1229_v43 = vsel %vm1228_vm13, %v1224_v34, inf  ;;  %2342 = vmatpush3.bf16.msra.mxu1 %v2539_v44 }
 0x75f   :  { %1230 = vmin.xlane.f32.xlu1 %v1229_v43  ;;  %v1136_v50 = vshll.u32 %v1135_v47, 16  ;;  %v1220_v43 = vshll.u32 %v1219_v27, 16  ;;  %v1234_v37 = vshll.u32 %v1233_v29, 16 }
 0x7de   :  { %v1133_v45 = vpop.xlane.xlu0 %1132 }
 0x7df   :  { %v1134_v46 = vcvt.f32.s32 %v1133_v45  ;;  %v2540_v45 = vld [vmem:[%s3570_s7 + $0x28] sm:$0xff]  }
 0x7e0   :  { %v1147_v48 = vpop.xlane.xlu1 %1146  ;;  %2343 = vmatprep.subr.bf16.mxu1 %v2540_v45 }
 0x7e1   :  { %v1137_v52 = vadd.s32 %v1136_v50, %v1134_v46  ;;  %v1148_v54 = vcvt.f32.s32 %v1147_v48  ;;  %2344 = vmatpush3.bf16.msra.mxu1 %v2540_v45 }
 0x7e2   :  { %v1161_v56 = vpop.xlane.xlu0 %1160 }
 0x7e3   :  { %1430 = vst.msk [vmem:[%s3574_s11] sm:$0xff] %vm1429_vm14, %v1137_v52  ;;  %v1151_v42 = vadd.s32 %v1150_v51, %v1148_v54  ;;  %v1162_v49 = vcvt.f32.s32 %v1161_v56  ;;  %vm1236_vm15 = vcmp.eq.s32.totalorder %v2767_v38, %v1137_v52 }
 0x7e4   :  { %2329 = vmatprep.mubr.msk.f32.mxu0 %vm1236_vm15, %v3576_v32  ;;  %v1175_v8 = vpop.xlane.xlu1 %1174 }
 0x7e5   :  { %vm1237_vm1 = vcmp.eq.s32.totalorder %v2767_v38, %v1151_v42  ;;  %1431 = vst.msk [vmem:[%s3574_s11 + $0x8] sm:$0xff] %vm1429_vm14, %v1151_v42  ;;  %v1165_v60 = vadd.s32 %v1164_v58, %v1162_v49  ;;  %v1176_v19 = vcvt.f32.s32 %v1175_v8 }
 0x7e6   :  { %v1189_v24 = vpop.xlane.xlu0 %1188  ;;  %2330 = vmatmul.mubr.msk.f32.vlgmr.msra.gmra.mrb[16].mxu0 %vm1237_vm1, %v3576_v32 }
 0x7e7   :  { %1432 = vst.msk [vmem:[%s3574_s11 + $0x10] sm:$0xff] %vm1429_vm14, %v1165_v60  ;;  %v1179_v26 = vadd.s32 %v1178_v23, %v1176_v19  ;;  %v1190_v25 = vcvt.f32.s32 %v1189_v24  ;;  %vm1238_vm2 = vcmp.eq.s32.totalorder %v2767_v38, %v1165_v60 }
 0x7e8   :  { %2332 = vmatprep.mubr.msk.f32.mxu0 %vm1238_vm2, %v3576_v32  ;;  %v1203_v30 = vpop.xlane.xlu1 %1202 }
 0x7e9   :  { %1433 = vst.msk [vmem:[%s3574_s11 + $0x18] sm:$0xff] %vm1429_vm14, %v1179_v26  ;;  %v1193_v31 = vadd.s32 %v1192_v13, %v1190_v25  ;;  %v1204_v33 = vcvt.f32.s32 %v1203_v30  ;;  %vm1239_vm4 = vcmp.eq.s32.totalorder %v2767_v38, %v1179_v26  ;;  %v2062_v25 = vld [vmem:[%s3572_s9 + $0x2] ss:$0 sm:$0xff] }
 0x7ea   :  { %v1217_v34 = vpop.xlane.xlu0 %1216  ;;  %2333 = vmatmul.mubr.msk.f32.gmra.mrb[18].mxu0 %vm1239_vm4, %v3576_v32 }
 0x7eb   :  { %1434 = vst.msk [vmem:[%s3574_s11 + $0x20] sm:$0xff] %vm1429_vm14, %v1193_v31  ;;  %v1207_v39 = vadd.s32 %v1206_v28, %v1204_v33  ;;  %v1218_v36 = vcvt.f32.s32 %v1217_v34  ;;  %vm1240_vm5 = vcmp.eq.s32.totalorder %v2767_v38, %v1193_v31 }
 0x7ec   :  { %2335 = vmatprep.mubr.msk.f32.mxu0 %vm1240_vm5, %v3576_v32  ;;  %v1231_v35 = vpop.xlane.xlu1 %1230 }
 0x7ed   :  { %1435 = vst.msk [vmem:[%s3574_s11 + $0x28] sm:$0xff] %vm1429_vm14, %v1207_v39  ;;  %v1221_v44 = vadd.s32 %v1220_v43, %v1218_v36  ;;  %v1232_v47 = vcvt.f32.s32 %v1231_v35  ;;  %vm1241_vm6 = vcmp.eq.s32.totalorder %v2767_v38, %v1207_v39 }
 0x7ee   :  { %2336 = vmatmul.mubr.msk.f32.gmra.mrb[20].mxu0 %vm1241_vm6, %v3576_v32 }
 0x7ef   :  { %1436 = vst.msk [vmem:[%s3574_s11 + $0x30] sm:$0xff] %vm1429_vm14, %v1221_v44  ;;  %v1235_v40 = vadd.s32 %v1234_v37, %v1232_v47  ;;  %vm1242_vm7 = vcmp.eq.s32.totalorder %v2767_v38, %v1221_v44 }
 0x7f0   :  { %2338 = vmatprep.mubr.msk.f32.mxu0 %vm1242_vm7, %v3576_v32 }
 0x7f1   :  { %1437 = vst.msk [vmem:[%s3574_s11 + $0x38] sm:$0xff] %vm1429_vm14, %v1235_v40  ;;  %vm1243_vm8 = vcmp.eq.s32.totalorder %v2767_v38, %v1235_v40 }
 0x7f2   :  { %2339 = vmatmul.mubr.msk.f32.gmra.mrb[22].mxu0 %vm1243_vm8, %v3576_v32  ;;  %v2044_v32 = vld [vmem:[%s3571_s8 + $0x120] sm:$0xff] }
 0x8b9   :  { %v3204_v50 = vpop.f32.mrb[16].mxu0 }
 0x8ba   :  { %v3208_v41 = vsub.f32 %v2963_v0, %v3204_v50  ;;  %v3210_v46 = vpop.f32.mrb[17].mxu0 }
 0x8bb   :  { %v3214_v48 = vsub.f32 %v2969_v4, %v3210_v46 }
 0x8bd   :  { %v1461_v51 = vpack.c.bf16 %v3208_v41, %v3214_v48  ;;  %v3218_v55 = vpop.f32.mrb[18].mxu0 }
 0x8be   :  { %v3222_v52 = vsub.f32 %v2977_v10, %v3218_v55  ;;  %v3224_v54 = vpop.f32.mrb[19].mxu0 }
 0x8bf   :  { %v3228_v62 = vsub.f32 %v2983_v12, %v3224_v54  ;;  %2345 = vmatprep.mubr.msk.bf16.mxu1 %vm42_vm0, %v1461_v51 }
 0x8c1   :  { %v1462_v56 = vpack.c.bf16 %v3222_v52, %v3228_v62  ;;  %v3233_v58 = vpop.f32.mrb[20].mxu0 }
 0x8c2   :  { %v3237_v42 = vsub.f32 %v2992_v16, %v3233_v58  ;;  %v3239_v49 = vpop.f32.mrb[21].mxu0 }
 0x8c3   :  { %v3243_v53 = vsub.f32 %v2998_v17, %v3239_v49  ;;  %2346 = vmatmul.mubr.msk.bf16.vlgmr.msra.gmra.mrb[16].mxu1 %vm42_vm0, %v1462_v56 }
 0x8c4   :  { %3582 = vst [vmem:[#allocation5_spill] sm:$0xff] %v3237_v42 }
 0x8c5   :  { %3583 = vst [vmem:[#allocation6_spill] sm:$0xff] %v3243_v53  ;;  %v1463_v8 = vpack.c.bf16 %v3237_v42, %v3243_v53  ;;  %v3248_v23 = vpop.f32.mrb[22].mxu0 }
 0x8c6   :  { %v3252_v60 = vsub.f32 %v3007_v20, %v3248_v23  ;;  %v3254_v19 = vpop.f32.mrb[23].mxu0 }
 0x8c7   :  { %v3258_v13 = vsub.f32 %v3013_v22, %v3254_v19  ;;  %2349 = vmatprep.mubr.msk.bf16.mxu1 %vm42_vm0, %v1463_v8 }
 0x8c8   :  { %3584 = vst [vmem:[#allocation7_spill] sm:$0xff] %v3252_v60 }
 0x8c9   :  { %3585 = vst [vmem:[#allocation8_spill] sm:$0xff] %v3258_v13  ;;  %v1464_v24 = vpack.c.bf16 %v3252_v60, %v3258_v13  ;;  %v2045_v13 = vld [vmem:[%s3571_s8 + $0x128] sm:$0xff] }
 0x8ca   :  { %v2469_v60 = vpack.c.bf16 %v2045_v13, %v2044_v32  ;;  %v2050_v13 = vld [vmem:[%s3571_s8 + $0x150] sm:$0xff] }
 0x8cb   :  { %2350 = vmatmul.mubr.msk.bf16.gmra.mrb[20].mxu1 %vm42_vm0, %v1464_v24 }
 0x996   :  { %v2347_v27 = vpop.f32.mrb[16].mxu1 }
 0x997   :  { %v1523_v26 = vpop.f32.mrb[17].mxu1  ;;  %v1556_v31 = vmul.f32 2.0, %v2347_v27 }
 0x998   :  { %v1554_v28 = vmul.f32 2.0, %v1523_v26  ;;  %v2348_v30 = vpop.f32.mrb[18].mxu1 }
 0x999   :  { %v1526_v29 = vpop.f32.mrb[19].mxu1  ;;  %v1557_v43 = vmul.f32 2.0, %v2348_v30  ;;  %v1568_v35 = vsub.f32 %v2062_v25, %v1556_v31 }
 0x99a   :  { %v1555_v33 = vmul.f32 2.0, %v1526_v29  ;;  %v1566_v34 = vsub.f32 %v2062_v25, %v1554_v28 }
 0x99b   :  { %v1569_v40 = vsub.f32 %v2062_v25, %v1557_v43 }
 0x99c   :  { %1574 = vmin.xlane.f32.xlu0 %v1566_v34  ;;  %v1567_v39 = vsub.f32 %v2062_v25, %v1555_v33 }
 0x99e   :  { %1576 = vmin.xlane.f32.xlu1 %v1567_v39  ;;  %v2351_v36 = vpop.f32.mrb[20].mxu1 }
 0x99f   :  { %v1539_v37 = vpop.f32.mrb[21].mxu1  ;;  %v1560_v51 = vmul.f32 2.0, %v2351_v36 }
 0x9a0   :  { %v1558_v44 = vmul.f32 2.0, %v1539_v37  ;;  %1578 = vmin.xlane.f32.xlu0 %v1568_v35  ;;  %v2352_v47 = vpop.f32.mrb[22].mxu1 }
 0x9a1   :  { %v1542_v45 = vpop.f32.mrb[23].mxu1  ;;  %v1561_v24 = vmul.f32 2.0, %v2352_v47  ;;  %v1572_v26 = vsub.f32 %v2062_v25, %v1560_v51 }
 0x9a2   :  { %v1559_v56 = vmul.f32 2.0, %v1542_v45  ;;  %1580 = vmin.xlane.f32.xlu1 %v1569_v40  ;;  %v1570_v8 = vsub.f32 %v2062_v25, %v1558_v44 }
 0x9a3   :  { %v1573_v28 = vsub.f32 %v2062_v25, %v1561_v24 }
 0x9a4   :  { %1582 = vmin.xlane.f32.xlu0 %v1570_v8  ;;  %v1571_v27 = vsub.f32 %v2062_v25, %v1559_v56 }
 0x9a6   :  { %1584 = vmin.xlane.f32.xlu1 %v1571_v27 }
 0x9a8   :  { %1586 = vmin.xlane.f32.xlu0 %v1572_v26 }
 0x9aa   :  { %1588 = vmin.xlane.f32.xlu1 %v1573_v28 }
 0xa29   :  { %v1575_v30 = vpop.xlane.xlu0 %1574 }
 0xa2a   :  { %vm1590_vm9 = vcmp.le.f32.partialorder %v1566_v34, %v1575_v30 }
 0xa2b   :  { %v3268_v29 = vsel %vm1590_vm9, %v2767_v38, 128  ;;  %v1577_v31 = vpop.xlane.xlu1 %1576 }
 0xa2c   :  { %vm1591_vm10 = vcmp.le.f32.partialorder %v1567_v39, %v1577_v31  ;;  %v1607_v33 = vshra.s32 %v3268_v29, 16 }
 0xa2d   :  { %v3272_v43 = vsel %vm1591_vm10, %v2767_v38, 128  ;;  %v1579_v36 = vpop.xlane.xlu0 %1578 }
 0xa2e   :  { %vm1592_vm11 = vcmp.le.f32.partialorder %v1568_v35, %v1579_v36  ;;  %v3274_v37 = vcvt.s32.f32 %v1607_v33  ;;  %v1621_v44 = vshra.s32 %v3272_v43, 16 }
 0xa2f   :  { %v3278_v25 = vsel %vm1592_vm11, %v2767_v38, 128  ;;  %v1581_v34 = vpop.xlane.xlu1 %1580  ;;  %vm1903_vm11 = vcmask 23568  }
 0xa30   :  { %vm1593_vm12 = vcmp.le.f32.partialorder %v1569_v40, %v1581_v34  ;;  %1610 = vmin.xlane.f32.xlu0 %v3274_v37  ;;  %v3281_v47 = vcvt.s32.f32 %v1621_v44  ;;  %v1635_v39 = vshra.s32 %v3278_v25, 16 }
 0xa31   :  { %v3285_v45 = vsel %vm1593_vm12, %v2767_v38, 128  ;;  %v1583_v51 = vpop.xlane.xlu0 %1582 }
 0xa32   :  { %vm1594_vm13 = vcmp.le.f32.partialorder %v1570_v8, %v1583_v51  ;;  %1624 = vmin.xlane.f32.xlu1 %v3281_v47  ;;  %v3288_v35 = vcvt.s32.f32 %v1635_v39  ;;  %v1649_v56 = vshra.s32 %v3285_v45, 16  ;;  %v1648_v42 = vand.u32 65535, %v3285_v45 }
 0xa33   :  { %v3292_v24 = vsel %vm1594_vm13, %v2767_v38, 128  ;;  %v1585_v40 = vpop.xlane.xlu1 %1584 }
 0xa34   :  { %vm1595_vm14 = vcmp.le.f32.partialorder %v1571_v27, %v1585_v40  ;;  %1638 = vmin.xlane.f32.xlu0 %v3288_v35  ;;  %v3295_v30 = vcvt.s32.f32 %v1649_v56  ;;  %v1663_v31 = vshra.s32 %v3292_v24, 16 }
 0xa35   :  { %v3299_v33 = vsel %vm1595_vm14, %v2767_v38, 128  ;;  %v1587_v8 = vpop.xlane.xlu0 %1586 }
 0xa36   :  { %vm1596_vm15 = vcmp.le.f32.partialorder %v1572_v26, %v1587_v8  ;;  %1652 = vmin.xlane.f32.xlu1 %v3295_v30  ;;  %v3302_v36 = vcvt.s32.f32 %v1663_v31  ;;  %v1677_v44 = vshra.s32 %v3299_v33, 16  ;;  %v2041_v8 = vld [vmem:[%s3571_s8 + $0x108] sm:$0xff] }
 0xa37   :  { %v3306_v34 = vsel %vm1596_vm15, %v2767_v38, 128  ;;  %v1589_v27 = vpop.xlane.xlu1 %1588 }
 0xa38   :  { %vm1597_vm1 = vcmp.le.f32.partialorder %v1573_v28, %v1589_v27  ;;  %1666 = vmin.xlane.f32.xlu0 %v3302_v36  ;;  %v3309_v39 = vcvt.s32.f32 %v1677_v44  ;;  %v1691_v51 = vshra.s32 %v3306_v34, 16  ;;  %v2040_v28 = vld [vmem:[%s3571_s8 + $0x100] sm:$0xff]  ;;  %v2042_v44 = vld [vmem:[%s3571_s8 + $0x110] sm:$0xff] }
 0xa39   :  { %v3313_v56 = vsel %vm1597_vm1, %v2767_v38, 128  ;;  %v2461_v27 = vpack.c.bf16 %v2041_v8, %v2040_v28  ;;  %v2046_v28 = vld [vmem:[%s3571_s8 + $0x130] sm:$0xff]  ;;  %v2047_v8 = vld [vmem:[%s3571_s8 + $0x138] sm:$0xff] }
 0xa3a   :  { %1680 = vmin.xlane.f32.xlu1 %v3309_v39  ;;  %v3316_v26 = vcvt.s32.f32 %v1691_v51  ;;  %v1705_v40 = vshra.s32 %v3313_v56, 16  ;;  %v2043_v51 = vld [vmem:[%s3571_s8 + $0x118] sm:$0xff] }
 0xa3b   :  { %2462 = vmatprep.subr.bf16.mxu1 %v2461_v27 }
 0xa3c   :  { %1694 = vmin.xlane.f32.xlu0 %v3316_v26  ;;  %v3320_v31 = vcvt.s32.f32 %v1705_v40  ;;  %v2465_v40 = vpack.c.bf16 %v2043_v51, %v2042_v44  ;;  %2464 = vmatpush3.bf16.msra.mxu1 %v2461_v27  ;;  %v2473_v44 = vpack.c.bf16 %v2047_v8, %v2046_v28  ;;  %v2048_v51 = vld [vmem:[%s3571_s8 + $0x140] sm:$0xff]  ;;  %v2049_v27 = vld [vmem:[%s3571_s8 + $0x148] sm:$0xff] }
 0xa3d   :  { %v2477_v32 = vpack.c.bf16 %v2049_v27, %v2048_v51  ;;  %v2052_v8 = vld [vmem:[%s3571_s8 + $0x160] sm:$0xff]  ;;  %v1606_v27 = vand.u32 65535, %v3268_v29  ;;  %v1662_v29 = vand.u32 65535, %v3292_v24 }
 0xa3e   :  { %1708 = vmin.xlane.f32.xlu1 %v3320_v31  ;;  %2466 = vmatprep.subr.bf16.mxu1 %v2465_v40 }
 0xa3f   :  { %v1608_v53 = vcvt.s32.f32 %v1606_v27 }
 0xa40   :  { %2468 = vmatpush3.bf16.msra.mxu1 %v2465_v40  ;;  %v2051_v40 = vld [vmem:[%s3571_s8 + $0x158] sm:$0xff] }
 0xa41   :  { %2470 = vmatprep.subr.bf16.mxu1 %v2469_v60  ;;  %v2481_v28 = vpack.c.bf16 %v2051_v40, %v2050_v13  ;;  %v1634_v13 = vand.u32 65535, %v3278_v25 }
 0xa44   :  { %2472 = vmatpush3.bf16.msra.mxu1 %v2469_v60  ;;  %v2053_v60 = vld [vmem:[%s3571_s8 + $0x168] sm:$0xff] }
 0xa45   :  { %2474 = vmatprep.subr.bf16.mxu1 %v2473_v44  ;;  %v2485_v51 = vpack.c.bf16 %v2053_v60, %v2052_v8  ;;  %v1636_v60 = vcvt.s32.f32 %v1634_v13 }
 0xa48   :  { %2476 = vmatpush3.bf16.msra.mxu1 %v2473_v44  ;;  %v1620_v44 = vand.u32 65535, %v3272_v43 }
 0xa49   :  { %2478 = vmatprep.subr.bf16.mxu1 %v2477_v32 }
 0xa4c   :  { %2480 = vmatpush3.bf16.msra.mxu1 %v2477_v32 }
 0xa4d   :  { %2482 = vmatprep.subr.bf16.mxu1 %v2481_v28 }
 0xa50   :  { %2484 = vmatpush3.bf16.msra.mxu1 %v2481_v28  ;;  %v1622_v28 = vcvt.s32.f32 %v1620_v44  ;;  %v1664_v44 = vcvt.s32.f32 %v1662_v29 }
 0xa51   :  { %2486 = vmatprep.subr.bf16.mxu1 %v2485_v51 }
 0xa54   :  { %2488 = vmatpush3.bf16.msra.mxu1 %v2485_v51  ;;  %v1650_v51 = vcvt.s32.f32 %v1648_v42 }
 0xabd   :  { %v3368_v40 = vpop.xlane.xlu0 %1610 }
 0xabe   :  { %vm1612_vm2 = vcmp.eq.f32.partialorder %v3274_v37, %v3368_v40  ;;  %v1676_v37 = vand.u32 65535, %v3299_v33 }
 0xabf   :  { %v3373_v32 = vpop.xlane.xlu1 %1624  ;;  %v1613_v8 = vsel %vm1612_vm2, %v1608_v53, inf }
 0xac0   :  { %1614 = vmin.xlane.f32.xlu0 %v1613_v8  ;;  %vm1626_vm4 = vcmp.eq.f32.partialorder %v3281_v47, %v3373_v32  ;;  %v1690_v47 = vand.u32 65535, %v3306_v34  ;;  %v1678_v42 = vcvt.s32.f32 %v1676_v37  ;;  %v882_v8 = vsub.f32 %v2965_v1, %v2698_v59 }
 0xac1   :  { %v3378_v43 = vpop.xlane.xlu0 %1638  ;;  %v1627_v25 = vsel %vm1626_vm4, %v1622_v28, inf  ;;  %v884_v1 = vsub.f32 %v2979_v11, %v2696_v57  ;;  %v886_v37 = vsub.f32 %v2994_v14, %v2732_v5  ;;  %v2054_v57 = vld [vmem:[%s3571_s8 + $0x170] sm:$0xff]  ;;  %v2055_v11 = vld [vmem:[%s3571_s8 + $0x178] sm:$0xff] }
 0xac2   :  { %1628 = vmin.xlane.f32.xlu1 %v1627_v25  ;;  %vm1640_vm5 = vcmp.eq.f32.partialorder %v3288_v35, %v3378_v43  ;;  %v1704_v35 = vand.u32 65535, %v3313_v56  ;;  %v1692_v28 = vcvt.s32.f32 %v1690_v47  ;;  %v890_v59 = vmul.f32 %v882_v8, %v882_v8 }
 0xac3   :  { %v3383_v45 = vpop.xlane.xlu1 %1652  ;;  %v1641_v53 = vsel %vm1640_vm5, %v1636_v60, inf  ;;  %v894_v14 = vmul.f32 %v886_v37, %v886_v37 }
 0xac4   :  { %1642 = vmin.xlane.f32.xlu0 %v1641_v53  ;;  %vm1654_vm6 = vcmp.eq.f32.partialorder %v3295_v30, %v3383_v45  ;;  %v1706_v25 = vcvt.s32.f32 %v1704_v35  ;;  %v1659_v37 = vcvt.f32.s32 %v3383_v45 }
 0xac5   :  { %v3388_v24 = vpop.xlane.xlu0 %1666  ;;  %v1655_v27 = vsel %vm1654_vm6, %v1650_v51, inf  ;;  %v888_v51 = vsub.f32 %v3009_v21, %v2729_v3  ;;  %v910_v35 = vsel %vm42_vm0, %v894_v14, 0.0  ;;  %v1366_v3 = vsub.f32 %v3204_v50, %v2963_v0 }
 0xac6   :  { %1656 = vmin.xlane.f32.xlu1 %v1655_v27  ;;  %vm1668_vm7 = vcmp.eq.f32.partialorder %v3302_v36, %v3388_v24  ;;  %v883_v36 = vsub.f32 %v2959_v2, %v2712_v63  ;;  %v885_v63 = vsub.f32 %v2971_v6, %v2705_v61  ;;  %v898_v2 = vsel %vm42_vm0, %v890_v59, 0.0 }
 0xac7   :  { %v3393_v33 = vpop.xlane.xlu1 %1680  ;;  %v1669_v13 = vsel %vm1668_vm7, %v1664_v44, inf  ;;  %v887_v6 = vsub.f32 %v2988_v15, %v2746_v9  ;;  %v889_v44 = vsub.f32 %v3001_v18, %v2739_v7  ;;  %v896_v9 = vmul.f32 %v888_v51, %v888_v51 }
 0xac8   :  { %1670 = vmin.xlane.f32.xlu0 %v1669_v13  ;;  %vm1682_vm8 = vcmp.eq.f32.partialorder %v3309_v39, %v3393_v33  ;;  %v891_v60 = vmul.f32 %v883_v36, %v883_v36  ;;  %v893_v61 = vmul.f32 %v885_v63, %v885_v63  ;;  %v1365_v15 = vsub.f32 %v3210_v46, %v2969_v4 }
 0xac9   :  { %v3399_v30 = vpop.xlane.xlu0 %1694  ;;  %v1683_v34 = vsel %vm1682_vm8, %v1678_v42, inf  ;;  %v895_v27 = vmul.f32 %v887_v6, %v887_v6  ;;  %v897_v42 = vmul.f32 %v889_v44, %v889_v44  ;;  %v916_v21 = vsel %vm42_vm0, %v896_v9, 0.0 }
 0xaca   :  { %1684 = vmin.xlane.f32.xlu1 %v1683_v34  ;;  %vm1696_vm9 = vcmp.eq.f32.partialorder %v3316_v26, %v3399_v30  ;;  %v892_v26 = vmul.f32 %v884_v1, %v884_v1  ;;  %v901_v53 = vsel %vm42_vm0, %v891_v60, 0.0  ;;  %v907_v47 = vsel %vm42_vm0, %v893_v61, 0.0 }
 0xacb   :  { %v3405_v56 = vpop.xlane.xlu1 %1708  ;;  %v1697_v29 = vsel %vm1696_vm9, %v1692_v28, inf  ;;  %v913_v13 = vsel %vm42_vm0, %v895_v27, 0.0  ;;  %v1373_v8 = vmul.f32 %v1365_v15, %v1365_v15  ;;  %v1367_v7 = vsub.f32 %v3224_v54, %v2983_v12 }
 0xacc   :  { %1698 = vmin.xlane.f32.xlu0 %v1697_v29  ;;  %vm1710_vm10 = vcmp.eq.f32.partialorder %v3320_v31, %v3405_v56  ;;  %v2489_v31 = vpack.c.bf16 %v2055_v11, %v2054_v57  ;;  %v904_v5 = vsel %vm42_vm0, %v892_v26, 0.0  ;;  %v919_v18 = vsel %vm42_vm0, %v897_v42, 0.0 }
 0xacd   :  { %v1711_v39 = vsel %vm1710_vm10, %v1706_v25, inf  ;;  %v1374_v34 = vmul.f32 %v1366_v3, %v1366_v3  ;;  %v1368_v4 = vsub.f32 %v3218_v55, %v2977_v10  ;;  %v1381_v46 = vsel %vm42_vm0, %v1373_v8, 0.0 }
 0xace   :  { %1712 = vmin.xlane.f32.xlu1 %v1711_v39  ;;  %2490 = vmatprep.subr.bf16.mxu1 %v2489_v31  ;;  %v1375_v28 = vmul.f32 %v1367_v7, %v1367_v7  ;;  %v1369_v0 = vsub.f32 %v3239_v49, %v2998_v17  ;;  %v1370_v12 = vsub.f32 %v3233_v58, %v2992_v16  ;;  %v1617_v1 = vcvt.f32.s32 %v3368_v40 }
 0xacf   :  { %2492 = vmatpush3.bf16.msra.mxu1 %v2489_v31  ;;  %v1384_v50 = vsel %vm42_vm0, %v1374_v34, 0.0  ;;  %v1376_v36 = vmul.f32 %v1368_v4, %v1368_v4  ;;  %v1371_v54 = vsub.f32 %v3254_v19, %v3013_v22  ;;  %v1372_v17 = vsub.f32 %v3248_v23, %v3007_v20 }
 0xad0   :  { %899 = vadd.xlane.f32.xlu0 %v898_v2  ;;  %v1387_v10 = vsel %vm42_vm0, %v1375_v28, 0.0  ;;  %v1377_v55 = vmul.f32 %v1369_v0, %v1369_v0  ;;  %v1378_v25 = vmul.f32 %v1370_v12, %v1370_v12  ;;  %v1631_v39 = vcvt.f32.s32 %v3373_v32 }
 0xad1   :  { %v1390_v29 = vsel %vm42_vm0, %v1376_v36, 0.0  ;;  %v1379_v59 = vmul.f32 %v1371_v54, %v1371_v54  ;;  %v1380_v58 = vmul.f32 %v1372_v17, %v1372_v17  ;;  %v1618_v23 = vshll.u32 %v1617_v1, 16 }
 0xad2   :  { %902 = vadd.xlane.f32.xlu1 %v901_v53  ;;  %v1393_v49 = vsel %vm42_vm0, %v1377_v55, 0.0  ;;  %v1396_v16 = vsel %vm42_vm0, %v1378_v25, 0.0  ;;  %v1645_v60 = vcvt.f32.s32 %v3378_v43  ;;  %v1632_v26 = vshll.u32 %v1631_v39, 16 }
 0xad3   :  { %v1399_v22 = vsel %vm42_vm0, %v1379_v59, 0.0  ;;  %v1402_v19 = vsel %vm42_vm0, %v1380_v58, 0.0  ;;  %v1673_v31 = vcvt.f32.s32 %v3388_v24  ;;  %v1687_v43 = vcvt.f32.s32 %v3393_v33  ;;  %v3587_v59 = vld [vmem:[#allocation5_spill] sm:$0xff] }
 0xad4   :  { %905 = vadd.xlane.f32.xlu0 %v904_v5  ;;  %v1646_v61 = vshll.u32 %v1645_v60, 16  ;;  %v3586_v6 = vmov 1.0   ;;  %v1660_v5 = vshll.u32 %v1659_v37, 16  ;;  %v1701_v27 = vcvt.f32.s32 %v3399_v30 }
 0xad5   :  { %v1674_v51 = vshll.u32 %v1673_v31, 16  ;;  %v1715_v15 = vcvt.f32.s32 %v3405_v56 }
 0xad6   :  { %908 = vadd.xlane.f32.xlu1 %v907_v47  ;;  %v1702_v3 = vshll.u32 %v1701_v27, 16 }
 0xad7   :  { %v1716_v7 = vshll.u32 %v1715_v15, 16 }
 0xad8   :  { %911 = vadd.xlane.f32.xlu0 %v910_v35  ;;  %v1688_v35 = vshll.u32 %v1687_v43, 16 }
 0xada   :  { %914 = vadd.xlane.f32.xlu1 %v913_v13 }
 0xadc   :  { %917 = vadd.xlane.f32.xlu0 %v916_v21 }
 0xade   :  { %920 = vadd.xlane.f32.xlu1 %v919_v18 }
 0xae0   :  { %1382 = vadd.xlane.f32.xlu0 %v1381_v46 }
 0xae2   :  { %1385 = vadd.xlane.f32.xlu1 %v1384_v50 }
 0xae4   :  { %1388 = vadd.xlane.f32.xlu0 %v1387_v10 }
 0xae6   :  { %1391 = vadd.xlane.f32.xlu1 %v1390_v29 }
 0xae8   :  { %1394 = vadd.xlane.f32.xlu0 %v1393_v49 }
 0xaea   :  { %1397 = vadd.xlane.f32.xlu1 %v1396_v16 }
 0xaec   :  { %1400 = vadd.xlane.f32.xlu0 %v1399_v22  ;;  %v3588_v22 = vld [vmem:[#allocation6_spill] sm:$0xff] }
 0xaee   :  { %1403 = vadd.xlane.f32.xlu1 %v1402_v19 }
 0xb4d   :  { %v1615_v20 = vpop.xlane.xlu0 %1614 }
 0xb4e   :  { %v1616_v63 = vcvt.f32.s32 %v1615_v20  ;;  %v3589_v20 = vld [vmem:[#allocation7_spill] sm:$0xff] }
 0xb4f   :  { %v1629_v2 = vpop.xlane.xlu1 %1628 }
 0xb50   :  { %v1619_v57 = vadd.s32 %v1618_v23, %v1616_v63  ;;  %v1630_v11 = vcvt.f32.s32 %v1629_v2  ;;  %v3590_v2 = vld [vmem:[#allocation8_spill] sm:$0xff] }
 0xb51   :  { %v1643_v53 = vpop.xlane.xlu0 %1642 }
 0xb52   :  { %1904 = vst.msk [vmem:[%s3574_s11] sm:$0xff] %vm1903_vm11, %v1619_v57  ;;  %v1633_v40 = vadd.s32 %v1632_v26, %v1630_v11  ;;  %v1644_v32 = vcvt.f32.s32 %v1643_v53  ;;  %vm1718_vm12 = vcmp.eq.s32.totalorder %v2767_v38, %v1619_v57 }
 0xb53   :  { %2385 = vmatprep.mubr.msk.f32.mxu1 %vm1718_vm12, %v3586_v6  ;;  %v1657_v45 = vpop.xlane.xlu1 %1656 }
 0xb54   :  { %vm1719_vm13 = vcmp.eq.s32.totalorder %v2767_v38, %v1633_v40  ;;  %1905 = vst.msk [vmem:[%s3574_s11 + $0x8] sm:$0xff] %vm1903_vm11, %v1633_v40  ;;  %v1647_v24 = vadd.s32 %v1646_v61, %v1644_v32  ;;  %v1658_v14 = vcvt.f32.s32 %v1657_v45 }
 0xb55   :  { %v1671_v47 = vpop.xlane.xlu0 %1670  ;;  %2386 = vmatmul.mubr.msk.f32.vlgmr.msra.gmra.mrb[24].mxu1 %vm1719_vm13, %v3586_v6 }
 0xb56   :  { %1906 = vst.msk [vmem:[%s3574_s11 + $0x10] sm:$0xff] %vm1903_vm11, %v1647_v24  ;;  %v1661_v33 = vadd.s32 %v1660_v5, %v1658_v14  ;;  %v1672_v44 = vcvt.f32.s32 %v1671_v47  ;;  %vm1720_vm14 = vcmp.eq.s32.totalorder %v2767_v38, %v1647_v24 }
 0xb57   :  { %2388 = vmatprep.mubr.msk.f32.mxu1 %vm1720_vm14, %v3586_v6  ;;  %v1685_v9 = vpop.xlane.xlu1 %1684 }
 0xb58   :  { %1907 = vst.msk [vmem:[%s3574_s11 + $0x18] sm:$0xff] %vm1903_vm11, %v1661_v33  ;;  %v1675_v30 = vadd.s32 %v1674_v51, %v1672_v44  ;;  %v1686_v13 = vcvt.f32.s32 %v1685_v9  ;;  %vm1721_vm15 = vcmp.eq.s32.totalorder %v2767_v38, %v1661_v33 }
 0xb59   :  { %v1699_v42 = vpop.xlane.xlu0 %1698  ;;  %2389 = vmatmul.mubr.msk.f32.gmra.mrb[26].mxu1 %vm1721_vm15, %v3586_v6 }
 0xb5a   :  { %1908 = vst.msk [vmem:[%s3574_s11 + $0x20] sm:$0xff] %vm1903_vm11, %v1675_v30  ;;  %v1689_v21 = vadd.s32 %v1688_v35, %v1686_v13  ;;  %v1700_v56 = vcvt.f32.s32 %v1699_v42  ;;  %vm1722_vm1 = vcmp.eq.s32.totalorder %v2767_v38, %v1675_v30 }
 0xb5b   :  { %2391 = vmatprep.mubr.msk.f32.mxu1 %vm1722_vm1, %v3586_v6  ;;  %v1713_v8 = vpop.xlane.xlu1 %1712 }
 0xb5c   :  { %1909 = vst.msk [vmem:[%s3574_s11 + $0x28] sm:$0xff] %vm1903_vm11, %v1689_v21  ;;  %v1703_v18 = vadd.s32 %v1702_v3, %v1700_v56  ;;  %v1714_v34 = vcvt.f32.s32 %v1713_v8  ;;  %vm1723_vm2 = vcmp.eq.s32.totalorder %v2767_v38, %v1689_v21 }
 0xb5d   :  { %2392 = vmatmul.mubr.msk.f32.gmra.mrb[28].mxu1 %vm1723_vm2, %v3586_v6  ;;  %v900_v40 = vpop.xlane.xlu0 %899 }
 0xb5e   :  { %1910 = vst.msk [vmem:[%s3574_s11 + $0x30] sm:$0xff] %vm1903_vm11, %v1703_v18  ;;  %v1717_v4 = vadd.s32 %v1716_v7, %v1714_v34  ;;  %vm1724_vm4 = vcmp.eq.s32.totalorder %v2767_v38, %v1703_v18  ;;  %v923_v42 = vmul.f32 0.03125, %v900_v40 }
 0xb5f   :  { %2394 = vmatprep.mubr.msk.f32.mxu1 %vm1724_vm4, %v3586_v6  ;;  %v903_v61 = vpop.xlane.xlu1 %902 }
 0xb60   :  { %1911 = vst.msk [vmem:[%s3574_s11 + $0x38] sm:$0xff] %vm1903_vm11, %v1717_v4  ;;  %vm1725_vm5 = vcmp.eq.s32.totalorder %v2767_v38, %v1717_v4  ;;  %v924_v13 = vmul.f32 0.03125, %v903_v61 }
 0xb61   :  { %2395 = vmatmul.mubr.msk.f32.gmra.mrb[30].mxu1 %vm1725_vm5, %v3586_v6  ;;  %v906_v43 = vpop.xlane.xlu0 %905 }
 0xb63   :  { %v909_v32 = vpop.xlane.xlu1 %908 }
 0xb65   :  { %v912_v45 = vpop.xlane.xlu0 %911 }
 0xb67   :  { %v915_v6 = vpop.xlane.xlu1 %914 }
 0xb69   :  { %v918_v24 = vpop.xlane.xlu0 %917 }
 0xb6b   :  { %v921_v5 = vpop.xlane.xlu1 %920 }
 0xb6d   :  { %v1383_v51 = vpop.xlane.xlu0 %1382 }
 0xb6e   :  { %v1405_v30 = vmul.f32 0.03125, %v1383_v51 }
 0xb6f   :  { %v1386_v14 = vpop.xlane.xlu1 %1385 }
 0xb70   :  { %v1406_v9 = vmul.f32 0.03125, %v1386_v14  ;;  %v1413_v18 = vadd.f32 %v1405_v30, %v923_v42 }
 0xb71   :  { %v1389_v27 = vpop.xlane.xlu0 %1388 }
 0xb72   :  { %v1414_v21 = vadd.f32 %v1406_v9, %v924_v13  ;;  %v1407_v34 = vmul.f32 0.03125, %v1389_v27 }
 0xb73   :  { %v1392_v47 = vpop.xlane.xlu1 %1391 }
 0xb74   :  { %v1408_v56 = vmul.f32 0.03125, %v1392_v47 }
 0xb75   :  { %v1395_v44 = vpop.xlane.xlu0 %1394 }
 0xb77   :  { %v1398_v33 = vpop.xlane.xlu1 %1397 }
 0xb79   :  { %v1401_v15 = vpop.xlane.xlu0 %1400 }
 0xb7b   :  { %v1404_v35 = vpop.xlane.xlu1 %1403 }
 0xc28   :  { %v2387_v46 = vpop.f32.mrb[24].mxu1 }
 0xc29   :  { %v1848_v28 = vsub.f32 %v2387_v46, %v3208_v41  ;;  %v1808_v0 = vpop.f32.mrb[25].mxu1  ;;  %v926_v46 = vmul.f32 0.03125, %v909_v32 }
 0xc2a   :  { %v1847_v50 = vsub.f32 %v1808_v0, %v3214_v48  ;;  %v925_v0 = vmul.f32 0.03125, %v906_v43 }
 0xc2b   :  { %v1856_v36 = vmul.f32 %v1848_v28, %v1848_v28 }
 0xc2c   :  { %v2390_v12 = vpop.f32.mrb[26].mxu1  ;;  %v1855_v54 = vmul.f32 %v1847_v50, %v1847_v50 }
 0xc2d   :  { %v1850_v10 = vsub.f32 %v2390_v12, %v3222_v52  ;;  %v1818_v55 = vpop.f32.mrb[27].mxu1  ;;  %v1866_v29 = vsel %vm42_vm0, %v1856_v36, 0.0  ;;  %v1416_v12 = vadd.f32 %v1408_v56, %v926_v46 }
 0xc2e   :  { %v1849_v25 = vsub.f32 %v1818_v55, %v3228_v62  ;;  %1867 = vadd.xlane.f32.xlu1 %v1866_v29  ;;  %v1863_v38 = vsel %vm42_vm0, %v1855_v54, 0.0  ;;  %v1410_v54 = vmul.f32 0.03125, %v1398_v33 }
 0xc2f   :  { %1864 = vadd.xlane.f32.xlu0 %v1863_v38  ;;  %v1858_v17 = vmul.f32 %v1850_v10, %v1850_v10  ;;  %v1409_v38 = vmul.f32 0.03125, %v1395_v44 }
 0xc30   :  { %v2393_v49 = vpop.f32.mrb[28].mxu1  ;;  %v1857_v41 = vmul.f32 %v1849_v25, %v1849_v25  ;;  %v1415_v25 = vadd.f32 %v1407_v34, %v925_v0 }
 0xc31   :  { %v1852_v16 = vsub.f32 %v2393_v49, %v3587_v59  ;;  %v1828_v48 = vpop.f32.mrb[29].mxu1  ;;  %v1872_v58 = vsel %vm42_vm0, %v1858_v17, 0.0 }
 0xc32   :  { %v1851_v19 = vsub.f32 %v1828_v48, %v3588_v22  ;;  %1873 = vadd.xlane.f32.xlu1 %v1872_v58  ;;  %v1869_v52 = vsel %vm42_vm0, %v1857_v41, 0.0  ;;  %v928_v41 = vmul.f32 0.03125, %v915_v6 }
 0xc33   :  { %1870 = vadd.xlane.f32.xlu0 %v1869_v52  ;;  %v1860_v1 = vmul.f32 %v1852_v16, %v1852_v16  ;;  %v927_v16 = vmul.f32 0.03125, %v912_v45 }
 0xc34   :  { %v2396_v62 = vpop.f32.mrb[30].mxu1  ;;  %v1859_v39 = vmul.f32 %v1851_v19, %v1851_v19  ;;  %v1418_v22 = vadd.f32 %v1410_v54, %v928_v41  ;;  %v1412_v19 = vmul.f32 0.03125, %v1404_v35 }
 0xc35   :  { %v1854_v23 = vsub.f32 %v2396_v62, %v3589_v20  ;;  %v1838_v60 = vpop.f32.mrb[31].mxu1  ;;  %v1878_v63 = vsel %vm42_vm0, %v1860_v1, 0.0  ;;  %v1411_v20 = vmul.f32 0.03125, %v1401_v15 }
 0xc36   :  { %v1853_v26 = vsub.f32 %v1838_v60, %v3590_v2  ;;  %1879 = vadd.xlane.f32.xlu1 %v1878_v63  ;;  %v1875_v37 = vsel %vm42_vm0, %v1859_v39, 0.0  ;;  %v1417_v39 = vadd.f32 %v1409_v38, %v927_v16  ;;  %v930_v63 = vmul.f32 0.03125, %v921_v5 }
 0xc37   :  { %1876 = vadd.xlane.f32.xlu0 %v1875_v37  ;;  %v1862_v57 = vmul.f32 %v1854_v23, %v1854_v23 }
 0xc38   :  { %v1861_v11 = vmul.f32 %v1853_v26, %v1853_v26  ;;  %v929_v26 = vmul.f32 0.03125, %v918_v24 }
 0xc39   :  { %v1884_v31 = vsel %vm42_vm0, %v1862_v57, 0.0 }
 0xc3a   :  { %1885 = vadd.xlane.f32.xlu1 %v1884_v31  ;;  %v1881_v53 = vsel %vm42_vm0, %v1861_v11, 0.0  ;;  %v1420_v11 = vadd.f32 %v1412_v19, %v930_v63  ;;  %v1419_v40 = vadd.f32 %v1411_v20, %v929_v26 }
 0xc3b   :  { %1882 = vadd.xlane.f32.xlu0 %v1881_v53 }
 0xcbb   :  { %v1868_v3 = vpop.xlane.xlu1 %1867 }
 0xcbc   :  { %v1888_v8 = vmul.f32 0.03125, %v1868_v3  ;;  %v1865_v7 = vpop.xlane.xlu0 %1864 }
 0xcbd   :  { %v1887_v4 = vmul.f32 0.03125, %v1865_v7 }
 0xcbe   :  { %v1896_v28 = vadd.f32 %v1888_v8, %v1414_v21 }
 0xcbf   :  { %v1895_v50 = vadd.f32 %v1887_v4, %v1413_v18  ;;  %v1874_v36 = vpop.xlane.xlu1 %1873 }
 0xcc0   :  { %v1913_v10 = vmul.f32 0.33333334, %v1896_v28  ;;  %v1890_v55 = vmul.f32 0.03125, %v1874_v36  ;;  %v1871_v29 = vpop.xlane.xlu0 %1870 }
 0xcc1   :  { %v1912_v17 = vmul.f32 0.33333334, %v1895_v50  ;;  %v1889_v49 = vmul.f32 0.03125, %v1871_v29 }
 0xcc2   :  { %1921 = vst.msk [vmem:[%s3575_s12 + $0x8] sm:$0xff] %vm947_vm3, %v1913_v10  ;;  %v1898_v59 = vadd.f32 %v1890_v55, %v1416_v12 }
 0xcc3   :  { %1920 = vst.msk [vmem:[%s3575_s12] sm:$0xff] %vm947_vm3, %v1912_v17  ;;  %v1897_v48 = vadd.f32 %v1889_v49, %v1415_v25  ;;  %v1880_v58 = vpop.xlane.xlu1 %1879 }
 0xcc4   :  { %v1915_v52 = vmul.f32 0.33333334, %v1898_v59  ;;  %v1892_v1 = vmul.f32 0.03125, %v1880_v58  ;;  %v1877_v62 = vpop.xlane.xlu0 %1876 }
 0xcc5   :  { %v1914_v23 = vmul.f32 0.33333334, %v1897_v48  ;;  %v1891_v60 = vmul.f32 0.03125, %v1877_v62 }
 0xcc6   :  { %1923 = vst.msk [vmem:[%s3575_s12 + $0x18] sm:$0xff] %vm947_vm3, %v1915_v52  ;;  %v1900_v2 = vadd.f32 %v1892_v1, %v1418_v22 }
 0xcc7   :  { %1922 = vst.msk [vmem:[%s3575_s12 + $0x10] sm:$0xff] %vm947_vm3, %v1914_v23  ;;  %v1899_v37 = vadd.f32 %v1891_v60, %v1417_v39  ;;  %v1886_v57 = vpop.xlane.xlu1 %1885 }
 0xcc8   :  { %v1917_v31 = vmul.f32 0.33333334, %v1900_v2  ;;  %v1894_v53 = vmul.f32 0.03125, %v1886_v57  ;;  %v1883_v61 = vpop.xlane.xlu0 %1882 }
 0xcc9   :  { %v1916_v32 = vmul.f32 0.33333334, %v1899_v37  ;;  %v1893_v43 = vmul.f32 0.03125, %v1883_v61 }
 0xcca   :  { %1925 = vst.msk [vmem:[%s3575_s12 + $0x28] sm:$0xff] %vm947_vm3, %v1917_v31  ;;  %v1902_v6 = vadd.f32 %v1894_v53, %v1420_v11 }
 0xccb   :  { %1924 = vst.msk [vmem:[%s3575_s12 + $0x20] sm:$0xff] %vm947_vm3, %v1916_v32  ;;  %v1901_v45 = vadd.f32 %v1893_v43, %v1419_v40 }
 0xccc   :  { %v1919_v5 = vmul.f32 0.33333334, %v1902_v6 }
 0xccd   :  { %v1918_v24 = vmul.f32 0.33333334, %v1901_v45 }
 0xcce   :  { %1927 = vst.msk [vmem:[%s3575_s12 + $0x38] sm:$0xff] %vm947_vm3, %v1919_v5 }
 0xccf   :  { %1926 = vst.msk [vmem:[%s3575_s12 + $0x30] sm:$0xff] %vm947_vm3, %v1918_v24 }

</bundles_post_ra>
